<compile_context>
chip_gen: v6e
topology: v6e:2x2x1
jax: 0.10.0
libtpu: 0.0.40
codegen_flags: <defaults>
</compile_context>

<pallas_src>
import functools

import jax
import jax.numpy as jnp
from jax.experimental import pallas as pl
from jax.experimental.pallas import tpu as pltpu


# ----------------------------------------------------------------------------
# Fused pyramid kernel (one grid step = TB samples, end-to-end)
# ----------------------------------------------------------------------------
def _pyramid_kernel(a_ref, w1_ref, w2_ref, b2_ref, w3_ref, b3_ref,
                    w4_ref, b4_ref, o_ref, *, nbr, c3, cast_dtype, n_acc=8):
    f32 = jnp.float32

    # conv1 + ReLU.  16-way (q2, q1) block-diagonal weight; the trailing C1
    # input lanes carry the per-sample (viewpoint + bias) term through an
    # identity block, so the bias needs no in-kernel broadcast.
    h1 = jnp.dot(a_ref[...], w1_ref[...], preferred_element_type=f32)
    h1 = jnp.maximum(h1, 0.0).astype(cast_dtype)          # (M, 16*C1)

    # conv2 + ReLU.  4-way (q2) block-diagonal -> output lanes are (q2, C2),
    # which is exactly conv3's contraction layout.
    h2 = jnp.dot(h1, w2_ref[...], preferred_element_type=f32) + b2_ref[...]
    h2 = jnp.maximum(h2, 0.0).astype(cast_dtype)           # (M, 4*C2)

    # conv3 + ReLU: a single matmul with K = 4*C2.
    h3 = jnp.dot(h2, w3_ref[...], preferred_element_type=f32) + b3_ref[...]
    h3 = jnp.maximum(h3, 0.0).astype(cast_dtype)           # (M, C3)

    # conv4 + ReLU: contract the 8x8 receptive field as 64 contiguous,
    # statically-sliced row blocks of the h3 value (no VMEM scratch, no
    # store->load barrier).  Round-robin into n_acc independent accumulators
    # (keeps the MXU result FIFO pipelined on v5e/v6e), then tree-sum.
    accs = [None] * n_acc
    for q in range(64):
        part = jnp.dot(h3[q * nbr:(q + 1) * nbr, :],
                       w4_ref[q * c3:(q + 1) * c3, :],
                       preferred_element_type=f32)
        i = q % n_acc
        accs[i] = part if accs[i] is None else accs[i] + part
    while len(accs) > 1:
        nxt = [accs[i] + accs[i + 1] for i in range(0, len(accs) - 1, 2)]
        if len(accs) % 2:
            nxt.append(accs[-1])
        accs = nxt
    o_ref[...] = jnp.maximum(accs[0] + b4_ref[...], 0.0).astype(o_ref.dtype)


# ----------------------------------------------------------------------------
# Wrapper: trace-time weight permutation, one input regroup, one pallas_call
# ----------------------------------------------------------------------------
def _pick_batch_tile(batch, cap=8):
    """Largest divisor of `batch` <= cap that keeps >= 2 grid steps (v7x)."""
    best = 1
    for d in range(1, min(batch, cap) + 1):
        if batch % d == 0 and (batch // d >= 2 or batch == 1):
            best = d
    return best


def pyramid_representation(x, v, params, *, batch_tile=None,
                           compute_dtype=jnp.float32):
    """x: (B, n_channels, H, W), v: (B, v_dim) -> (B, r_dim, H//64, W//64)."""
    (w1, b1), (w2, b2), (w3, b3), (w4, b4) = params
    B, n_ch, H, W = x.shape
    assert H % 64 == 0 and W % 64 == 0, "pyramid needs 64-divisible spatial dims"
    H4, W4 = H // 64, W // 64
    R = H4 * W4                                  # conv4 output positions/sample
    C1 = w1.shape[0]
    C2, C3, C4 = w2.shape[0], w3.shape[0], w4.shape[0]
    K1 = 4 * n_ch                                # conv1 x-patch size (v folded out)

    TB = batch_tile if batch_tile is not None else _pick_batch_tile(B)
    assert B % TB == 0
    G = B // TB                                  # grid length
    NBR = TB * R                                 # rows per conv4 offset block
    M = 64 * NBR                                 # matmul rows per grid step
    LIN = 16 * K1 + C1                           # conv1 input lanes (+ bias lanes)

    f32 = jnp.float32
    cdt = compute_dtype

    # Fold the (spatially constant) viewpoint into a per-sample conv1 bias.
    w1x = w1[:, :n_ch]                                    # (C1, n_ch, 2, 2)
    w1v = w1[:, n_ch:]                                    # (C1, v_dim, 2, 2)
    b1_eff = b1[None, :] + v @ w1v.sum(axis=(2, 3)).T     # (B, C1)

    # conv1 input with hierarchical (q3, b_local, r) row order and
    # (q2, q1, c, kh, kw) lane order, plus C1 per-sample bias lanes.  This is
    # the ONLY runtime activation relayout; everything downstream is matmuls.
    # TODO(synk): if this XLA transpose ever dominates, regroup in-kernel from
    # raw NCHW blocks instead.
    x_r = x.reshape(G, TB, n_ch, H4, 8, 2, 2, 2, W4, 8, 2, 2, 2)
    #               g   b   c   h4 q3h q2h q1h kh  w4 q3w q2w q1w kw
    x_t = x_r.transpose(0, 4, 9, 1, 3, 8, 5, 10, 6, 11, 2, 7, 12)
    #    -> (g, q3h, q3w, b, h4, w4, q2h, q2w, q1h, q1w, c, kh, kw)
    x_lanes = x_t.reshape(G, M, 16 * K1)
    b1_rows = jnp.broadcast_to(b1_eff.reshape(G, 1, TB, 1, C1),
                               (G, 64, TB, R, C1)).reshape(G, M, C1)
    a1g = jnp.concatenate([x_lanes, b1_rows], axis=-1).astype(cdt)   # (G, M, LIN)

    # Trace-time weight permutations (a few KB/MB; activations never move).
    w1p = w1x.reshape(C1, K1).T.astype(f32)                          # (K1, C1)
    w1bd = jnp.kron(jnp.eye(16, dtype=f32), w1p)                     # (16K1, 16C1)
    w1bias = jnp.tile(jnp.eye(C1, dtype=f32), (1, 16))               # (C1, 16C1)
    w1e = jnp.concatenate([w1bd, w1bias], axis=0).astype(cdt)        # (LIN, 16C1)
    w2p = w2.transpose(2, 3, 1, 0).reshape(4 * C1, C2).astype(f32)
    w2bd = jnp.kron(jnp.eye(4, dtype=f32), w2p).astype(cdt)          # (16C1, 4C2)
    b2t = jnp.tile(b2.reshape(1, C2), (1, 4)).astype(f32)            # (1, 4C2)
    w3p = w3.transpose(2, 3, 1, 0).reshape(4 * C2, C3).astype(cdt)   # (4C2, C3)
    w4p = w4.transpose(2, 3, 1, 0).reshape(64 * C3, C4).astype(cdt)  # (64C3, C4)
    b3r = b3.reshape(1, C3).astype(f32)
    b4r = b4.reshape(1, C4).astype(f32)

    kernel = functools.partial(_pyramid_kernel, nbr=NBR, c3=C3, cast_dtype=cdt)
    out = pl.pallas_call(
        kernel,
        out_shape=jax.ShapeDtypeStruct((G, NBR, C4), f32),
        grid=(G,),
        in_specs=[
            pl.BlockSpec((None, M, LIN), lambda g: (g, 0, 0)),
            pl.BlockSpec((LIN, 16 * C1), lambda g: (0, 0)),
            pl.BlockSpec((16 * C1, 4 * C2), lambda g: (0, 0)),
            pl.BlockSpec((1, 4 * C2), lambda g: (0, 0)),
            pl.BlockSpec((4 * C2, C3), lambda g: (0, 0)),
            pl.BlockSpec((1, C3), lambda g: (0, 0)),
            pl.BlockSpec((64 * C3, C4), lambda g: (0, 0)),
            pl.BlockSpec((1, C4), lambda g: (0, 0)),
        ],
        out_specs=pl.BlockSpec((None, NBR, C4), lambda g: (g, 0, 0)),
        compiler_params=pltpu.CompilerParams(
            dimension_semantics=("parallel",)),
    )(a1g, w1e, w2bd, b2t, w3p, b3r, w4p, b4r)

    # Rows per step are (b_local, h4, w4); restore NCHW for the caller.
    return out.reshape(B, H4, W4, C4).transpose(0, 3, 1, 2)


# ----------------------------------------------------------------------------
# Parameter init (matches the PyTorch module's conv shapes)
# ----------------------------------------------------------------------------
def init_params(key, n_channels, v_dim, r_dim):
    k = r_dim
    shapes = [
        (k // 8, n_channels + v_dim, 2, 2),
        (k // 4, k // 8, 2, 2),
        (k // 2, k // 4, 2, 2),
        (k, k // 2, 8, 8),
    ]
    params = []
    for ws in shapes:
        key, kw, kb = jax.random.split(key, 3)
        fan_in = ws[1] * ws[2] * ws[3]
        scale = 1.0 / jnp.sqrt(fan_in)
        w = jax.random.uniform(kw, ws, jnp.float32, -scale, scale)
        b = jax.random.uniform(kb, (ws[0],), jnp.float32, -scale, scale)
        params.append((w, b))
    return params


# Pure-JAX reference (correctness check only).
def _reference_forward(x, v, params):
    B, _, H, W = x.shape
    v_map = jnp.broadcast_to(v[:, :, None, None], (B, v.shape[1], H, W))
    r = jnp.concatenate([x, v_map], axis=1)
    for (w, b), s in zip(params, (2, 2, 2, 8)):
        r = jax.lax.conv_general_dilated(
            r, w, (s, s), "VALID",
            dimension_numbers=("NCHW", "OIHW", "NCHW"))
        r = jax.nn.relu(r + b[None, :, None, None])
    return r


if __name__ == "__main__":
    # GQN images are 64x64 (the smallest size conv4's 8x8/stride-8 allows).
    # B=8 exercises batch tiling (TB=4, grid=2); r_dim=128 keeps the output
    # lane-dense (C4 = 128 -> unmasked stores).
    B, n_channels, v_dim, r_dim, H, W = 8, 3, 7, 128, 64, 64

    key = jax.random.PRNGKey(0)
    kx, kv, kp = jax.random.split(key, 3)
    x = jax.random.normal(kx, (B, n_channels, H, W), jnp.float32)
    v = jax.random.normal(kv, (B, v_dim), jnp.float32)
    params = init_params(kp, n_channels, v_dim, r_dim)

    ref = _reference_forward(x, v, params)

    # f32 MXU operands (all generations), tight tolerance.
    out = jax.block_until_ready(jax.jit(pyramid_representation)(x, v, params))
    assert out.shape == (B, r_dim, H // 64, W // 64), out.shape
    assert jnp.allclose(out, ref, atol=1e-3, rtol=1e-3), "f32 mismatch vs reference"

    # bf16 MXU operands with f32 accumulation (v6e/v7x fast path), looser tol.
    fwd_bf16 = jax.jit(functools.partial(pyramid_representation,
                                         compute_dtype=jnp.bfloat16))
    out_bf16 = jax.block_until_ready(fwd_bf16(x, v, params))
    assert jnp.allclose(out_bf16, ref, atol=2e-2, rtol=2e-2), \
        "bf16 mismatch vs reference"

    print("KERNEL_OK")
</pallas_src>

<mosaic_0001>
module attributes {stable_mosaic.version = 11 : i64} {
  func.func @_pyramid_kernel(%arg0: i32, %arg1: memref<1x256x208xf32, #tpu.memory_space<vmem>>, %arg2: memref<208x256xf32, #tpu.memory_space<vmem>>, %arg3: memref<256x128xf32, #tpu.memory_space<vmem>>, %arg4: memref<1x128xf32, #tpu.memory_space<vmem>>, %arg5: memref<128x64xf32, #tpu.memory_space<vmem>>, %arg6: memref<1x64xf32, #tpu.memory_space<vmem>>, %arg7: memref<4096x128xf32, #tpu.memory_space<vmem>>, %arg8: memref<1x128xf32, #tpu.memory_space<vmem>>, %arg9: memref<1x4x128xf32, #tpu.memory_space<vmem>>) attributes {dimension_semantics = [#tpu.dimension_semantics<parallel>], iteration_bounds = array<i64: 2>, scalar_prefetch = 0 : i64, scratch_operands = 0 : i64, tpu.core_type = #tpu.core_type<tc>, window_params = [{transform_indices = @transform_0, window_bounds = array<i64: 1, 256, 208>}, {pipeline_mode = #tpu.pipeline_mode<synchronous>, transform_indices = @transform_1, window_bounds = array<i64: 208, 256>}, {pipeline_mode = #tpu.pipeline_mode<synchronous>, transform_indices = @transform_2, window_bounds = array<i64: 256, 128>}, {pipeline_mode = #tpu.pipeline_mode<synchronous>, transform_indices = @transform_3, window_bounds = array<i64: 1, 128>}, {pipeline_mode = #tpu.pipeline_mode<synchronous>, transform_indices = @transform_4, window_bounds = array<i64: 128, 64>}, {pipeline_mode = #tpu.pipeline_mode<synchronous>, transform_indices = @transform_5, window_bounds = array<i64: 1, 64>}, {pipeline_mode = #tpu.pipeline_mode<synchronous>, transform_indices = @transform_6, window_bounds = array<i64: 4096, 128>}, {pipeline_mode = #tpu.pipeline_mode<synchronous>, transform_indices = @transform_7, window_bounds = array<i64: 1, 128>}, {transform_indices = @transform_8, window_bounds = array<i64: 1, 4, 128>}]} {
    %c0 = arith.constant 0 : index
    %c0_0 = arith.constant 0 : index
    %c0_1 = arith.constant 0 : index
    %0 = vector.load %arg1[%c0, %c0_0, %c0_1] : memref<1x256x208xf32, #tpu.memory_space<vmem>>, vector<1x256x208xf32>
    %1 = vector.shape_cast %0 : vector<1x256x208xf32> to vector<256x208xf32>
    %c0_2 = arith.constant 0 : index
    %c0_3 = arith.constant 0 : index
    %2 = vector.load %arg2[%c0_2, %c0_3] : memref<208x256xf32, #tpu.memory_space<vmem>>, vector<208x256xf32>
    %cst = arith.constant dense<0.000000e+00> : vector<256x256xf32>
    %3 = tpu.matmul %1, %2, %cst {dimension_numbers = #tpu.dot_dimension_numbers<[1], [0], [0], [1], [0, 0, 1, 1], [], []>} : vector<256x208xf32>, vector<208x256xf32>, vector<256x256xf32> -> vector<256x256xf32>
    %cst_4 = arith.constant 0.000000e+00 : f32
    %4 = vector.broadcast %cst_4 : f32 to vector<256x256xf32>
    %5 = arith.maximumf %3, %4 : vector<256x256xf32>
    %c0_5 = arith.constant 0 : index
    %c0_6 = arith.constant 0 : index
    %6 = vector.load %arg3[%c0_5, %c0_6] : memref<256x128xf32, #tpu.memory_space<vmem>>, vector<256x128xf32>
    %cst_7 = arith.constant dense<0.000000e+00> : vector<256x128xf32>
    %7 = tpu.matmul %5, %6, %cst_7 {dimension_numbers = #tpu.dot_dimension_numbers<[1], [0], [0], [1], [0, 0, 1, 1], [], []>} : vector<256x256xf32>, vector<256x128xf32>, vector<256x128xf32> -> vector<256x128xf32>
    %c0_8 = arith.constant 0 : index
    %c0_9 = arith.constant 0 : index
    %8 = vector.load %arg4[%c0_8, %c0_9] : memref<1x128xf32, #tpu.memory_space<vmem>>, vector<1x128xf32>
    %9 = vector.broadcast %8 : vector<1x128xf32> to vector<256x128xf32>
    %10 = arith.addf %7, %9 : vector<256x128xf32>
    %cst_10 = arith.constant 0.000000e+00 : f32
    %11 = vector.broadcast %cst_10 : f32 to vector<256x128xf32>
    %12 = arith.maximumf %10, %11 : vector<256x128xf32>
    %c0_11 = arith.constant 0 : index
    %c0_12 = arith.constant 0 : index
    %13 = vector.load %arg5[%c0_11, %c0_12] : memref<128x64xf32, #tpu.memory_space<vmem>>, vector<128x64xf32>
    %cst_13 = arith.constant dense<0.000000e+00> : vector<256x64xf32>
    %14 = tpu.matmul %12, %13, %cst_13 {dimension_numbers = #tpu.dot_dimension_numbers<[1], [0], [0], [1], [0, 0, 1, 1], [], []>} : vector<256x128xf32>, vector<128x64xf32>, vector<256x64xf32> -> vector<256x64xf32>
    %c0_14 = arith.constant 0 : index
    %c0_15 = arith.constant 0 : index
    %15 = vector.load %arg6[%c0_14, %c0_15] : memref<1x64xf32, #tpu.memory_space<vmem>>, vector<1x64xf32>
    %16 = vector.broadcast %15 : vector<1x64xf32> to vector<256x64xf32>
    %17 = arith.addf %14, %16 : vector<256x64xf32>
    %cst_16 = arith.constant 0.000000e+00 : f32
    %18 = vector.broadcast %cst_16 : f32 to vector<256x64xf32>
    %19 = arith.maximumf %17, %18 : vector<256x64xf32>
    %20 = vector.extract_strided_slice %19 {offsets = [0, 0], sizes = [4, 64], strides = [1, 1]} : vector<256x64xf32> to vector<4x64xf32>
    %c0_17 = arith.constant 0 : index
    %c0_18 = arith.constant 0 : index
    %21 = vector.load %arg7[%c0_17, %c0_18] : memref<4096x128xf32, #tpu.memory_space<vmem>>, vector<64x128xf32>
    %cst_19 = arith.constant dense<0.000000e+00> : vector<4x128xf32>
    %22 = tpu.matmul %20, %21, %cst_19 {dimension_numbers = #tpu.dot_dimension_numbers<[1], [0], [0], [1], [0, 0, 1, 1], [], []>} : vector<4x64xf32>, vector<64x128xf32>, vector<4x128xf32> -> vector<4x128xf32>
    %23 = vector.extract_strided_slice %19 {offsets = [4, 0], sizes = [4, 64], strides = [1, 1]} : vector<256x64xf32> to vector<4x64xf32>
    %c64 = arith.constant 64 : index
    %c0_20 = arith.constant 0 : index
    %24 = vector.load %arg7[%c64, %c0_20] : memref<4096x128xf32, #tpu.memory_space<vmem>>, vector<64x128xf32>
    %cst_21 = arith.constant dense<0.000000e+00> : vector<4x128xf32>
    %25 = tpu.matmul %23, %24, %cst_21 {dimension_numbers = #tpu.dot_dimension_numbers<[1], [0], [0], [1], [0, 0, 1, 1], [], []>} : vector<4x64xf32>, vector<64x128xf32>, vector<4x128xf32> -> vector<4x128xf32>
    %26 = vector.extract_strided_slice %19 {offsets = [8, 0], sizes = [4, 64], strides = [1, 1]} : vector<256x64xf32> to vector<4x64xf32>
    %c128 = arith.constant 128 : index
    %c0_22 = arith.constant 0 : index
    %27 = vector.load %arg7[%c128, %c0_22] : memref<4096x128xf32, #tpu.memory_space<vmem>>, vector<64x128xf32>
    %cst_23 = arith.constant dense<0.000000e+00> : vector<4x128xf32>
    %28 = tpu.matmul %26, %27, %cst_23 {dimension_numbers = #tpu.dot_dimension_numbers<[1], [0], [0], [1], [0, 0, 1, 1], [], []>} : vector<4x64xf32>, vector<64x128xf32>, vector<4x128xf32> -> vector<4x128xf32>
    %29 = vector.extract_strided_slice %19 {offsets = [12, 0], sizes = [4, 64], strides = [1, 1]} : vector<256x64xf32> to vector<4x64xf32>
    %c192 = arith.constant 192 : index
    %c0_24 = arith.constant 0 : index
    %30 = vector.load %arg7[%c192, %c0_24] : memref<4096x128xf32, #tpu.memory_space<vmem>>, vector<64x128xf32>
    %cst_25 = arith.constant dense<0.000000e+00> : vector<4x128xf32>
    %31 = tpu.matmul %29, %30, %cst_25 {dimension_numbers = #tpu.dot_dimension_numbers<[1], [0], [0], [1], [0, 0, 1, 1], [], []>} : vector<4x64xf32>, vector<64x128xf32>, vector<4x128xf32> -> vector<4x128xf32>
    %32 = vector.extract_strided_slice %19 {offsets = [16, 0], sizes = [4, 64], strides = [1, 1]} : vector<256x64xf32> to vector<4x64xf32>
    %c256 = arith.constant 256 : index
    %c0_26 = arith.constant 0 : index
    %33 = vector.load %arg7[%c256, %c0_26] : memref<4096x128xf32, #tpu.memory_space<vmem>>, vector<64x128xf32>
    %cst_27 = arith.constant dense<0.000000e+00> : vector<4x128xf32>
    %34 = tpu.matmul %32, %33, %cst_27 {dimension_numbers = #tpu.dot_dimension_numbers<[1], [0], [0], [1], [0, 0, 1, 1], [], []>} : vector<4x64xf32>, vector<64x128xf32>, vector<4x128xf32> -> vector<4x128xf32>
    %35 = vector.extract_strided_slice %19 {offsets = [20, 0], sizes = [4, 64], strides = [1, 1]} : vector<256x64xf32> to vector<4x64xf32>
    %c320 = arith.constant 320 : index
    %c0_28 = arith.constant 0 : index
    %36 = vector.load %arg7[%c320, %c0_28] : memref<4096x128xf32, #tpu.memory_space<vmem>>, vector<64x128xf32>
    %cst_29 = arith.constant dense<0.000000e+00> : vector<4x128xf32>
    %37 = tpu.matmul %35, %36, %cst_29 {dimension_numbers = #tpu.dot_dimension_numbers<[1], [0], [0], [1], [0, 0, 1, 1], [], []>} : vector<4x64xf32>, vector<64x128xf32>, vector<4x128xf32> -> vector<4x128xf32>
    %38 = vector.extract_strided_slice %19 {offsets = [24, 0], sizes = [4, 64], strides = [1, 1]} : vector<256x64xf32> to vector<4x64xf32>
    %c384 = arith.constant 384 : index
    %c0_30 = arith.constant 0 : index
    %39 = vector.load %arg7[%c384, %c0_30] : memref<4096x128xf32, #tpu.memory_space<vmem>>, vector<64x128xf32>
    %cst_31 = arith.constant dense<0.000000e+00> : vector<4x128xf32>
    %40 = tpu.matmul %38, %39, %cst_31 {dimension_numbers = #tpu.dot_dimension_numbers<[1], [0], [0], [1], [0, 0, 1, 1], [], []>} : vector<4x64xf32>, vector<64x128xf32>, vector<4x128xf32> -> vector<4x128xf32>
    %41 = vector.extract_strided_slice %19 {offsets = [28, 0], sizes = [4, 64], strides = [1, 1]} : vector<256x64xf32> to vector<4x64xf32>
    %c448 = arith.constant 448 : index
    %c0_32 = arith.constant 0 : index
    %42 = vector.load %arg7[%c448, %c0_32] : memref<4096x128xf32, #tpu.memory_space<vmem>>, vector<64x128xf32>
    %cst_33 = arith.constant dense<0.000000e+00> : vector<4x128xf32>
    %43 = tpu.matmul %41, %42, %cst_33 {dimension_numbers = #tpu.dot_dimension_numbers<[1], [0], [0], [1], [0, 0, 1, 1], [], []>} : vector<4x64xf32>, vector<64x128xf32>, vector<4x128xf32> -> vector<4x128xf32>
    %44 = vector.extract_strided_slice %19 {offsets = [32, 0], sizes = [4, 64], strides = [1, 1]} : vector<256x64xf32> to vector<4x64xf32>
    %c512 = arith.constant 512 : index
    %c0_34 = arith.constant 0 : index
    %45 = vector.load %arg7[%c512, %c0_34] : memref<4096x128xf32, #tpu.memory_space<vmem>>, vector<64x128xf32>
    %cst_35 = arith.constant dense<0.000000e+00> : vector<4x128xf32>
    %46 = tpu.matmul %44, %45, %cst_35 {dimension_numbers = #tpu.dot_dimension_numbers<[1], [0], [0], [1], [0, 0, 1, 1], [], []>} : vector<4x64xf32>, vector<64x128xf32>, vector<4x128xf32> -> vector<4x128xf32>
    %47 = arith.addf %22, %46 : vector<4x128xf32>
    %48 = vector.extract_strided_slice %19 {offsets = [36, 0], sizes = [4, 64], strides = [1, 1]} : vector<256x64xf32> to vector<4x64xf32>
    %c576 = arith.constant 576 : index
    %c0_36 = arith.constant 0 : index
    %49 = vector.load %arg7[%c576, %c0_36] : memref<4096x128xf32, #tpu.memory_space<vmem>>, vector<64x128xf32>
    %cst_37 = arith.constant dense<0.000000e+00> : vector<4x128xf32>
    %50 = tpu.matmul %48, %49, %cst_37 {dimension_numbers = #tpu.dot_dimension_numbers<[1], [0], [0], [1], [0, 0, 1, 1], [], []>} : vector<4x64xf32>, vector<64x128xf32>, vector<4x128xf32> -> vector<4x128xf32>
    %51 = arith.addf %25, %50 : vector<4x128xf32>
    %52 = vector.extract_strided_slice %19 {offsets = [40, 0], sizes = [4, 64], strides = [1, 1]} : vector<256x64xf32> to vector<4x64xf32>
    %c640 = arith.constant 640 : index
    %c0_38 = arith.constant 0 : index
    %53 = vector.load %arg7[%c640, %c0_38] : memref<4096x128xf32, #tpu.memory_space<vmem>>, vector<64x128xf32>
    %cst_39 = arith.constant dense<0.000000e+00> : vector<4x128xf32>
    %54 = tpu.matmul %52, %53, %cst_39 {dimension_numbers = #tpu.dot_dimension_numbers<[1], [0], [0], [1], [0, 0, 1, 1], [], []>} : vector<4x64xf32>, vector<64x128xf32>, vector<4x128xf32> -> vector<4x128xf32>
    %55 = arith.addf %28, %54 : vector<4x128xf32>
    %56 = vector.extract_strided_slice %19 {offsets = [44, 0], sizes = [4, 64], strides = [1, 1]} : vector<256x64xf32> to vector<4x64xf32>
    %c704 = arith.constant 704 : index
    %c0_40 = arith.constant 0 : index
    %57 = vector.load %arg7[%c704, %c0_40] : memref<4096x128xf32, #tpu.memory_space<vmem>>, vector<64x128xf32>
    %cst_41 = arith.constant dense<0.000000e+00> : vector<4x128xf32>
    %58 = tpu.matmul %56, %57, %cst_41 {dimension_numbers = #tpu.dot_dimension_numbers<[1], [0], [0], [1], [0, 0, 1, 1], [], []>} : vector<4x64xf32>, vector<64x128xf32>, vector<4x128xf32> -> vector<4x128xf32>
    %59 = arith.addf %31, %58 : vector<4x128xf32>
    %60 = vector.extract_strided_slice %19 {offsets = [48, 0], sizes = [4, 64], strides = [1, 1]} : vector<256x64xf32> to vector<4x64xf32>
    %c768 = arith.constant 768 : index
    %c0_42 = arith.constant 0 : index
    %61 = vector.load %arg7[%c768, %c0_42] : memref<4096x128xf32, #tpu.memory_space<vmem>>, vector<64x128xf32>
    %cst_43 = arith.constant dense<0.000000e+00> : vector<4x128xf32>
    %62 = tpu.matmul %60, %61, %cst_43 {dimension_numbers = #tpu.dot_dimension_numbers<[1], [0], [0], [1], [0, 0, 1, 1], [], []>} : vector<4x64xf32>, vector<64x128xf32>, vector<4x128xf32> -> vector<4x128xf32>
    %63 = arith.addf %34, %62 : vector<4x128xf32>
    %64 = vector.extract_strided_slice %19 {offsets = [52, 0], sizes = [4, 64], strides = [1, 1]} : vector<256x64xf32> to vector<4x64xf32>
    %c832 = arith.constant 832 : index
    %c0_44 = arith.constant 0 : index
    %65 = vector.load %arg7[%c832, %c0_44] : memref<4096x128xf32, #tpu.memory_space<vmem>>, vector<64x128xf32>
    %cst_45 = arith.constant dense<0.000000e+00> : vector<4x128xf32>
    %66 = tpu.matmul %64, %65, %cst_45 {dimension_numbers = #tpu.dot_dimension_numbers<[1], [0], [0], [1], [0, 0, 1, 1], [], []>} : vector<4x64xf32>, vector<64x128xf32>, vector<4x128xf32> -> vector<4x128xf32>
    %67 = arith.addf %37, %66 : vector<4x128xf32>
    %68 = vector.extract_strided_slice %19 {offsets = [56, 0], sizes = [4, 64], strides = [1, 1]} : vector<256x64xf32> to vector<4x64xf32>
    %c896 = arith.constant 896 : index
    %c0_46 = arith.constant 0 : index
    %69 = vector.load %arg7[%c896, %c0_46] : memref<4096x128xf32, #tpu.memory_space<vmem>>, vector<64x128xf32>
    %cst_47 = arith.constant dense<0.000000e+00> : vector<4x128xf32>
    %70 = tpu.matmul %68, %69, %cst_47 {dimension_numbers = #tpu.dot_dimension_numbers<[1], [0], [0], [1], [0, 0, 1, 1], [], []>} : vector<4x64xf32>, vector<64x128xf32>, vector<4x128xf32> -> vector<4x128xf32>
    %71 = arith.addf %40, %70 : vector<4x128xf32>
    %72 = vector.extract_strided_slice %19 {offsets = [60, 0], sizes = [4, 64], strides = [1, 1]} : vector<256x64xf32> to vector<4x64xf32>
    %c960 = arith.constant 960 : index
    %c0_48 = arith.constant 0 : index
    %73 = vector.load %arg7[%c960, %c0_48] : memref<4096x128xf32, #tpu.memory_space<vmem>>, vector<64x128xf32>
    %cst_49 = arith.constant dense<0.000000e+00> : vector<4x128xf32>
    %74 = tpu.matmul %72, %73, %cst_49 {dimension_numbers = #tpu.dot_dimension_numbers<[1], [0], [0], [1], [0, 0, 1, 1], [], []>} : vector<4x64xf32>, vector<64x128xf32>, vector<4x128xf32> -> vector<4x128xf32>
    %75 = arith.addf %43, %74 : vector<4x128xf32>
    %76 = vector.extract_strided_slice %19 {offsets = [64, 0], sizes = [4, 64], strides = [1, 1]} : vector<256x64xf32> to vector<4x64xf32>
    %c1024 = arith.constant 1024 : index
    %c0_50 = arith.constant 0 : index
    %77 = vector.load %arg7[%c1024, %c0_50] : memref<4096x128xf32, #tpu.memory_space<vmem>>, vector<64x128xf32>
    %cst_51 = arith.constant dense<0.000000e+00> : vector<4x128xf32>
    %78 = tpu.matmul %76, %77, %cst_51 {dimension_numbers = #tpu.dot_dimension_numbers<[1], [0], [0], [1], [0, 0, 1, 1], [], []>} : vector<4x64xf32>, vector<64x128xf32>, vector<4x128xf32> -> vector<4x128xf32>
    %79 = arith.addf %47, %78 : vector<4x128xf32>
    %80 = vector.extract_strided_slice %19 {offsets = [68, 0], sizes = [4, 64], strides = [1, 1]} : vector<256x64xf32> to vector<4x64xf32>
    %c1088 = arith.constant 1088 : index
    %c0_52 = arith.constant 0 : index
    %81 = vector.load %arg7[%c1088, %c0_52] : memref<4096x128xf32, #tpu.memory_space<vmem>>, vector<64x128xf32>
    %cst_53 = arith.constant dense<0.000000e+00> : vector<4x128xf32>
    %82 = tpu.matmul %80, %81, %cst_53 {dimension_numbers = #tpu.dot_dimension_numbers<[1], [0], [0], [1], [0, 0, 1, 1], [], []>} : vector<4x64xf32>, vector<64x128xf32>, vector<4x128xf32> -> vector<4x128xf32>
    %83 = arith.addf %51, %82 : vector<4x128xf32>
    %84 = vector.extract_strided_slice %19 {offsets = [72, 0], sizes = [4, 64], strides = [1, 1]} : vector<256x64xf32> to vector<4x64xf32>
    %c1152 = arith.constant 1152 : index
    %c0_54 = arith.constant 0 : index
    %85 = vector.load %arg7[%c1152, %c0_54] : memref<4096x128xf32, #tpu.memory_space<vmem>>, vector<64x128xf32>
    %cst_55 = arith.constant dense<0.000000e+00> : vector<4x128xf32>
    %86 = tpu.matmul %84, %85, %cst_55 {dimension_numbers = #tpu.dot_dimension_numbers<[1], [0], [0], [1], [0, 0, 1, 1], [], []>} : vector<4x64xf32>, vector<64x128xf32>, vector<4x128xf32> -> vector<4x128xf32>
    %87 = arith.addf %55, %86 : vector<4x128xf32>
    %88 = vector.extract_strided_slice %19 {offsets = [76, 0], sizes = [4, 64], strides = [1, 1]} : vector<256x64xf32> to vector<4x64xf32>
    %c1216 = arith.constant 1216 : index
    %c0_56 = arith.constant 0 : index
    %89 = vector.load %arg7[%c1216, %c0_56] : memref<4096x128xf32, #tpu.memory_space<vmem>>, vector<64x128xf32>
    %cst_57 = arith.constant dense<0.000000e+00> : vector<4x128xf32>
    %90 = tpu.matmul %88, %89, %cst_57 {dimension_numbers = #tpu.dot_dimension_numbers<[1], [0], [0], [1], [0, 0, 1, 1], [], []>} : vector<4x64xf32>, vector<64x128xf32>, vector<4x128xf32> -> vector<4x128xf32>
    %91 = arith.addf %59, %90 : vector<4x128xf32>
    %92 = vector.extract_strided_slice %19 {offsets = [80, 0], sizes = [4, 64], strides = [1, 1]} : vector<256x64xf32> to vector<4x64xf32>
    %c1280 = arith.constant 1280 : index
    %c0_58 = arith.constant 0 : index
    %93 = vector.load %arg7[%c1280, %c0_58] : memref<4096x128xf32, #tpu.memory_space<vmem>>, vector<64x128xf32>
    %cst_59 = arith.constant dense<0.000000e+00> : vector<4x128xf32>
    %94 = tpu.matmul %92, %93, %cst_59 {dimension_numbers = #tpu.dot_dimension_numbers<[1], [0], [0], [1], [0, 0, 1, 1], [], []>} : vector<4x64xf32>, vector<64x128xf32>, vector<4x128xf32> -> vector<4x128xf32>
    %95 = arith.addf %63, %94 : vector<4x128xf32>
    %96 = vector.extract_strided_slice %19 {offsets = [84, 0], sizes = [4, 64], strides = [1, 1]} : vector<256x64xf32> to vector<4x64xf32>
    %c1344 = arith.constant 1344 : index
    %c0_60 = arith.constant 0 : index
    %97 = vector.load %arg7[%c1344, %c0_60] : memref<4096x128xf32, #tpu.memory_space<vmem>>, vector<64x128xf32>
    %cst_61 = arith.constant dense<0.000000e+00> : vector<4x128xf32>
    %98 = tpu.matmul %96, %97, %cst_61 {dimension_numbers = #tpu.dot_dimension_numbers<[1], [0], [0], [1], [0, 0, 1, 1], [], []>} : vector<4x64xf32>, vector<64x128xf32>, vector<4x128xf32> -> vector<4x128xf32>
    %99 = arith.addf %67, %98 : vector<4x128xf32>
    %100 = vector.extract_strided_slice %19 {offsets = [88, 0], sizes = [4, 64], strides = [1, 1]} : vector<256x64xf32> to vector<4x64xf32>
    %c1408 = arith.constant 1408 : index
    %c0_62 = arith.constant 0 : index
    %101 = vector.load %arg7[%c1408, %c0_62] : memref<4096x128xf32, #tpu.memory_space<vmem>>, vector<64x128xf32>
    %cst_63 = arith.constant dense<0.000000e+00> : vector<4x128xf32>
    %102 = tpu.matmul %100, %101, %cst_63 {dimension_numbers = #tpu.dot_dimension_numbers<[1], [0], [0], [1], [0, 0, 1, 1], [], []>} : vector<4x64xf32>, vector<64x128xf32>, vector<4x128xf32> -> vector<4x128xf32>
    %103 = arith.addf %71, %102 : vector<4x128xf32>
    %104 = vector.extract_strided_slice %19 {offsets = [92, 0], sizes = [4, 64], strides = [1, 1]} : vector<256x64xf32> to vector<4x64xf32>
    %c1472 = arith.constant 1472 : index
    %c0_64 = arith.constant 0 : index
    %105 = vector.load %arg7[%c1472, %c0_64] : memref<4096x128xf32, #tpu.memory_space<vmem>>, vector<64x128xf32>
    %cst_65 = arith.constant dense<0.000000e+00> : vector<4x128xf32>
    %106 = tpu.matmul %104, %105, %cst_65 {dimension_numbers = #tpu.dot_dimension_numbers<[1], [0], [0], [1], [0, 0, 1, 1], [], []>} : vector<4x64xf32>, vector<64x128xf32>, vector<4x128xf32> -> vector<4x128xf32>
    %107 = arith.addf %75, %106 : vector<4x128xf32>
    %108 = vector.extract_strided_slice %19 {offsets = [96, 0], sizes = [4, 64], strides = [1, 1]} : vector<256x64xf32> to vector<4x64xf32>
    %c1536 = arith.constant 1536 : index
    %c0_66 = arith.constant 0 : index
    %109 = vector.load %arg7[%c1536, %c0_66] : memref<4096x128xf32, #tpu.memory_space<vmem>>, vector<64x128xf32>
    %cst_67 = arith.constant dense<0.000000e+00> : vector<4x128xf32>
    %110 = tpu.matmul %108, %109, %cst_67 {dimension_numbers = #tpu.dot_dimension_numbers<[1], [0], [0], [1], [0, 0, 1, 1], [], []>} : vector<4x64xf32>, vector<64x128xf32>, vector<4x128xf32> -> vector<4x128xf32>
    %111 = arith.addf %79, %110 : vector<4x128xf32>
    %112 = vector.extract_strided_slice %19 {offsets = [100, 0], sizes = [4, 64], strides = [1, 1]} : vector<256x64xf32> to vector<4x64xf32>
    %c1600 = arith.constant 1600 : index
    %c0_68 = arith.constant 0 : index
    %113 = vector.load %arg7[%c1600, %c0_68] : memref<4096x128xf32, #tpu.memory_space<vmem>>, vector<64x128xf32>
    %cst_69 = arith.constant dense<0.000000e+00> : vector<4x128xf32>
    %114 = tpu.matmul %112, %113, %cst_69 {dimension_numbers = #tpu.dot_dimension_numbers<[1], [0], [0], [1], [0, 0, 1, 1], [], []>} : vector<4x64xf32>, vector<64x128xf32>, vector<4x128xf32> -> vector<4x128xf32>
    %115 = arith.addf %83, %114 : vector<4x128xf32>
    %116 = vector.extract_strided_slice %19 {offsets = [104, 0], sizes = [4, 64], strides = [1, 1]} : vector<256x64xf32> to vector<4x64xf32>
    %c1664 = arith.constant 1664 : index
    %c0_70 = arith.constant 0 : index
    %117 = vector.load %arg7[%c1664, %c0_70] : memref<4096x128xf32, #tpu.memory_space<vmem>>, vector<64x128xf32>
    %cst_71 = arith.constant dense<0.000000e+00> : vector<4x128xf32>
    %118 = tpu.matmul %116, %117, %cst_71 {dimension_numbers = #tpu.dot_dimension_numbers<[1], [0], [0], [1], [0, 0, 1, 1], [], []>} : vector<4x64xf32>, vector<64x128xf32>, vector<4x128xf32> -> vector<4x128xf32>
    %119 = arith.addf %87, %118 : vector<4x128xf32>
    %120 = vector.extract_strided_slice %19 {offsets = [108, 0], sizes = [4, 64], strides = [1, 1]} : vector<256x64xf32> to vector<4x64xf32>
    %c1728 = arith.constant 1728 : index
    %c0_72 = arith.constant 0 : index
    %121 = vector.load %arg7[%c1728, %c0_72] : memref<4096x128xf32, #tpu.memory_space<vmem>>, vector<64x128xf32>
    %cst_73 = arith.constant dense<0.000000e+00> : vector<4x128xf32>
    %122 = tpu.matmul %120, %121, %cst_73 {dimension_numbers = #tpu.dot_dimension_numbers<[1], [0], [0], [1], [0, 0, 1, 1], [], []>} : vector<4x64xf32>, vector<64x128xf32>, vector<4x128xf32> -> vector<4x128xf32>
    %123 = arith.addf %91, %122 : vector<4x128xf32>
    %124 = vector.extract_strided_slice %19 {offsets = [112, 0], sizes = [4, 64], strides = [1, 1]} : vector<256x64xf32> to vector<4x64xf32>
    %c1792 = arith.constant 1792 : index
    %c0_74 = arith.constant 0 : index
    %125 = vector.load %arg7[%c1792, %c0_74] : memref<4096x128xf32, #tpu.memory_space<vmem>>, vector<64x128xf32>
    %cst_75 = arith.constant dense<0.000000e+00> : vector<4x128xf32>
    %126 = tpu.matmul %124, %125, %cst_75 {dimension_numbers = #tpu.dot_dimension_numbers<[1], [0], [0], [1], [0, 0, 1, 1], [], []>} : vector<4x64xf32>, vector<64x128xf32>, vector<4x128xf32> -> vector<4x128xf32>
    %127 = arith.addf %95, %126 : vector<4x128xf32>
    %128 = vector.extract_strided_slice %19 {offsets = [116, 0], sizes = [4, 64], strides = [1, 1]} : vector<256x64xf32> to vector<4x64xf32>
    %c1856 = arith.constant 1856 : index
    %c0_76 = arith.constant 0 : index
    %129 = vector.load %arg7[%c1856, %c0_76] : memref<4096x128xf32, #tpu.memory_space<vmem>>, vector<64x128xf32>
    %cst_77 = arith.constant dense<0.000000e+00> : vector<4x128xf32>
    %130 = tpu.matmul %128, %129, %cst_77 {dimension_numbers = #tpu.dot_dimension_numbers<[1], [0], [0], [1], [0, 0, 1, 1], [], []>} : vector<4x64xf32>, vector<64x128xf32>, vector<4x128xf32> -> vector<4x128xf32>
    %131 = arith.addf %99, %130 : vector<4x128xf32>
    %132 = vector.extract_strided_slice %19 {offsets = [120, 0], sizes = [4, 64], strides = [1, 1]} : vector<256x64xf32> to vector<4x64xf32>
    %c1920 = arith.constant 1920 : index
    %c0_78 = arith.constant 0 : index
    %133 = vector.load %arg7[%c1920, %c0_78] : memref<4096x128xf32, #tpu.memory_space<vmem>>, vector<64x128xf32>
    %cst_79 = arith.constant dense<0.000000e+00> : vector<4x128xf32>
    %134 = tpu.matmul %132, %133, %cst_79 {dimension_numbers = #tpu.dot_dimension_numbers<[1], [0], [0], [1], [0, 0, 1, 1], [], []>} : vector<4x64xf32>, vector<64x128xf32>, vector<4x128xf32> -> vector<4x128xf32>
    %135 = arith.addf %103, %134 : vector<4x128xf32>
    %136 = vector.extract_strided_slice %19 {offsets = [124, 0], sizes = [4, 64], strides = [1, 1]} : vector<256x64xf32> to vector<4x64xf32>
    %c1984 = arith.constant 1984 : index
    %c0_80 = arith.constant 0 : index
    %137 = vector.load %arg7[%c1984, %c0_80] : memref<4096x128xf32, #tpu.memory_space<vmem>>, vector<64x128xf32>
    %cst_81 = arith.constant dense<0.000000e+00> : vector<4x128xf32>
    %138 = tpu.matmul %136, %137, %cst_81 {dimension_numbers = #tpu.dot_dimension_numbers<[1], [0], [0], [1], [0, 0, 1, 1], [], []>} : vector<4x64xf32>, vector<64x128xf32>, vector<4x128xf32> -> vector<4x128xf32>
    %139 = arith.addf %107, %138 : vector<4x128xf32>
    %140 = vector.extract_strided_slice %19 {offsets = [128, 0], sizes = [4, 64], strides = [1, 1]} : vector<256x64xf32> to vector<4x64xf32>
    %c2048 = arith.constant 2048 : index
    %c0_82 = arith.constant 0 : index
    %141 = vector.load %arg7[%c2048, %c0_82] : memref<4096x128xf32, #tpu.memory_space<vmem>>, vector<64x128xf32>
    %cst_83 = arith.constant dense<0.000000e+00> : vector<4x128xf32>
    %142 = tpu.matmul %140, %141, %cst_83 {dimension_numbers = #tpu.dot_dimension_numbers<[1], [0], [0], [1], [0, 0, 1, 1], [], []>} : vector<4x64xf32>, vector<64x128xf32>, vector<4x128xf32> -> vector<4x128xf32>
    %143 = arith.addf %111, %142 : vector<4x128xf32>
    %144 = vector.extract_strided_slice %19 {offsets = [132, 0], sizes = [4, 64], strides = [1, 1]} : vector<256x64xf32> to vector<4x64xf32>
    %c2112 = arith.constant 2112 : index
    %c0_84 = arith.constant 0 : index
    %145 = vector.load %arg7[%c2112, %c0_84] : memref<4096x128xf32, #tpu.memory_space<vmem>>, vector<64x128xf32>
    %cst_85 = arith.constant dense<0.000000e+00> : vector<4x128xf32>
    %146 = tpu.matmul %144, %145, %cst_85 {dimension_numbers = #tpu.dot_dimension_numbers<[1], [0], [0], [1], [0, 0, 1, 1], [], []>} : vector<4x64xf32>, vector<64x128xf32>, vector<4x128xf32> -> vector<4x128xf32>
    %147 = arith.addf %115, %146 : vector<4x128xf32>
    %148 = vector.extract_strided_slice %19 {offsets = [136, 0], sizes = [4, 64], strides = [1, 1]} : vector<256x64xf32> to vector<4x64xf32>
    %c2176 = arith.constant 2176 : index
    %c0_86 = arith.constant 0 : index
    %149 = vector.load %arg7[%c2176, %c0_86] : memref<4096x128xf32, #tpu.memory_space<vmem>>, vector<64x128xf32>
    %cst_87 = arith.constant dense<0.000000e+00> : vector<4x128xf32>
    %150 = tpu.matmul %148, %149, %cst_87 {dimension_numbers = #tpu.dot_dimension_numbers<[1], [0], [0], [1], [0, 0, 1, 1], [], []>} : vector<4x64xf32>, vector<64x128xf32>, vector<4x128xf32> -> vector<4x128xf32>
    %151 = arith.addf %119, %150 : vector<4x128xf32>
    %152 = vector.extract_strided_slice %19 {offsets = [140, 0], sizes = [4, 64], strides = [1, 1]} : vector<256x64xf32> to vector<4x64xf32>
    %c2240 = arith.constant 2240 : index
    %c0_88 = arith.constant 0 : index
    %153 = vector.load %arg7[%c2240, %c0_88] : memref<4096x128xf32, #tpu.memory_space<vmem>>, vector<64x128xf32>
    %cst_89 = arith.constant dense<0.000000e+00> : vector<4x128xf32>
    %154 = tpu.matmul %152, %153, %cst_89 {dimension_numbers = #tpu.dot_dimension_numbers<[1], [0], [0], [1], [0, 0, 1, 1], [], []>} : vector<4x64xf32>, vector<64x128xf32>, vector<4x128xf32> -> vector<4x128xf32>
    %155 = arith.addf %123, %154 : vector<4x128xf32>
    %156 = vector.extract_strided_slice %19 {offsets = [144, 0], sizes = [4, 64], strides = [1, 1]} : vector<256x64xf32> to vector<4x64xf32>
    %c2304 = arith.constant 2304 : index
    %c0_90 = arith.constant 0 : index
    %157 = vector.load %arg7[%c2304, %c0_90] : memref<4096x128xf32, #tpu.memory_space<vmem>>, vector<64x128xf32>
    %cst_91 = arith.constant dense<0.000000e+00> : vector<4x128xf32>
    %158 = tpu.matmul %156, %157, %cst_91 {dimension_numbers = #tpu.dot_dimension_numbers<[1], [0], [0], [1], [0, 0, 1, 1], [], []>} : vector<4x64xf32>, vector<64x128xf32>, vector<4x128xf32> -> vector<4x128xf32>
    %159 = arith.addf %127, %158 : vector<4x128xf32>
    %160 = vector.extract_strided_slice %19 {offsets = [148, 0], sizes = [4, 64], strides = [1, 1]} : vector<256x64xf32> to vector<4x64xf32>
    %c2368 = arith.constant 2368 : index
    %c0_92 = arith.constant 0 : index
    %161 = vector.load %arg7[%c2368, %c0_92] : memref<4096x128xf32, #tpu.memory_space<vmem>>, vector<64x128xf32>
    %cst_93 = arith.constant dense<0.000000e+00> : vector<4x128xf32>
    %162 = tpu.matmul %160, %161, %cst_93 {dimension_numbers = #tpu.dot_dimension_numbers<[1], [0], [0], [1], [0, 0, 1, 1], [], []>} : vector<4x64xf32>, vector<64x128xf32>, vector<4x128xf32> -> vector<4x128xf32>
    %163 = arith.addf %131, %162 : vector<4x128xf32>
    %164 = vector.extract_strided_slice %19 {offsets = [152, 0], sizes = [4, 64], strides = [1, 1]} : vector<256x64xf32> to vector<4x64xf32>
    %c2432 = arith.constant 2432 : index
    %c0_94 = arith.constant 0 : index
    %165 = vector.load %arg7[%c2432, %c0_94] : memref<4096x128xf32, #tpu.memory_space<vmem>>, vector<64x128xf32>
    %cst_95 = arith.constant dense<0.000000e+00> : vector<4x128xf32>
    %166 = tpu.matmul %164, %165, %cst_95 {dimension_numbers = #tpu.dot_dimension_numbers<[1], [0], [0], [1], [0, 0, 1, 1], [], []>} : vector<4x64xf32>, vector<64x128xf32>, vector<4x128xf32> -> vector<4x128xf32>
    %167 = arith.addf %135, %166 : vector<4x128xf32>
    %168 = vector.extract_strided_slice %19 {offsets = [156, 0], sizes = [4, 64], strides = [1, 1]} : vector<256x64xf32> to vector<4x64xf32>
    %c2496 = arith.constant 2496 : index
    %c0_96 = arith.constant 0 : index
    %169 = vector.load %arg7[%c2496, %c0_96] : memref<4096x128xf32, #tpu.memory_space<vmem>>, vector<64x128xf32>
    %cst_97 = arith.constant dense<0.000000e+00> : vector<4x128xf32>
    %170 = tpu.matmul %168, %169, %cst_97 {dimension_numbers = #tpu.dot_dimension_numbers<[1], [0], [0], [1], [0, 0, 1, 1], [], []>} : vector<4x64xf32>, vector<64x128xf32>, vector<4x128xf32> -> vector<4x128xf32>
    %171 = arith.addf %139, %170 : vector<4x128xf32>
    %172 = vector.extract_strided_slice %19 {offsets = [160, 0], sizes = [4, 64], strides = [1, 1]} : vector<256x64xf32> to vector<4x64xf32>
    %c2560 = arith.constant 2560 : index
    %c0_98 = arith.constant 0 : index
    %173 = vector.load %arg7[%c2560, %c0_98] : memref<4096x128xf32, #tpu.memory_space<vmem>>, vector<64x128xf32>
    %cst_99 = arith.constant dense<0.000000e+00> : vector<4x128xf32>
    %174 = tpu.matmul %172, %173, %cst_99 {dimension_numbers = #tpu.dot_dimension_numbers<[1], [0], [0], [1], [0, 0, 1, 1], [], []>} : vector<4x64xf32>, vector<64x128xf32>, vector<4x128xf32> -> vector<4x128xf32>
    %175 = arith.addf %143, %174 : vector<4x128xf32>
    %176 = vector.extract_strided_slice %19 {offsets = [164, 0], sizes = [4, 64], strides = [1, 1]} : vector<256x64xf32> to vector<4x64xf32>
    %c2624 = arith.constant 2624 : index
    %c0_100 = arith.constant 0 : index
    %177 = vector.load %arg7[%c2624, %c0_100] : memref<4096x128xf32, #tpu.memory_space<vmem>>, vector<64x128xf32>
    %cst_101 = arith.constant dense<0.000000e+00> : vector<4x128xf32>
    %178 = tpu.matmul %176, %177, %cst_101 {dimension_numbers = #tpu.dot_dimension_numbers<[1], [0], [0], [1], [0, 0, 1, 1], [], []>} : vector<4x64xf32>, vector<64x128xf32>, vector<4x128xf32> -> vector<4x128xf32>
    %179 = arith.addf %147, %178 : vector<4x128xf32>
    %180 = vector.extract_strided_slice %19 {offsets = [168, 0], sizes = [4, 64], strides = [1, 1]} : vector<256x64xf32> to vector<4x64xf32>
    %c2688 = arith.constant 2688 : index
    %c0_102 = arith.constant 0 : index
    %181 = vector.load %arg7[%c2688, %c0_102] : memref<4096x128xf32, #tpu.memory_space<vmem>>, vector<64x128xf32>
    %cst_103 = arith.constant dense<0.000000e+00> : vector<4x128xf32>
    %182 = tpu.matmul %180, %181, %cst_103 {dimension_numbers = #tpu.dot_dimension_numbers<[1], [0], [0], [1], [0, 0, 1, 1], [], []>} : vector<4x64xf32>, vector<64x128xf32>, vector<4x128xf32> -> vector<4x128xf32>
    %183 = arith.addf %151, %182 : vector<4x128xf32>
    %184 = vector.extract_strided_slice %19 {offsets = [172, 0], sizes = [4, 64], strides = [1, 1]} : vector<256x64xf32> to vector<4x64xf32>
    %c2752 = arith.constant 2752 : index
    %c0_104 = arith.constant 0 : index
    %185 = vector.load %arg7[%c2752, %c0_104] : memref<4096x128xf32, #tpu.memory_space<vmem>>, vector<64x128xf32>
    %cst_105 = arith.constant dense<0.000000e+00> : vector<4x128xf32>
    %186 = tpu.matmul %184, %185, %cst_105 {dimension_numbers = #tpu.dot_dimension_numbers<[1], [0], [0], [1], [0, 0, 1, 1], [], []>} : vector<4x64xf32>, vector<64x128xf32>, vector<4x128xf32> -> vector<4x128xf32>
    %187 = arith.addf %155, %186 : vector<4x128xf32>
    %188 = vector.extract_strided_slice %19 {offsets = [176, 0], sizes = [4, 64], strides = [1, 1]} : vector<256x64xf32> to vector<4x64xf32>
    %c2816 = arith.constant 2816 : index
    %c0_106 = arith.constant 0 : index
    %189 = vector.load %arg7[%c2816, %c0_106] : memref<4096x128xf32, #tpu.memory_space<vmem>>, vector<64x128xf32>
    %cst_107 = arith.constant dense<0.000000e+00> : vector<4x128xf32>
    %190 = tpu.matmul %188, %189, %cst_107 {dimension_numbers = #tpu.dot_dimension_numbers<[1], [0], [0], [1], [0, 0, 1, 1], [], []>} : vector<4x64xf32>, vector<64x128xf32>, vector<4x128xf32> -> vector<4x128xf32>
    %191 = arith.addf %159, %190 : vector<4x128xf32>
    %192 = vector.extract_strided_slice %19 {offsets = [180, 0], sizes = [4, 64], strides = [1, 1]} : vector<256x64xf32> to vector<4x64xf32>
    %c2880 = arith.constant 2880 : index
    %c0_108 = arith.constant 0 : index
    %193 = vector.load %arg7[%c2880, %c0_108] : memref<4096x128xf32, #tpu.memory_space<vmem>>, vector<64x128xf32>
    %cst_109 = arith.constant dense<0.000000e+00> : vector<4x128xf32>
    %194 = tpu.matmul %192, %193, %cst_109 {dimension_numbers = #tpu.dot_dimension_numbers<[1], [0], [0], [1], [0, 0, 1, 1], [], []>} : vector<4x64xf32>, vector<64x128xf32>, vector<4x128xf32> -> vector<4x128xf32>
    %195 = arith.addf %163, %194 : vector<4x128xf32>
    %196 = vector.extract_strided_slice %19 {offsets = [184, 0], sizes = [4, 64], strides = [1, 1]} : vector<256x64xf32> to vector<4x64xf32>
    %c2944 = arith.constant 2944 : index
    %c0_110 = arith.constant 0 : index
    %197 = vector.load %arg7[%c2944, %c0_110] : memref<4096x128xf32, #tpu.memory_space<vmem>>, vector<64x128xf32>
    %cst_111 = arith.constant dense<0.000000e+00> : vector<4x128xf32>
    %198 = tpu.matmul %196, %197, %cst_111 {dimension_numbers = #tpu.dot_dimension_numbers<[1], [0], [0], [1], [0, 0, 1, 1], [], []>} : vector<4x64xf32>, vector<64x128xf32>, vector<4x128xf32> -> vector<4x128xf32>
    %199 = arith.addf %167, %198 : vector<4x128xf32>
    %200 = vector.extract_strided_slice %19 {offsets = [188, 0], sizes = [4, 64], strides = [1, 1]} : vector<256x64xf32> to vector<4x64xf32>
    %c3008 = arith.constant 3008 : index
    %c0_112 = arith.constant 0 : index
    %201 = vector.load %arg7[%c3008, %c0_112] : memref<4096x128xf32, #tpu.memory_space<vmem>>, vector<64x128xf32>
    %cst_113 = arith.constant dense<0.000000e+00> : vector<4x128xf32>
    %202 = tpu.matmul %200, %201, %cst_113 {dimension_numbers = #tpu.dot_dimension_numbers<[1], [0], [0], [1], [0, 0, 1, 1], [], []>} : vector<4x64xf32>, vector<64x128xf32>, vector<4x128xf32> -> vector<4x128xf32>
    %203 = arith.addf %171, %202 : vector<4x128xf32>
    %204 = vector.extract_strided_slice %19 {offsets = [192, 0], sizes = [4, 64], strides = [1, 1]} : vector<256x64xf32> to vector<4x64xf32>
    %c3072 = arith.constant 3072 : index
    %c0_114 = arith.constant 0 : index
    %205 = vector.load %arg7[%c3072, %c0_114] : memref<4096x128xf32, #tpu.memory_space<vmem>>, vector<64x128xf32>
    %cst_115 = arith.constant dense<0.000000e+00> : vector<4x128xf32>
    %206 = tpu.matmul %204, %205, %cst_115 {dimension_numbers = #tpu.dot_dimension_numbers<[1], [0], [0], [1], [0, 0, 1, 1], [], []>} : vector<4x64xf32>, vector<64x128xf32>, vector<4x128xf32> -> vector<4x128xf32>
    %207 = arith.addf %175, %206 : vector<4x128xf32>
    %208 = vector.extract_strided_slice %19 {offsets = [196, 0], sizes = [4, 64], strides = [1, 1]} : vector<256x64xf32> to vector<4x64xf32>
    %c3136 = arith.constant 3136 : index
    %c0_116 = arith.constant 0 : index
    %209 = vector.load %arg7[%c3136, %c0_116] : memref<4096x128xf32, #tpu.memory_space<vmem>>, vector<64x128xf32>
    %cst_117 = arith.constant dense<0.000000e+00> : vector<4x128xf32>
    %210 = tpu.matmul %208, %209, %cst_117 {dimension_numbers = #tpu.dot_dimension_numbers<[1], [0], [0], [1], [0, 0, 1, 1], [], []>} : vector<4x64xf32>, vector<64x128xf32>, vector<4x128xf32> -> vector<4x128xf32>
    %211 = arith.addf %179, %210 : vector<4x128xf32>
    %212 = vector.extract_strided_slice %19 {offsets = [200, 0], sizes = [4, 64], strides = [1, 1]} : vector<256x64xf32> to vector<4x64xf32>
    %c3200 = arith.constant 3200 : index
    %c0_118 = arith.constant 0 : index
    %213 = vector.load %arg7[%c3200, %c0_118] : memref<4096x128xf32, #tpu.memory_space<vmem>>, vector<64x128xf32>
    %cst_119 = arith.constant dense<0.000000e+00> : vector<4x128xf32>
    %214 = tpu.matmul %212, %213, %cst_119 {dimension_numbers = #tpu.dot_dimension_numbers<[1], [0], [0], [1], [0, 0, 1, 1], [], []>} : vector<4x64xf32>, vector<64x128xf32>, vector<4x128xf32> -> vector<4x128xf32>
    %215 = arith.addf %183, %214 : vector<4x128xf32>
    %216 = vector.extract_strided_slice %19 {offsets = [204, 0], sizes = [4, 64], strides = [1, 1]} : vector<256x64xf32> to vector<4x64xf32>
    %c3264 = arith.constant 3264 : index
    %c0_120 = arith.constant 0 : index
    %217 = vector.load %arg7[%c3264, %c0_120] : memref<4096x128xf32, #tpu.memory_space<vmem>>, vector<64x128xf32>
    %cst_121 = arith.constant dense<0.000000e+00> : vector<4x128xf32>
    %218 = tpu.matmul %216, %217, %cst_121 {dimension_numbers = #tpu.dot_dimension_numbers<[1], [0], [0], [1], [0, 0, 1, 1], [], []>} : vector<4x64xf32>, vector<64x128xf32>, vector<4x128xf32> -> vector<4x128xf32>
    %219 = arith.addf %187, %218 : vector<4x128xf32>
    %220 = vector.extract_strided_slice %19 {offsets = [208, 0], sizes = [4, 64], strides = [1, 1]} : vector<256x64xf32> to vector<4x64xf32>
    %c3328 = arith.constant 3328 : index
    %c0_122 = arith.constant 0 : index
    %221 = vector.load %arg7[%c3328, %c0_122] : memref<4096x128xf32, #tpu.memory_space<vmem>>, vector<64x128xf32>
    %cst_123 = arith.constant dense<0.000000e+00> : vector<4x128xf32>
    %222 = tpu.matmul %220, %221, %cst_123 {dimension_numbers = #tpu.dot_dimension_numbers<[1], [0], [0], [1], [0, 0, 1, 1], [], []>} : vector<4x64xf32>, vector<64x128xf32>, vector<4x128xf32> -> vector<4x128xf32>
    %223 = arith.addf %191, %222 : vector<4x128xf32>
    %224 = vector.extract_strided_slice %19 {offsets = [212, 0], sizes = [4, 64], strides = [1, 1]} : vector<256x64xf32> to vector<4x64xf32>
    %c3392 = arith.constant 3392 : index
    %c0_124 = arith.constant 0 : index
    %225 = vector.load %arg7[%c3392, %c0_124] : memref<4096x128xf32, #tpu.memory_space<vmem>>, vector<64x128xf32>
    %cst_125 = arith.constant dense<0.000000e+00> : vector<4x128xf32>
    %226 = tpu.matmul %224, %225, %cst_125 {dimension_numbers = #tpu.dot_dimension_numbers<[1], [0], [0], [1], [0, 0, 1, 1], [], []>} : vector<4x64xf32>, vector<64x128xf32>, vector<4x128xf32> -> vector<4x128xf32>
    %227 = arith.addf %195, %226 : vector<4x128xf32>
    %228 = vector.extract_strided_slice %19 {offsets = [216, 0], sizes = [4, 64], strides = [1, 1]} : vector<256x64xf32> to vector<4x64xf32>
    %c3456 = arith.constant 3456 : index
    %c0_126 = arith.constant 0 : index
    %229 = vector.load %arg7[%c3456, %c0_126] : memref<4096x128xf32, #tpu.memory_space<vmem>>, vector<64x128xf32>
    %cst_127 = arith.constant dense<0.000000e+00> : vector<4x128xf32>
    %230 = tpu.matmul %228, %229, %cst_127 {dimension_numbers = #tpu.dot_dimension_numbers<[1], [0], [0], [1], [0, 0, 1, 1], [], []>} : vector<4x64xf32>, vector<64x128xf32>, vector<4x128xf32> -> vector<4x128xf32>
    %231 = arith.addf %199, %230 : vector<4x128xf32>
    %232 = vector.extract_strided_slice %19 {offsets = [220, 0], sizes = [4, 64], strides = [1, 1]} : vector<256x64xf32> to vector<4x64xf32>
    %c3520 = arith.constant 3520 : index
    %c0_128 = arith.constant 0 : index
    %233 = vector.load %arg7[%c3520, %c0_128] : memref<4096x128xf32, #tpu.memory_space<vmem>>, vector<64x128xf32>
    %cst_129 = arith.constant dense<0.000000e+00> : vector<4x128xf32>
    %234 = tpu.matmul %232, %233, %cst_129 {dimension_numbers = #tpu.dot_dimension_numbers<[1], [0], [0], [1], [0, 0, 1, 1], [], []>} : vector<4x64xf32>, vector<64x128xf32>, vector<4x128xf32> -> vector<4x128xf32>
    %235 = arith.addf %203, %234 : vector<4x128xf32>
    %236 = vector.extract_strided_slice %19 {offsets = [224, 0], sizes = [4, 64], strides = [1, 1]} : vector<256x64xf32> to vector<4x64xf32>
    %c3584 = arith.constant 3584 : index
    %c0_130 = arith.constant 0 : index
    %237 = vector.load %arg7[%c3584, %c0_130] : memref<4096x128xf32, #tpu.memory_space<vmem>>, vector<64x128xf32>
    %cst_131 = arith.constant dense<0.000000e+00> : vector<4x128xf32>
    %238 = tpu.matmul %236, %237, %cst_131 {dimension_numbers = #tpu.dot_dimension_numbers<[1], [0], [0], [1], [0, 0, 1, 1], [], []>} : vector<4x64xf32>, vector<64x128xf32>, vector<4x128xf32> -> vector<4x128xf32>
    %239 = arith.addf %207, %238 : vector<4x128xf32>
    %240 = vector.extract_strided_slice %19 {offsets = [228, 0], sizes = [4, 64], strides = [1, 1]} : vector<256x64xf32> to vector<4x64xf32>
    %c3648 = arith.constant 3648 : index
    %c0_132 = arith.constant 0 : index
    %241 = vector.load %arg7[%c3648, %c0_132] : memref<4096x128xf32, #tpu.memory_space<vmem>>, vector<64x128xf32>
    %cst_133 = arith.constant dense<0.000000e+00> : vector<4x128xf32>
    %242 = tpu.matmul %240, %241, %cst_133 {dimension_numbers = #tpu.dot_dimension_numbers<[1], [0], [0], [1], [0, 0, 1, 1], [], []>} : vector<4x64xf32>, vector<64x128xf32>, vector<4x128xf32> -> vector<4x128xf32>
    %243 = arith.addf %211, %242 : vector<4x128xf32>
    %244 = vector.extract_strided_slice %19 {offsets = [232, 0], sizes = [4, 64], strides = [1, 1]} : vector<256x64xf32> to vector<4x64xf32>
    %c3712 = arith.constant 3712 : index
    %c0_134 = arith.constant 0 : index
    %245 = vector.load %arg7[%c3712, %c0_134] : memref<4096x128xf32, #tpu.memory_space<vmem>>, vector<64x128xf32>
    %cst_135 = arith.constant dense<0.000000e+00> : vector<4x128xf32>
    %246 = tpu.matmul %244, %245, %cst_135 {dimension_numbers = #tpu.dot_dimension_numbers<[1], [0], [0], [1], [0, 0, 1, 1], [], []>} : vector<4x64xf32>, vector<64x128xf32>, vector<4x128xf32> -> vector<4x128xf32>
    %247 = arith.addf %215, %246 : vector<4x128xf32>
    %248 = vector.extract_strided_slice %19 {offsets = [236, 0], sizes = [4, 64], strides = [1, 1]} : vector<256x64xf32> to vector<4x64xf32>
    %c3776 = arith.constant 3776 : index
    %c0_136 = arith.constant 0 : index
    %249 = vector.load %arg7[%c3776, %c0_136] : memref<4096x128xf32, #tpu.memory_space<vmem>>, vector<64x128xf32>
    %cst_137 = arith.constant dense<0.000000e+00> : vector<4x128xf32>
    %250 = tpu.matmul %248, %249, %cst_137 {dimension_numbers = #tpu.dot_dimension_numbers<[1], [0], [0], [1], [0, 0, 1, 1], [], []>} : vector<4x64xf32>, vector<64x128xf32>, vector<4x128xf32> -> vector<4x128xf32>
    %251 = arith.addf %219, %250 : vector<4x128xf32>
    %252 = vector.extract_strided_slice %19 {offsets = [240, 0], sizes = [4, 64], strides = [1, 1]} : vector<256x64xf32> to vector<4x64xf32>
    %c3840 = arith.constant 3840 : index
    %c0_138 = arith.constant 0 : index
    %253 = vector.load %arg7[%c3840, %c0_138] : memref<4096x128xf32, #tpu.memory_space<vmem>>, vector<64x128xf32>
    %cst_139 = arith.constant dense<0.000000e+00> : vector<4x128xf32>
    %254 = tpu.matmul %252, %253, %cst_139 {dimension_numbers = #tpu.dot_dimension_numbers<[1], [0], [0], [1], [0, 0, 1, 1], [], []>} : vector<4x64xf32>, vector<64x128xf32>, vector<4x128xf32> -> vector<4x128xf32>
    %255 = arith.addf %223, %254 : vector<4x128xf32>
    %256 = vector.extract_strided_slice %19 {offsets = [244, 0], sizes = [4, 64], strides = [1, 1]} : vector<256x64xf32> to vector<4x64xf32>
    %c3904 = arith.constant 3904 : index
    %c0_140 = arith.constant 0 : index
    %257 = vector.load %arg7[%c3904, %c0_140] : memref<4096x128xf32, #tpu.memory_space<vmem>>, vector<64x128xf32>
    %cst_141 = arith.constant dense<0.000000e+00> : vector<4x128xf32>
    %258 = tpu.matmul %256, %257, %cst_141 {dimension_numbers = #tpu.dot_dimension_numbers<[1], [0], [0], [1], [0, 0, 1, 1], [], []>} : vector<4x64xf32>, vector<64x128xf32>, vector<4x128xf32> -> vector<4x128xf32>
    %259 = arith.addf %227, %258 : vector<4x128xf32>
    %260 = vector.extract_strided_slice %19 {offsets = [248, 0], sizes = [4, 64], strides = [1, 1]} : vector<256x64xf32> to vector<4x64xf32>
    %c3968 = arith.constant 3968 : index
    %c0_142 = arith.constant 0 : index
    %261 = vector.load %arg7[%c3968, %c0_142] : memref<4096x128xf32, #tpu.memory_space<vmem>>, vector<64x128xf32>
    %cst_143 = arith.constant dense<0.000000e+00> : vector<4x128xf32>
    %262 = tpu.matmul %260, %261, %cst_143 {dimension_numbers = #tpu.dot_dimension_numbers<[1], [0], [0], [1], [0, 0, 1, 1], [], []>} : vector<4x64xf32>, vector<64x128xf32>, vector<4x128xf32> -> vector<4x128xf32>
    %263 = arith.addf %231, %262 : vector<4x128xf32>
    %264 = vector.extract_strided_slice %19 {offsets = [252, 0], sizes = [4, 64], strides = [1, 1]} : vector<256x64xf32> to vector<4x64xf32>
    %c4032 = arith.constant 4032 : index
    %c0_144 = arith.constant 0 : index
    %265 = vector.load %arg7[%c4032, %c0_144] : memref<4096x128xf32, #tpu.memory_space<vmem>>, vector<64x128xf32>
    %cst_145 = arith.constant dense<0.000000e+00> : vector<4x128xf32>
    %266 = tpu.matmul %264, %265, %cst_145 {dimension_numbers = #tpu.dot_dimension_numbers<[1], [0], [0], [1], [0, 0, 1, 1], [], []>} : vector<4x64xf32>, vector<64x128xf32>, vector<4x128xf32> -> vector<4x128xf32>
    %267 = arith.addf %235, %266 : vector<4x128xf32>
    %268 = arith.addf %239, %243 : vector<4x128xf32>
    %269 = arith.addf %247, %251 : vector<4x128xf32>
    %270 = arith.addf %255, %259 : vector<4x128xf32>
    %271 = arith.addf %263, %267 : vector<4x128xf32>
    %272 = arith.addf %268, %269 : vector<4x128xf32>
    %273 = arith.addf %270, %271 : vector<4x128xf32>
    %274 = arith.addf %272, %273 : vector<4x128xf32>
    %c0_146 = arith.constant 0 : index
    %c0_147 = arith.constant 0 : index
    %275 = vector.load %arg8[%c0_146, %c0_147] : memref<1x128xf32, #tpu.memory_space<vmem>>, vector<1x128xf32>
    %276 = vector.broadcast %275 : vector<1x128xf32> to vector<4x128xf32>
    %277 = arith.addf %274, %276 : vector<4x128xf32>
    %cst_148 = arith.constant 0.000000e+00 : f32
    %278 = vector.broadcast %cst_148 : f32 to vector<4x128xf32>
    %279 = arith.maximumf %277, %278 : vector<4x128xf32>
    %c0_149 = arith.constant 0 : index
    %c0_150 = arith.constant 0 : index
    %c0_151 = arith.constant 0 : index
    %280 = vector.load %arg9[%c0_149, %c0_150, %c0_151] : memref<1x4x128xf32, #tpu.memory_space<vmem>>, vector<1x4x128xf32>
    %281 = vector.shape_cast %280 : vector<1x4x128xf32> to vector<4x128xf32>
    %282 = vector.shape_cast %279 : vector<4x128xf32> to vector<1x4x128xf32>
    tpu.vector_store %arg9[%c0_149, %c0_150, %c0_151], %282 {strides = array<i32>} : memref<1x4x128xf32, #tpu.memory_space<vmem>>, vector<1x4x128xf32>,
    return
  }
  func.func @transform_0(%arg0: i32) -> (i32, i32, i32) {
    %c0_i32 = arith.constant 0 : i32
    %c0_i32_0 = arith.constant 0 : i32
    %c0_i32_1 = arith.constant 0 : i32
    return %arg0, %c0_i32, %c0_i32_0 : i32, i32, i32
  }
  func.func @transform_1(%arg0: i32) -> (i32, i32) {
    %c0_i32 = arith.constant 0 : i32
    %c0_i32_0 = arith.constant 0 : i32
    %c0_i32_1 = arith.constant 0 : i32
    return %c0_i32, %c0_i32_0 : i32, i32
  }
  func.func @transform_2(%arg0: i32) -> (i32, i32) {
    %c0_i32 = arith.constant 0 : i32
    %c0_i32_0 = arith.constant 0 : i32
    %c0_i32_1 = arith.constant 0 : i32
    return %c0_i32, %c0_i32_0 : i32, i32
  }
  func.func @transform_3(%arg0: i32) -> (i32, i32) {
    %c0_i32 = arith.constant 0 : i32
    %c0_i32_0 = arith.constant 0 : i32
    %c0_i32_1 = arith.constant 0 : i32
    return %c0_i32, %c0_i32_0 : i32, i32
  }
  func.func @transform_4(%arg0: i32) -> (i32, i32) {
    %c0_i32 = arith.constant 0 : i32
    %c0_i32_0 = arith.constant 0 : i32
    %c0_i32_1 = arith.constant 0 : i32
    return %c0_i32, %c0_i32_0 : i32, i32
  }
  func.func @transform_5(%arg0: i32) -> (i32, i32) {
    %c0_i32 = arith.constant 0 : i32
    %c0_i32_0 = arith.constant 0 : i32
    %c0_i32_1 = arith.constant 0 : i32
    return %c0_i32, %c0_i32_0 : i32, i32
  }
  func.func @transform_6(%arg0: i32) -> (i32, i32) {
    %c0_i32 = arith.constant 0 : i32
    %c0_i32_0 = arith.constant 0 : i32
    %c0_i32_1 = arith.constant 0 : i32
    return %c0_i32, %c0_i32_0 : i32, i32
  }
  func.func @transform_7(%arg0: i32) -> (i32, i32) {
    %c0_i32 = arith.constant 0 : i32
    %c0_i32_0 = arith.constant 0 : i32
    %c0_i32_1 = arith.constant 0 : i32
    return %c0_i32, %c0_i32_0 : i32, i32
  }
  func.func @transform_8(%arg0: i32) -> (i32, i32, i32) {
    %c0_i32 = arith.constant 0 : i32
    %c0_i32_0 = arith.constant 0 : i32
    %c0_i32_1 = arith.constant 0 : i32
    return %arg0, %c0_i32, %c0_i32_0 : i32, i32, i32
  }
}

</mosaic_0001>

<bundles_post_ra>
// kernel: tile.13
= control target key start
LH: loop header
LB: loop body
LE: loop exit
PB: predicated region body
PF: predicated region fallthrough
CT: control target
= control target key end

     0   :  { %vm65_vm0 = vcmask 1043458   ;;  %s105_s6 = smov 3  ;;  %vm70_vm1 = vcmask 1045508   ;;  %vm75_vm2 = vcmask 1047558   ;;  %s108_s9 = smov 12  ;;  %vm4_vm3 = vcmask 1047556   ;;  %s1498_s0 = inlined_call_operand.vmem [shape: f32[16,16,16], index: 0, kind: input, shape index: {}]   ;;  %s1499_s1 = inlined_call_operand.vmem [shape: f32[16,256], index: 1, kind: output, shape index: {}]  }
   0x1   :  { %v726_v0 = vld [vmem:[%s1498_s0 + $0x87] ss:$16 sm:%s105_s6]   ;;  %s113_s10 = smov 48  ;;  %s118_s15 = smov 192  ;;  %vm6_vm4 = vcmask 130048   ;;  %vm79_vm5 = vcmask 1048448  }
   0x2   :  { %v727_v1 = vld [vmem:[%s1498_s0 + $0x87] ss:$16 sm:%s108_s9]   ;;  %s60_s16 = smov 3  ;;  %s63_s21 = smov 12  ;;  %vm170_vm6 = vcmask 917248   ;;  %vm261_vm7 = vcmask 786048  }
   0x3   :  { %v728_v2 = vld [vmem:[%s1498_s0 + $0x87] ss:$16 sm:%s113_s10]   ;;  %v111_v3 = vsel %vm65_vm0, %v727_v1, %v726_v0  ;;  %s68_s22 = smov 48  ;;  %s73_s27 = smov 192  ;;  %vm352_vm8 = vcmask 654848   ;;  %vm443_vm9 = vcmask 523648  }
   0x4   :  { %v729_v4 = vld [vmem:[%s1498_s0 + $0x87] ss:$16 sm:%s118_s15]   ;;  %v116_v6 = vsel %vm70_vm1, %v728_v2, %v111_v3  ;;  %s128_s28 = smov 3  ;;  %s131_s4 = smov 12  ;;  %vm534_vm10 = vcmask 392448   ;;  %vm625_vm11 = vcmask 261248  }
   0x5   :  { %v717_v5 = vld [vmem:[%s1498_s0 + $0x7] ss:$16 sm:%s60_s16]   ;;  %v121_v9 = vsel %vm75_vm2, %v729_v4, %v116_v6  ;;  %v731_v12 = vld [vmem:[%s1498_s0 + $0x8f] ss:$16 sm:%s128_s28]   ;;  %s136_s5 = smov 48  ;;  %s857_s6 = smov 112  }
   0x6   :  { %v718_v7 = vld [vmem:[%s1498_s0 + $0x7] ss:$16 sm:%s63_s21]   ;;  %122 = vrot.lane.b32.xlu1 %v121_v9, %s857_s6  ;;  %s141_s9 = smov 192  ;;  %s82_s10 = smov 3 }
   0x7   :  { %v719_v8 = vld [vmem:[%s1498_s0 + $0x7] ss:$16 sm:%s68_s22]   ;;  %v66_v10 = vsel %vm65_vm0, %v718_v7, %v717_v5  ;;  %v732_v14 = vld [vmem:[%s1498_s0 + $0x8f] ss:$16 sm:%s131_s4]   ;;  %s85_s15 = smov 12  ;;  %s90_s16 = smov 48 }
   0x8   :  { %v720_v11 = vld [vmem:[%s1498_s0 + $0x7] ss:$16 sm:%s73_s27]   ;;  %v71_v13 = vsel %vm70_vm1, %v719_v8, %v66_v10  ;;  %v134_v16 = vsel %vm65_vm0, %v732_v14, %v731_v12  ;;  %v733_v17 = vld [vmem:[%s1498_s0 + $0x8f] ss:$16 sm:%s136_s5]   ;;  %s95_s19 = smov 192  ;;  %s173_s24 = smov 3 }
   0x9   :  { %v76_v15 = vsel %vm75_vm2, %v720_v11, %v71_v13  ;;  %v734_v18 = vld [vmem:[%s1498_s0 + $0x8f] ss:$16 sm:%s141_s9]   ;;  %v139_v19 = vsel %vm70_vm1, %v733_v17, %v134_v16  ;;  %s176_s25 = smov 12  ;;  %s181_s28 = smov 48  ;;  %v740_v27 = vld [vmem:[%s1498_s0 + $0xe] ss:$16 sm:%s173_s24]  }
   0xa   :  { %77 = vrot.lane.b32.xlu0 %v76_v15, %s857_s6  ;;  %v721_v20 = vld [vmem:[%s1498_s0 + $0xf] ss:$16 sm:%s82_s10]   ;;  %v144_v21 = vsel %vm75_vm2, %v734_v18, %v139_v19  ;;  %s186_s29 = smov 192  ;;  %s151_s5 = smov 3 }
   0xb   :  { %v722_v22 = vld [vmem:[%s1498_s0 + $0xf] ss:$16 sm:%s85_s15]   ;;  %145 = vrot.lane.b32.xlu1 %v144_v21, %s857_s6  ;;  %s154_s7 = smov 12  ;;  %s159_s12 = smov 48 }
   0xc   :  { %v723_v23 = vld [vmem:[%s1498_s0 + $0xf] ss:$16 sm:%s90_s16]   ;;  %v88_v24 = vsel %vm65_vm0, %v722_v22, %v721_v20  ;;  %v741_v28 = vld [vmem:[%s1498_s0 + $0xe] ss:$16 sm:%s176_s25]   ;;  %s164_s13 = smov 192  ;;  %s219_s15 = smov 3 }
   0xd   :  { %v724_v25 = vld [vmem:[%s1498_s0 + $0xf] ss:$16 sm:%s95_s19]   ;;  %v93_v26 = vsel %vm70_vm1, %v723_v23, %v88_v24  ;;  %v179_v30 = vsel %vm65_vm0, %v741_v28, %v740_v27  ;;  %v742_v31 = vld [vmem:[%s1498_s0 + $0xe] ss:$16 sm:%s181_s28]   ;;  %s222_s16 = smov 12  ;;  %s227_s21 = smov 48 }
   0xe   :  { %v98_v29 = vsel %vm75_vm2, %v724_v25, %v93_v26  ;;  %v743_v32 = vld [vmem:[%s1498_s0 + $0xe] ss:$16 sm:%s186_s29]   ;;  %v184_v33 = vsel %vm70_vm1, %v742_v31, %v179_v30  ;;  %v736_v34 = vld [vmem:[%s1498_s0 + $0x6] ss:$16 sm:%s151_s5]   ;;  %s232_s22 = smov 192  ;;  %s858_s23 = smov 96  }
   0xf   :  { %99 = vrot.lane.b32.xlu0 %v98_v29, %s857_s6  ;;  %v189_v35 = vsel %vm75_vm2, %v743_v32, %v184_v33  ;;  %v737_v36 = vld [vmem:[%s1498_s0 + $0x6] ss:$16 sm:%s154_s7]   ;;  %s196_s26 = smov 3  ;;  %s199_s2 = smov 12 }
  0x10   :  { %v738_v37 = vld [vmem:[%s1498_s0 + $0x6] ss:$16 sm:%s159_s12]   ;;  %190 = vrot.lane.b32.xlu1 %v189_v35, %s858_s23  ;;  %v157_v38 = vsel %vm65_vm0, %v737_v36, %v736_v34  ;;  %s204_s3 = smov 48  ;;  %s209_s9 = smov 192 }
  0x11   :  { %v739_v39 = vld [vmem:[%s1498_s0 + $0x6] ss:$16 sm:%s164_s13]   ;;  %v162_v40 = vsel %vm70_vm1, %v738_v37, %v157_v38  ;;  %v750_v41 = vld [vmem:[%s1498_s0 + $0x8e] ss:$16 sm:%s219_s15]   ;;  %s264_s12 = smov 3  ;;  %s267_s13 = smov 12 }
  0x12   :  { %v751_v42 = vld [vmem:[%s1498_s0 + $0x8e] ss:$16 sm:%s222_s16]   ;;  %v167_v43 = vsel %vm75_vm2, %v739_v39, %v162_v40  ;;  %v745_v48 = vld [vmem:[%s1498_s0 + $0x86] ss:$16 sm:%s196_s26]   ;;  %s272_s17 = smov 48  ;;  %s277_s18 = smov 192 }
  0x13   :  { %v225_v44 = vsel %vm65_vm0, %v751_v42, %v750_v41  ;;  %v752_v45 = vld [vmem:[%s1498_s0 + $0x8e] ss:$16 sm:%s227_s21]   ;;  %168 = vrot.lane.b32.xlu0 %v167_v43, %s858_s23  ;;  %s242_s21 = smov 3  ;;  %s245_s27 = smov 12 }
  0x14   :  { %v753_v46 = vld [vmem:[%s1498_s0 + $0x8e] ss:$16 sm:%s232_s22]   ;;  %v230_v47 = vsel %vm70_vm1, %v752_v45, %v225_v44  ;;  %v746_v50 = vld [vmem:[%s1498_s0 + $0x86] ss:$16 sm:%s199_s2]   ;;  %s250_s28 = smov 48  ;;  %s255_s4 = smov 192 }
  0x15   :  { %v235_v49 = vsel %vm75_vm2, %v753_v46, %v230_v47  ;;  %v747_v51 = vld [vmem:[%s1498_s0 + $0x86] ss:$16 sm:%s204_s3]   ;;  %v202_v52 = vsel %vm65_vm0, %v746_v50, %v745_v48  ;;  %v759_v55 = vld [vmem:[%s1498_s0 + $0xd] ss:$16 sm:%s264_s12]   ;;  %s310_s7 = smov 3  ;;  %s313_s8 = smov 12 }
  0x16   :  { %236 = vrot.lane.b32.xlu1 %v235_v49, %s858_s23  ;;  %v748_v53 = vld [vmem:[%s1498_s0 + $0x86] ss:$16 sm:%s209_s9]   ;;  %v207_v54 = vsel %vm70_vm1, %v747_v51, %v202_v52  ;;  %s323_s6 = smov 192  ;;  %s859_s14 = smov 80  }
  0x17   :  { %v760_v56 = vld [vmem:[%s1498_s0 + $0xd] ss:$16 sm:%s267_s13]   ;;  %v212_v57 = vsel %vm75_vm2, %v748_v53, %v207_v54  ;;  %v755_v62 = vld [vmem:[%s1498_s0 + $0x5] ss:$16 sm:%s242_s21]   ;;  %s318_s13 = smov 48  ;;  %s290_s22 = smov 12 }
  0x18   :  { %v270_v58 = vsel %vm65_vm0, %v760_v56, %v759_v55  ;;  %v761_v59 = vld [vmem:[%s1498_s0 + $0xd] ss:$16 sm:%s272_s17]   ;;  %213 = vrot.lane.b32.xlu0 %v212_v57, %s858_s23  ;;  %s287_s17 = smov 3  ;;  %s295_s24 = smov 48 }
  0x19   :  { %v762_v60 = vld [vmem:[%s1498_s0 + $0xd] ss:$16 sm:%s277_s18]   ;;  %v275_v61 = vsel %vm70_vm1, %v761_v59, %v270_v58  ;;  %v756_v0 = vld [vmem:[%s1498_s0 + $0x5] ss:$16 sm:%s245_s27]   ;;  %s300_s29 = smov 192  ;;  %s355_s3 = smov 3 }
  0x1a   :  { %v280_v63 = vsel %vm75_vm2, %v762_v60, %v275_v61  ;;  %v757_v1 = vld [vmem:[%s1498_s0 + $0x5] ss:$16 sm:%s250_s28]   ;;  %v248_v2 = vsel %vm65_vm0, %v756_v0, %v755_v62  ;;  %v769_v5 = vld [vmem:[%s1498_s0 + $0x8d] ss:$16 sm:%s310_s7]   ;;  %s363_s9 = smov 48  ;;  %s368_s10 = smov 192 }
  0x1b   :  { %281 = vrot.lane.b32.xlu1 %v280_v63, %s859_s14  ;;  %v758_v3 = vld [vmem:[%s1498_s0 + $0x5] ss:$16 sm:%s255_s4]   ;;  %v253_v4 = vsel %vm70_vm1, %v757_v1, %v248_v2  ;;  %s358_s4 = smov 12  ;;  %s336_s18 = smov 12 }
  0x1c   :  { %v770_v6 = vld [vmem:[%s1498_s0 + $0x8d] ss:$16 sm:%s313_s8]   ;;  %v258_v7 = vsel %vm75_vm2, %v758_v3, %v253_v4  ;;  %v764_v12 = vld [vmem:[%s1498_s0 + $0x85] ss:$16 sm:%s287_s17]   ;;  %s341_s19 = smov 48  ;;  %s346_s25 = smov 192 }
  0x1d   :  { %v316_v8 = vsel %vm65_vm0, %v770_v6, %v769_v5  ;;  %v771_v9 = vld [vmem:[%s1498_s0 + $0x8d] ss:$16 sm:%s318_s13]   ;;  %259 = vrot.lane.b32.xlu0 %v258_v7, %s859_s14  ;;  %s333_s13 = smov 3  ;;  %s401_s27 = smov 3 }
  0x1e   :  { %v772_v10 = vld [vmem:[%s1498_s0 + $0x8d] ss:$16 sm:%s323_s6]   ;;  %v321_v11 = vsel %vm70_vm1, %v771_v9, %v316_v8  ;;  %v765_v14 = vld [vmem:[%s1498_s0 + $0x85] ss:$16 sm:%s290_s22]   ;;  %s404_s28 = smov 12  ;;  %s414_s23 = smov 192 }
  0x1f   :  { %v326_v13 = vsel %vm75_vm2, %v772_v10, %v321_v11  ;;  %v766_v15 = vld [vmem:[%s1498_s0 + $0x85] ss:$16 sm:%s295_s24]   ;;  %v293_v16 = vsel %vm65_vm0, %v765_v14, %v764_v12  ;;  %v778_v19 = vld [vmem:[%s1498_s0 + $0xc] ss:$16 sm:%s355_s3]   ;;  %s860_s5 = smov 64   ;;  %s381_s6 = smov 12 }
  0x20   :  { %327 = vrot.lane.b32.xlu1 %v326_v13, %s859_s14  ;;  %v767_v17 = vld [vmem:[%s1498_s0 + $0x85] ss:$16 sm:%s300_s29]   ;;  %v298_v18 = vsel %vm70_vm1, %v766_v15, %v293_v16  ;;  %s386_s15 = smov 48  ;;  %s391_s20 = smov 192 }
  0x21   :  { %v779_v20 = vld [vmem:[%s1498_s0 + $0xc] ss:$16 sm:%s358_s4]   ;;  %v303_v21 = vsel %vm75_vm2, %v767_v17, %v298_v18  ;;  %v774_v26 = vld [vmem:[%s1498_s0 + $0x4] ss:$16 sm:%s333_s13]   ;;  %s409_s4 = smov 48  ;;  %s446_s24 = smov 3 }
  0x22   :  { %v361_v22 = vsel %vm65_vm0, %v779_v20, %v778_v19  ;;  %v780_v23 = vld [vmem:[%s1498_s0 + $0xc] ss:$16 sm:%s363_s9]   ;;  %304 = vrot.lane.b32.xlu0 %v303_v21, %s859_s14  ;;  %s378_s9 = smov 3  ;;  %s454_s29 = smov 48 }
  0x23   :  { %v781_v24 = vld [vmem:[%s1498_s0 + $0xc] ss:$16 sm:%s368_s10]   ;;  %v366_v25 = vsel %vm70_vm1, %v780_v23, %v361_v22  ;;  %v775_v28 = vld [vmem:[%s1498_s0 + $0x4] ss:$16 sm:%s336_s18]   ;;  %s459_s30 = smov 192  ;;  %s427_s10 = smov 12 }
  0x24   :  { %v371_v27 = vsel %vm75_vm2, %v781_v24, %v366_v25  ;;  %v776_v29 = vld [vmem:[%s1498_s0 + $0x4] ss:$16 sm:%s341_s19]   ;;  %v339_v30 = vsel %vm65_vm0, %v775_v28, %v774_v26  ;;  %v788_v33 = vld [vmem:[%s1498_s0 + $0x8c] ss:$16 sm:%s401_s27]   ;;  %s432_s11 = smov 48  ;;  %s437_s16 = smov 192 }
  0x25   :  { %372 = vrot.lane.b32.xlu1 %v371_v27, %s860_s5  ;;  %v777_v31 = vld [vmem:[%s1498_s0 + $0x4] ss:$16 sm:%s346_s25]   ;;  %v344_v32 = vsel %vm70_vm1, %v776_v29, %v339_v30  ;;  %s449_s25 = smov 12  ;;  %s492_s18 = smov 3 }
  0x26   :  { %v789_v34 = vld [vmem:[%s1498_s0 + $0x8c] ss:$16 sm:%s404_s28]   ;;  %v349_v35 = vsel %vm75_vm2, %v777_v31, %v344_v32  ;;  %v783_v40 = vld [vmem:[%s1498_s0 + $0x84] ss:$16 sm:%s378_s9]   ;;  %s495_s19 = smov 12  ;;  %s505_s14 = smov 192 }
  0x27   :  { %v407_v36 = vsel %vm65_vm0, %v789_v34, %v788_v33  ;;  %v790_v37 = vld [vmem:[%s1498_s0 + $0x8c] ss:$16 sm:%s409_s4]   ;;  %350 = vrot.lane.b32.xlu0 %v349_v35, %s860_s5  ;;  %s424_s4 = smov 3  ;;  %s861_s26 = smov 48  }
  0x28   :  { %v791_v38 = vld [vmem:[%s1498_s0 + $0x8c] ss:$16 sm:%s414_s23]   ;;  %v412_v39 = vsel %vm70_vm1, %v790_v37, %v407_v36  ;;  %v784_v42 = vld [vmem:[%s1498_s0 + $0x84] ss:$16 sm:%s381_s6]   ;;  %s472_s23 = smov 12  ;;  %s477_s7 = smov 48 }
  0x29   :  { %v417_v41 = vsel %vm75_vm2, %v791_v38, %v412_v39  ;;  %v785_v43 = vld [vmem:[%s1498_s0 + $0x84] ss:$16 sm:%s386_s15]   ;;  %v384_v44 = vsel %vm65_vm0, %v784_v42, %v783_v40  ;;  %v797_v47 = vld [vmem:[%s1498_s0 + $0xb] ss:$16 sm:%s446_s24]   ;;  %s482_s12 = smov 192  ;;  %s537_s15 = smov 3 }
  0x2a   :  { %418 = vrot.lane.b32.xlu1 %v417_v41, %s860_s5  ;;  %v786_v45 = vld [vmem:[%s1498_s0 + $0x84] ss:$16 sm:%s391_s20]   ;;  %v389_v46 = vsel %vm70_vm1, %v785_v43, %v384_v44  ;;  %s545_s20 = smov 48  ;;  %s550_s21 = smov 192 }
  0x2b   :  { %v798_v48 = vld [vmem:[%s1498_s0 + $0xb] ss:$16 sm:%s449_s25]   ;;  %v394_v49 = vsel %vm75_vm2, %v786_v45, %v389_v46  ;;  %v793_v54 = vld [vmem:[%s1498_s0 + $0x3] ss:$16 sm:%s424_s4]   ;;  %s500_s25 = smov 48  ;;  %s523_s2 = smov 48 }
  0x2c   :  { %v452_v50 = vsel %vm65_vm0, %v798_v48, %v797_v47  ;;  %v799_v51 = vld [vmem:[%s1498_s0 + $0xb] ss:$16 sm:%s454_s29]   ;;  %395 = vrot.lane.b32.xlu0 %v394_v49, %s860_s5  ;;  %s469_s29 = smov 3  ;;  %s528_s8 = smov 192 }
  0x2d   :  { %v800_v52 = vld [vmem:[%s1498_s0 + $0xb] ss:$16 sm:%s459_s30]   ;;  %v457_v53 = vsel %vm70_vm1, %v799_v51, %v452_v50  ;;  %v794_v56 = vld [vmem:[%s1498_s0 + $0x3] ss:$16 sm:%s427_s10]   ;;  %s518_s30 = smov 12  ;;  %s583_s10 = smov 3 }
  0x2e   :  { %v462_v55 = vsel %vm75_vm2, %v800_v52, %v457_v53  ;;  %v795_v57 = vld [vmem:[%s1498_s0 + $0x3] ss:$16 sm:%s432_s11]   ;;  %v430_v58 = vsel %vm65_vm0, %v794_v56, %v793_v54  ;;  %v807_v61 = vld [vmem:[%s1498_s0 + $0x8b] ss:$16 sm:%s492_s18]   ;;  %s586_s11 = smov 12  ;;  %s596_s5 = smov 192 }
  0x2f   :  { %463 = vrot.lane.b32.xlu1 %v462_v55, %s861_s26  ;;  %v796_v59 = vld [vmem:[%s1498_s0 + $0x3] ss:$16 sm:%s437_s16]   ;;  %v435_v60 = vsel %vm70_vm1, %v795_v57, %v430_v58  ;;  %s540_s16 = smov 12  ;;  %s862_s17 = smov 32  }
  0x30   :  { %v808_v62 = vld [vmem:[%s1498_s0 + $0x8b] ss:$16 sm:%s495_s19]   ;;  %v440_v63 = vsel %vm75_vm2, %v796_v59, %v435_v60  ;;  %v802_v4 = vld [vmem:[%s1498_s0 + $0x83] ss:$16 sm:%s469_s29]   ;;  %s568_s27 = smov 48  ;;  %s573_s3 = smov 192 }
  0x31   :  { %v498_v0 = vsel %vm65_vm0, %v808_v62, %v807_v61  ;;  %v809_v1 = vld [vmem:[%s1498_s0 + $0x8b] ss:$16 sm:%s500_s25]   ;;  %441 = vrot.lane.b32.xlu0 %v440_v63, %s861_s26  ;;  %s515_s25 = smov 3  ;;  %s641_s13 = smov 192 }
  0x32   :  { %v810_v2 = vld [vmem:[%s1498_s0 + $0x8b] ss:$16 sm:%s505_s14]   ;;  %v503_v3 = vsel %vm70_vm1, %v809_v1, %v498_v0  ;;  %v803_v6 = vld [vmem:[%s1498_s0 + $0x83] ss:$16 sm:%s472_s23]   ;;  %s563_s14 = smov 12  ;;  %s609_s24 = smov 12 }
  0x33   :  { %v508_v5 = vsel %vm75_vm2, %v810_v2, %v503_v3  ;;  %v804_v7 = vld [vmem:[%s1498_s0 + $0x83] ss:$16 sm:%s477_s7]   ;;  %v475_v8 = vsel %vm65_vm0, %v803_v6, %v802_v4  ;;  %v816_v11 = vld [vmem:[%s1498_s0 + $0xa] ss:$16 sm:%s537_s15]   ;;  %s628_s7 = smov 3  ;;  %s677_s4 = smov 12 }
  0x34   :  { %509 = vrot.lane.b32.xlu1 %v508_v5, %s861_s26  ;;  %v805_v9 = vld [vmem:[%s1498_s0 + $0x83] ss:$16 sm:%s482_s12]   ;;  %v480_v10 = vsel %vm70_vm1, %v804_v7, %v475_v8  ;;  %s636_s12 = smov 48  ;;  %v2_v38 = vld [vmem:[%s1498_s0] ss:$8 sm:$0xf]  }
  0x35   :  { %v817_v12 = vld [vmem:[%s1498_s0 + $0xa] ss:$16 sm:%s540_s16]   ;;  %v485_v13 = vsel %vm75_vm2, %v805_v9, %v480_v10  ;;  %v812_v18 = vld [vmem:[%s1498_s0 + $0x2] ss:$16 sm:%s515_s25]   ;;  %s591_s16 = smov 48  ;;  %s614_s25 = smov 48 }
  0x36   :  { %v543_v14 = vsel %vm65_vm0, %v817_v12, %v816_v11  ;;  %v818_v15 = vld [vmem:[%s1498_s0 + $0xa] ss:$16 sm:%s545_s20]   ;;  %486 = vrot.lane.b32.xlu0 %v485_v13, %s861_s26  ;;  %s560_s20 = smov 3  ;;  %v3_v48 = vld [vmem:[%s1498_s0] ss:$8 sm:$0xf0]  }
  0x37   :  { %v819_v16 = vld [vmem:[%s1498_s0 + $0xa] ss:$16 sm:%s550_s21]   ;;  %v548_v17 = vsel %vm70_vm1, %v818_v15, %v543_v14  ;;  %v813_v20 = vld [vmem:[%s1498_s0 + $0x2] ss:$16 sm:%s518_s30]   ;;  %s619_s30 = smov 192  ;;  %v5_v52 = vsel %vm4_vm3, %v3_v48, %v2_v38  ;;  %s664_s26 = smov 192 }
  0x38   :  { %v553_v19 = vsel %vm75_vm2, %v819_v16, %v548_v17  ;;  %v814_v21 = vld [vmem:[%s1498_s0 + $0x2] ss:$16 sm:%s523_s2]   ;;  %v521_v22 = vsel %vm65_vm0, %v813_v20, %v812_v18  ;;  %v826_v25 = vld [vmem:[%s1498_s0 + $0x8a] ss:$16 sm:%s583_s10]   ;;  %s674_s2 = smov 3 }
  0x39   :  { %554 = vrot.lane.b32.xlu1 %v553_v19, %s862_s17  ;;  %v815_v23 = vld [vmem:[%s1498_s0 + $0x2] ss:$16 sm:%s528_s8]   ;;  %v526_v24 = vsel %vm70_vm1, %v814_v21, %v521_v22  ;;  %s631_s8 = smov 12  ;;  %7 = vst.msk [vmem:[%s1499_s1] ss:$8 sm:$0x3] %vm6_vm4, %v5_v52  }
  0x3a   :  { %v827_v26 = vld [vmem:[%s1498_s0 + $0x8a] ss:$16 sm:%s586_s11]   ;;  %v531_v27 = vsel %vm75_vm2, %v815_v23, %v526_v24  ;;  %v821_v32 = vld [vmem:[%s1498_s0 + $0x82] ss:$16 sm:%s560_s20]   ;;  %s682_s11 = smov 48 }
  0x3b   :  { %v589_v28 = vsel %vm65_vm0, %v827_v26, %v826_v25  ;;  %v828_v29 = vld [vmem:[%s1498_s0 + $0x8a] ss:$16 sm:%s591_s16]   ;;  %532 = vrot.lane.b32.xlu0 %v531_v27, %s862_s17  ;;  %s606_s16 = smov 3  ;;  %696 = vst.msk [vmem:[%s1499_s1 - $0xf] ss:$8 sm:$0xc] %vm6_vm4, %v5_v52  }
  0x3c   :  { %v829_v30 = vld [vmem:[%s1498_s0 + $0x8a] ss:$16 sm:%s596_s5]   ;;  %v594_v31 = vsel %vm70_vm1, %v828_v29, %v589_v28  ;;  %v822_v34 = vld [vmem:[%s1498_s0 + $0x82] ss:$16 sm:%s563_s14]  }
  0x3d   :  { %v599_v33 = vsel %vm75_vm2, %v829_v30, %v594_v31  ;;  %v823_v35 = vld [vmem:[%s1498_s0 + $0x82] ss:$16 sm:%s568_s27]   ;;  %v566_v36 = vsel %vm65_vm0, %v822_v34, %v821_v32  ;;  %v835_v40 = vld [vmem:[%s1498_s0 + $0x9] ss:$16 sm:%s628_s7]  }
  0x3e   :  { %600 = vrot.lane.b32.xlu1 %v599_v33, %s862_s17  ;;  %v824_v37 = vld [vmem:[%s1498_s0 + $0x82] ss:$16 sm:%s573_s3]   ;;  %v571_v39 = vsel %vm70_vm1, %v823_v35, %v566_v36  ;;  %697 = vst.msk [vmem:[%s1499_s1 - $0x1e] ss:$8 sm:$0x30] %vm6_vm4, %v5_v52   ;;  %s659_s3 = smov 48 }
  0x3f   :  { %v836_v41 = vld [vmem:[%s1498_s0 + $0x9] ss:$16 sm:%s631_s8]   ;;  %v576_v42 = vsel %vm75_vm2, %v824_v37, %v571_v39  ;;  %v831_v47 = vld [vmem:[%s1498_s0 + $0x1] ss:$16 sm:%s606_s16]   ;;  %s651_s16 = smov 3 }
  0x40   :  { %v634_v43 = vsel %vm65_vm0, %v836_v41, %v835_v40  ;;  %v837_v44 = vld [vmem:[%s1498_s0 + $0x9] ss:$16 sm:%s636_s12]   ;;  %577 = vrot.lane.b32.xlu0 %v576_v42, %s862_s17  ;;  %s687_s12 = smov 192  ;;  %698 = vst.msk [vmem:[%s1499_s1 - $0x2d] ss:$8 sm:$0xc0] %vm6_vm4, %v5_v52  }
  0x41   :  { %v838_v45 = vld [vmem:[%s1498_s0 + $0x9] ss:$16 sm:%s641_s13]   ;;  %v639_v46 = vsel %vm70_vm1, %v837_v44, %v634_v43  ;;  %v832_v50 = vld [vmem:[%s1498_s0 + $0x1] ss:$16 sm:%s609_s24]   ;;  %s863_s13 = smov 16   ;;  %s654_s17 = smov 12 }
  0x42   :  { %v644_v49 = vsel %vm75_vm2, %v838_v45, %v639_v46  ;;  %v833_v51 = vld [vmem:[%s1498_s0 + $0x1] ss:$16 sm:%s614_s25]   ;;  %v612_v53 = vsel %vm65_vm0, %v832_v50, %v831_v47  ;;  %v699_v55 = vld [vmem:[%s1498_s0 + $0x40] ss:$8 sm:$0xf]  }
  0x43   :  { %645 = vrot.lane.b32.xlu1 %v644_v49, %s863_s13  ;;  %v834_v54 = vld [vmem:[%s1498_s0 + $0x1] ss:$16 sm:%s619_s30]   ;;  %v617_v56 = vsel %vm70_vm1, %v833_v51, %v612_v53  ;;  %v700_v1 = vld [vmem:[%s1498_s0 + $0x40] ss:$8 sm:$0xf0]  }
  0x44   :  { %v845_v57 = vld [vmem:[%s1498_s0 + $0x89] ss:$16 sm:%s674_s2]   ;;  %v622_v59 = vsel %vm75_vm2, %v834_v54, %v617_v56  ;;  %v840_v0 = vld [vmem:[%s1498_s0 + $0x81] ss:$16 sm:%s651_s16]   ;;  %v19_v5 = vsel %vm4_vm3, %v700_v1, %v699_v55 }
  0x45   :  { %v846_v58 = vld [vmem:[%s1498_s0 + $0x89] ss:$16 sm:%s677_s4]   ;;  %623 = vrot.lane.b32.xlu0 %v622_v59, %s863_s13  ;;  %701 = vst.msk [vmem:[%s1499_s1 + $0x4] ss:$8 sm:$0x3] %vm6_vm4, %v19_v5  }
  0x46   :  { %v680_v60 = vsel %vm65_vm0, %v846_v58, %v845_v57  ;;  %v847_v61 = vld [vmem:[%s1498_s0 + $0x89] ss:$16 sm:%s682_s11]   ;;  %v841_v3 = vld [vmem:[%s1498_s0 + $0x81] ss:$16 sm:%s654_s17]  }
  0x47   :  { %v848_v62 = vld [vmem:[%s1498_s0 + $0x89] ss:$16 sm:%s687_s12]   ;;  %v685_v63 = vsel %vm70_vm1, %v847_v61, %v680_v60  ;;  %v842_v4 = vld [vmem:[%s1498_s0 + $0x81] ss:$16 sm:%s659_s3]   ;;  %v657_v6 = vsel %vm65_vm0, %v841_v3, %v840_v0 }
  0x48   :  { %v690_v2 = vsel %vm75_vm2, %v848_v62, %v685_v63  ;;  %v843_v7 = vld [vmem:[%s1498_s0 + $0x81] ss:$16 sm:%s664_s26]   ;;  %702 = vst.msk [vmem:[%s1499_s1 - $0xb] ss:$8 sm:$0xc] %vm6_vm4, %v19_v5   ;;  %v662_v9 = vsel %vm70_vm1, %v842_v4, %v657_v6 }
  0x49   :  { %691 = vrot.lane.b32.xlu1 %v690_v2, %s863_s13  ;;  %703 = vst.msk [vmem:[%s1499_s1 - $0x1a] ss:$8 sm:$0x30] %vm6_vm4, %v19_v5   ;;  %704 = vst.msk [vmem:[%s1499_s1 - $0x29] ss:$8 sm:$0xc0] %vm6_vm4, %v19_v5   ;;  %v667_v12 = vsel %vm75_vm2, %v843_v7, %v662_v9 }
  0x4a   :  { %v705_v8 = vld [vmem:[%s1498_s0 + $0x80] ss:$8 sm:$0xf]   ;;  %668 = vrot.lane.b32.xlu0 %v667_v12, %s863_s13 }
  0x4b   :  { %v706_v10 = vld [vmem:[%s1498_s0 + $0x80] ss:$8 sm:$0xf0]  }
  0x4c   :  { %v711_v11 = vld [vmem:[%s1498_s0 + $0xc0] ss:$8 sm:$0xf]   ;;  %v34_v13 = vsel %vm4_vm3, %v706_v10, %v705_v8 }
  0x4d   :  { %v712_v14 = vld [vmem:[%s1498_s0 + $0xc0] ss:$8 sm:$0xf0]   ;;  %707 = vst.msk [vmem:[%s1499_s1 + $0x10] ss:$8 sm:$0x3] %vm6_vm4, %v34_v13  }
  0x4e   :  { %708 = vst.msk [vmem:[%s1499_s1 + $0x1] ss:$8 sm:$0xc] %vm6_vm4, %v34_v13   ;;  %709 = vst.msk [vmem:[%s1499_s1 - $0xe] ss:$8 sm:$0x30] %vm6_vm4, %v34_v13   ;;  %v49_v15 = vsel %vm4_vm3, %v712_v14, %v711_v11 }
  0x4f   :  { %710 = vst.msk [vmem:[%s1499_s1 - $0x1d] ss:$8 sm:$0xc0] %vm6_vm4, %v34_v13   ;;  %713 = vst.msk [vmem:[%s1499_s1 + $0x14] ss:$8 sm:$0x3] %vm6_vm4, %v49_v15  }
  0x50   :  { %714 = vst.msk [vmem:[%s1499_s1 + $0x5] ss:$8 sm:$0xc] %vm6_vm4, %v49_v15   ;;  %715 = vst.msk [vmem:[%s1499_s1 - $0xa] ss:$8 sm:$0x30] %vm6_vm4, %v49_v15  }
  0x51   :  { %716 = vst.msk [vmem:[%s1499_s1 - $0x19] ss:$8 sm:$0xc0] %vm6_vm4, %v49_v15  }
  0x78   :  { %v123_v16 = vpop.permute.xlu1 %122  }
  0x79   :  { %730 = vst.msk [vmem:[%s1499_s1 + $0x10] sm:$0xff] %vm79_vm5, %v123_v16  }
  0x7c   :  { %v78_v17 = vpop.permute.xlu0 %77  }
  0x7d   :  { %80 = vst.msk [vmem:[%s1499_s1] sm:$0xff] %vm79_vm5, %v78_v17   ;;  %v146_v18 = vpop.permute.xlu1 %145  }
  0x7e   :  { %735 = vst.msk [vmem:[%s1499_s1 + $0x18] sm:$0xff] %vm79_vm5, %v146_v18  }
  0x81   :  { %v100_v19 = vpop.permute.xlu0 %99  }
  0x82   :  { %725 = vst.msk [vmem:[%s1499_s1 + $0x8] sm:$0xff] %vm79_vm5, %v100_v19   ;;  %v191_v20 = vpop.permute.xlu1 %190  }
  0x83   :  { %744 = vst.msk [vmem:[%s1499_s1 + $0x8] sm:$0xff] %vm170_vm6, %v191_v20  }
  0x85   :  { %v169_v21 = vpop.permute.xlu0 %168  }
  0x86   :  { %171 = vst.msk [vmem:[%s1499_s1] sm:$0xff] %vm170_vm6, %v169_v21  }
  0x88   :  { %v237_v22 = vpop.permute.xlu1 %236  }
  0x89   :  { %754 = vst.msk [vmem:[%s1499_s1 + $0x18] sm:$0xff] %vm170_vm6, %v237_v22  }
  0x8a   :  { %v214_v23 = vpop.permute.xlu0 %213  }
  0x8b   :  { %749 = vst.msk [vmem:[%s1499_s1 + $0x10] sm:$0xff] %vm170_vm6, %v214_v23  }
  0x8d   :  { %v282_v24 = vpop.permute.xlu1 %281  }
  0x8e   :  { %763 = vst.msk [vmem:[%s1499_s1 + $0x8] sm:$0xff] %vm261_vm7, %v282_v24  }
  0x8f   :  { %v260_v25 = vpop.permute.xlu0 %259  }
  0x90   :  { %262 = vst.msk [vmem:[%s1499_s1] sm:$0xff] %vm261_vm7, %v260_v25  }
  0x92   :  { %v328_v26 = vpop.permute.xlu1 %327  }
  0x93   :  { %773 = vst.msk [vmem:[%s1499_s1 + $0x18] sm:$0xff] %vm261_vm7, %v328_v26  }
  0x94   :  { %v305_v27 = vpop.permute.xlu0 %304  }
  0x95   :  { %768 = vst.msk [vmem:[%s1499_s1 + $0x10] sm:$0xff] %vm261_vm7, %v305_v27  }
  0x97   :  { %v373_v28 = vpop.permute.xlu1 %372  }
  0x98   :  { %782 = vst.msk [vmem:[%s1499_s1 + $0x8] sm:$0xff] %vm352_vm8, %v373_v28  }
  0x99   :  { %v351_v29 = vpop.permute.xlu0 %350  }
  0x9a   :  { %353 = vst.msk [vmem:[%s1499_s1] sm:$0xff] %vm352_vm8, %v351_v29  }
  0x9c   :  { %v419_v30 = vpop.permute.xlu1 %418  }
  0x9d   :  { %792 = vst.msk [vmem:[%s1499_s1 + $0x18] sm:$0xff] %vm352_vm8, %v419_v30  }
  0x9e   :  { %v396_v31 = vpop.permute.xlu0 %395  }
  0x9f   :  { %787 = vst.msk [vmem:[%s1499_s1 + $0x10] sm:$0xff] %vm352_vm8, %v396_v31  }
  0xa1   :  { %v464_v32 = vpop.permute.xlu1 %463  }
  0xa2   :  { %801 = vst.msk [vmem:[%s1499_s1 + $0x8] sm:$0xff] %vm443_vm9, %v464_v32  }
  0xa3   :  { %v442_v33 = vpop.permute.xlu0 %441  }
  0xa4   :  { %444 = vst.msk [vmem:[%s1499_s1] sm:$0xff] %vm443_vm9, %v442_v33  }
  0xa6   :  { %v510_v34 = vpop.permute.xlu1 %509  }
  0xa7   :  { %811 = vst.msk [vmem:[%s1499_s1 + $0x18] sm:$0xff] %vm443_vm9, %v510_v34  }
  0xa8   :  { %v487_v35 = vpop.permute.xlu0 %486  }
  0xa9   :  { %806 = vst.msk [vmem:[%s1499_s1 + $0x10] sm:$0xff] %vm443_vm9, %v487_v35  }
  0xab   :  { %v555_v36 = vpop.permute.xlu1 %554  }
  0xac   :  { %820 = vst.msk [vmem:[%s1499_s1 + $0x8] sm:$0xff] %vm534_vm10, %v555_v36  }
  0xad   :  { %v533_v37 = vpop.permute.xlu0 %532  }
  0xae   :  { %535 = vst.msk [vmem:[%s1499_s1] sm:$0xff] %vm534_vm10, %v533_v37  }
  0xb0   :  { %v601_v38 = vpop.permute.xlu1 %600  }
  0xb1   :  { %830 = vst.msk [vmem:[%s1499_s1 + $0x18] sm:$0xff] %vm534_vm10, %v601_v38  }
  0xb2   :  { %v578_v39 = vpop.permute.xlu0 %577  }
  0xb3   :  { %825 = vst.msk [vmem:[%s1499_s1 + $0x10] sm:$0xff] %vm534_vm10, %v578_v39  }
  0xb5   :  { %v646_v40 = vpop.permute.xlu1 %645  }
  0xb6   :  { %839 = vst.msk [vmem:[%s1499_s1 + $0x8] sm:$0xff] %vm625_vm11, %v646_v40  }
  0xb7   :  { %v624_v41 = vpop.permute.xlu0 %623  }
  0xb8   :  { %626 = vst.msk [vmem:[%s1499_s1] sm:$0xff] %vm625_vm11, %v624_v41  }
  0xbb   :  { %v692_v42 = vpop.permute.xlu1 %691  }
  0xbc   :  { %849 = vst.msk [vmem:[%s1499_s1 + $0x18] sm:$0xff] %vm625_vm11, %v692_v42   ;;  %v669_v43 = vpop.permute.xlu0 %668  }
  0xbd   :  { %844 = vst.msk [vmem:[%s1499_s1 + $0x10] sm:$0xff] %vm625_vm11, %v669_v43  }

// kernel: pyramid_representation.1
= control target key start
LH: loop header
LB: loop body
LE: loop exit
PB: predicated region body
PF: predicated region fallthrough
CT: control target
= control target key end

     0   :  { %13 = vsyncpa [#allocation3], 0  ;;  %s12165_s0 = inlined_call_operand.vmem [shape: f32[2,256,208], index: 0, kind: input, shape index: {}]   ;;  %s12166_s1 = inlined_call_operand.vmem [shape: f32[208,256], index: 1, kind: input, shape index: {}]   ;;  %s12167_s2 = inlined_call_operand.vmem [shape: f32[256,128], index: 2, kind: input, shape index: {}]   ;;  %s12168_s3 = inlined_call_operand.vmem [shape: f32[1,128], index: 3, kind: input, shape index: {}]   ;;  %s12169_s4 = inlined_call_operand.vmem [shape: f32[128,64], index: 4, kind: input, shape index: {}]   ;;  %s12170_s5 = inlined_call_operand.vmem [shape: f32[1,64], index: 5, kind: input, shape index: {}]   ;;  %s12171_s6 = inlined_call_operand.vmem [shape: f32[4096,128], index: 6, kind: input, shape index: {}]   ;;  %s12172_s7 = inlined_call_operand.vmem [shape: f32[1,128], index: 7, kind: input, shape index: {}]   ;;  %s12173_s8 = inlined_call_operand.hbm [shape: f32[2,4,128], index: 8, kind: output, shape index: {}]  }
   0x1   :  { %15 = vsyncpa [#allocation3 + $0x1], 0  ;;  %s8922_s27 = smov 0   ;;  %s8924_s28 = smov 0  }
   0x2   :  { %s8926_s29 = smov 0   ;;  %s8928_s30 = smov 0  }
   0x3 LB: > { %s8943_s9 = sadd.s32 4294967295, %s8872_s30   ;;  %s6737_s10 = sadd.s32 4294967294, %s8872_s30   ;;  %s8872_s30 = sphi %s8928_s30, %s12179_s30   ;;  %s8868_s29 = sphi %s8926_s29, %s12178_s29   ;;  %s8864_s28 = sphi %s8924_s28, %s12177_s28   ;;  %s8860_s27 = sphi %s8922_s27, %s12176_s27  }
   0x4   : > { %s8947_s11 = sadd.s32 1, %s8872_s30   ;;  %s201_s12 = sadd.s32 1, %s8868_s29 }
   0x5   : > { %s198_s13 = ssub.s32 %s8872_s30, %s8947_s11  ;;  %p211_p0 = scmp.ne.s32.totalorder %s8868_s29, %s8864_s28 }
   0x6   : > { %p199_p1 = scmp.eq.s32.totalorder %s198_s13, 0  ;;  %p212_p2 = scmp.eq.s32.totalorder %s8943_s9, 1 }
   0x7   : > { %p217_p3 = scmp.ne.s32.totalorder %s8864_s28, %s8860_s27  ;;  %p218_p4 = scmp.eq.s32.totalorder %s6737_s10, 1 }
   0x8   : > { %s8958_s14 = scalar_select %p199_p1, %s8868_s29, %s201_s12  }
   0x9   : > { %p8960_p5 = por %p212_p2, %p211_p0  ;;  %p8964_p6 = por %p218_p4, %p217_p3 }
   0xa   : > { %p6740_p7 = scmp.ge.s32.totalorder %s8872_s30, 1  ;;  %p265_p8 = scmp.lt.s32.totalorder %s8872_s30, 3 }
   0xc   : > { %p266_p9 = pnand %p6740_p7, %p265_p8 }
   0xd   : > { %p299_p10 = scmp.lt.s32.totalorder (!%p266_p9), %s8943_s9, 1  ;;  %s296_s21 = sand.u32 (!%p266_p9), 1, %s8864_s28  }
   0xe   : > { %269 = sbr.rel (%p266_p9) target bundleno = 1488 (0x5d0), region = 52  ;;  %s6741_s22 = sshll.u32 (!%p266_p9), %s296_s21, 2 }
   0xf   : > { %s6844_s25 = sshll.u32 (!%p266_p9), %s8943_s9, 6  ;;  %s298_s26 = scalar_lea.vmem (!%p266_p9), [#allocation2], %s6741_s22 }
  0x10   : > { %s6678_s10 = sshll.u32 (!%p266_p9), %s298_s26, 4  ;;  %s8876_s19 = smov (!%p266_p9), [#allocation2]   ;;  %s6679_s10 = int_to_ptr.vmem [resolvable:$true] %s6678_s10 }
  0x11   : > { %s8812_s18 = scalar_lea.vmem (!%p266_p9), %s6679_s10, 64  ;;  %s8816_s23 = sshll.u32 (!%p266_p9), %s8876_s19, 4  ;;  %s8817_s23 = int_to_ptr.vmem [resolvable:$false] %s8816_s23 }
  0x12   : > { %p8813_p11 = scmp.ne.s32.totalorder (!%p266_p9), %s6679_s10, %s8812_s18  ;;  %p8819_p0 = scmp.lt.s32.totalorder (!%p266_p9), %s6679_s10, %s8817_s23 }
  0x13   : > { %v399_v0 = vld [vmem:[%s12166_s1 + $0xf8] sm:$0xff]  ;;  %v398_v1 = vld [vmem:[%s12166_s1 + $0xf0] sm:$0xff]  ;;  %v397_v2 = vld [vmem:[%s12166_s1 + $0xe8] sm:$0xff]  ;;  %v8874_v4 = vmov 0.0   ;;  %s300_s24 = scalar_select %p299_p10, %s8943_s9, 1  ;;  %vm420_vm0 = vcmask 654336  }
  0x14   : > { %517 = vmatprep.subr.mxu0 %v399_v0  ;;  %v396_v3 = vld [vmem:[%s12166_s1 + $0xe0] sm:$0xff]  ;;  %877 = vmatprep.subr.mxu1 %v8874_v4  ;;  %v395_v5 = vld [vmem:[%s12166_s1 + $0xd8] sm:$0xff]  ;;  %v394_v6 = vld [vmem:[%s12166_s1 + $0xd0] sm:$0xff]  ;;  %vm8875_vm1 = vmmov 0   ;;  %vm1486_vm2 = vcmask 523264   ;;  %p8814_p12 = pnand %p8813_p11, %p8960_p5  ;;  %s8818_s9 = scalar_lea.vmem %s8817_s23, 128 }
  0x15   : > { %518 = vmatpush1.msra.mxu0 %v398_v1  ;;  %v393_v7 = vld [vmem:[%s12166_s1 + $0xc8] sm:$0xff]  ;;  %v392_v8 = vld [vmem:[%s12166_s1 + $0xc0] sm:$0xff]  ;;  %v391_v9 = vld [vmem:[%s12166_s1 + $0xb8] sm:$0xff]  ;;  %s6847_s20 = sshll.u32 %s300_s24, 9  ;;  %s6665_s24 = scalar_lea.sflag [#allocation3], %s296_s21 }
  0x16   : > { %519 = vmatprep.subr.mxu0 %v397_v2  ;;  %v390_v10 = vld [vmem:[%s12166_s1 + $0xb0] sm:$0xff]  ;;  %v389_v11 = vld [vmem:[%s12166_s1 + $0xa8] sm:$0xff]  ;;  %v388_v12 = vld [vmem:[%s12166_s1 + $0xa0] sm:$0xff]  ;;  %s9027_s17 = scalar_lea.vmem %s12165_s0, %s6847_s20  ;;  %p8815_p13 = pneg %p8814_p12 }
  0x17   : > { %520 = vmatpush1.msra.mxu0 %v396_v3  ;;  %v387_v13 = vld [vmem:[%s12166_s1 + $0x98] sm:$0xff]  ;;  %v386_v14 = vld [vmem:[%s12166_s1 + $0x90] sm:$0xff]  ;;  %v385_v15 = vld [vmem:[%s12166_s1 + $0x88] sm:$0xff]  ;;  %p8820_p1 = scmp.lt.s32.totalorder %s8818_s9, %s8812_s18 }
  0x18   : > { %521 = vmatprep.subr.mxu0 %v395_v5  ;;  %v384_v16 = vld [vmem:[%s12166_s1 + $0x80] sm:$0xff]  ;;  %v383_v17 = vld [vmem:[%s12166_s1 + $0x78] sm:$0xff]  ;;  %v382_v18 = vld [vmem:[%s12166_s1 + $0x70] sm:$0xff] }
  0x19   : > { %522 = vmatpush1.msra.mxu0 %v394_v6  ;;  %v381_v19 = vld [vmem:[%s12166_s1 + $0x68] sm:$0xff]  ;;  %v380_v20 = vld [vmem:[%s12166_s1 + $0x60] sm:$0xff]  ;;  %v379_v22 = vld [vmem:[%s12166_s1 + $0x58] sm:$0xff]  ;;  %p8821_p2 = por %p8820_p1, %p8819_p0 }
  0x1a   : > { %523 = vmatprep.subr.mxu0 %v393_v7  ;;  %v305_v21 = vld [vmem:[%s9027_s17 + $0x8] sm:$0xff]  ;;  %v378_v23 = vld [vmem:[%s12166_s1 + $0x50] sm:$0xff]  ;;  %v376_v25 = vld [vmem:[%s12166_s1 + $0x40] sm:$0xff] }
  0x1b   : > { %524 = vmatpush1.msra.mxu0 %v392_v8  ;;  %6744 = vmatprep.mubr.msk.f32.mxu0 %vm420_vm0, %v305_v21  ;;  %v377_v24 = vld [vmem:[%s12166_s1 + $0x48] sm:$0xff]  ;;  %v375_v26 = vld [vmem:[%s12166_s1 + $0x38] sm:$0xff]  ;;  %v374_v27 = vld [vmem:[%s12166_s1 + $0x30] sm:$0xff]  ;;  %p8822_p3 = pnand %p8821_p2, %p8815_p13 }
  0x1c   : > { %525 = vmatprep.subr.mxu0 %v391_v9  ;;  %v373_v28 = vld [vmem:[%s12166_s1 + $0x28] sm:$0xff]  ;;  %v372_v29 = vld [vmem:[%s12166_s1 + $0x20] sm:$0xff]  ;;  %v853_v30 = vld [vmem:[%s12167_s2 + $0x78] sm:$0xff] }
  0x1d   : > { %526 = vmatpush1.msra.mxu0 %v390_v10  ;;  %v371_v31 = vld [vmem:[%s12166_s1 + $0x18] sm:$0xff]  ;;  %878 = vmatpush1.msra.mxu1 %v853_v30  ;;  %v852_v32 = vld [vmem:[%s12167_s2 + $0x70] sm:$0xff]  ;;  %v851_v34 = vld [vmem:[%s12167_s2 + $0x68] sm:$0xff] }
  0x1e   : > { %527 = vmatprep.subr.mxu0 %v389_v11  ;;  %v370_v33 = vld [vmem:[%s12166_s1 + $0x10] sm:$0xff]  ;;  %879 = vmatprep.subr.mxu1 %v8874_v4  ;;  %v369_v35 = vld [vmem:[%s12166_s1 + $0x8] sm:$0xff]  ;;  %v368_v36 = vld [vmem:[%s12166_s1] sm:$0xff] }
  0x1f   : > { %528 = vmatpush1.msra.mxu0 %v388_v12  ;;  %880 = vmatpush1.msra.mxu1 %v852_v32  ;;  %v850_v37 = vld [vmem:[%s12167_s2 + $0x60] sm:$0xff]  ;;  %v419_v38 = vld [vmem:[%s12166_s1 + $0x198] sm:$0xff]  ;;  %v418_v39 = vld [vmem:[%s12166_s1 + $0x190] sm:$0xff] }
  0x20   : > { %529 = vmatprep.subr.mxu0 %v387_v13  ;;  %881 = vmatprep.subr.mxu1 %v8874_v4  ;;  %v849_v40 = vld [vmem:[%s12167_s2 + $0x58] sm:$0xff]  ;;  %v417_v41 = vld [vmem:[%s12166_s1 + $0x188] sm:$0xff]  ;;  %v416_v42 = vld [vmem:[%s12166_s1 + $0x180] sm:$0xff] }
  0x21   : > { %530 = vmatpush1.msra.mxu0 %v386_v14  ;;  %882 = vmatpush1.msra.mxu1 %v851_v34  ;;  %v848_v43 = vld [vmem:[%s12167_s2 + $0x50] sm:$0xff]  ;;  %v415_v44 = vld [vmem:[%s12166_s1 + $0x178] sm:$0xff]  ;;  %v847_v46 = vld [vmem:[%s12167_s2 + $0x48] sm:$0xff] }
  0x22   : > { %531 = vmatprep.subr.mxu0 %v385_v15  ;;  %883 = vmatprep.subr.mxu1 %v8874_v4  ;;  %v414_v45 = vld [vmem:[%s12166_s1 + $0x170] sm:$0xff]  ;;  %v413_v47 = vld [vmem:[%s12166_s1 + $0x168] sm:$0xff]  ;;  %v412_v48 = vld [vmem:[%s12166_s1 + $0x160] sm:$0xff] }
  0x23   : > { %532 = vmatpush1.msra.mxu0 %v384_v16  ;;  %884 = vmatpush1.msra.mxu1 %v850_v37  ;;  %v846_v49 = vld [vmem:[%s12167_s2 + $0x40] sm:$0xff]  ;;  %v411_v50 = vld [vmem:[%s12166_s1 + $0x158] sm:$0xff]  ;;  %v410_v51 = vld [vmem:[%s12166_s1 + $0x150] sm:$0xff] }
  0x24   : > { %533 = vmatprep.subr.mxu0 %v383_v17  ;;  %885 = vmatprep.subr.mxu1 %v8874_v4  ;;  %v845_v52 = vld [vmem:[%s12167_s2 + $0x38] sm:$0xff]  ;;  %v409_v53 = vld [vmem:[%s12166_s1 + $0x148] sm:$0xff]  ;;  %v408_v54 = vld [vmem:[%s12166_s1 + $0x140] sm:$0xff] }
  0x25   : > { %534 = vmatpush1.msra.mxu0 %v382_v18  ;;  %886 = vmatpush1.msra.mxu1 %v849_v40  ;;  %v844_v55 = vld [vmem:[%s12167_s2 + $0x30] sm:$0xff]  ;;  %v407_v56 = vld [vmem:[%s12166_s1 + $0x138] sm:$0xff]  ;;  %v843_v58 = vld [vmem:[%s12167_s2 + $0x28] sm:$0xff] }
  0x26   : > { %535 = vmatprep.subr.mxu0 %v381_v19  ;;  %887 = vmatprep.subr.mxu1 %v8874_v4  ;;  %v406_v57 = vld [vmem:[%s12166_s1 + $0x130] sm:$0xff]  ;;  %v405_v59 = vld [vmem:[%s12166_s1 + $0x128] sm:$0xff]  ;;  %v404_v60 = vld [vmem:[%s12166_s1 + $0x120] sm:$0xff] }
  0x27   : > { %536 = vmatpush1.msra.mxu0 %v380_v20  ;;  %888 = vmatpush1.msra.mxu1 %v848_v43  ;;  %v842_v61 = vld [vmem:[%s12167_s2 + $0x20] sm:$0xff]  ;;  %v403_v62 = vld [vmem:[%s12166_s1 + $0x118] sm:$0xff]  ;;  %v402_v63 = vld [vmem:[%s12166_s1 + $0x110] sm:$0xff] }
  0x28   : > { %537 = vmatprep.subr.mxu0 %v379_v22  ;;  %889 = vmatprep.subr.mxu1 %v8874_v4  ;;  %v841_v0 = vld [vmem:[%s12167_s2 + $0x18] sm:$0xff]  ;;  %v401_v1 = vld [vmem:[%s12166_s1 + $0x108] sm:$0xff]  ;;  %v400_v2 = vld [vmem:[%s12166_s1 + $0x100] sm:$0xff] }
  0x29   : > { %538 = vmatpush1.msra.mxu0 %v378_v23  ;;  %890 = vmatpush1.msra.mxu1 %v847_v46  ;;  %v840_v3 = vld [vmem:[%s12167_s2 + $0x10] sm:$0xff]  ;;  %v304_v5 = vld [vmem:[%s9027_s17] sm:$0xff]  ;;  %v307_v6 = vld [vmem:[%s9027_s17 + $0x18] sm:$0xff] }
  0x2a   : > { %539 = vmatprep.subr.mxu0 %v377_v24  ;;  %891 = vmatprep.subr.mxu1 %v8874_v4  ;;  %v839_v7 = vld [vmem:[%s12167_s2 + $0x8] sm:$0xff]  ;;  %v838_v8 = vld [vmem:[%s12167_s2] sm:$0xff]  ;;  %v306_v9 = vld [vmem:[%s9027_s17 + $0x10] sm:$0xff] }
  0x2b   : > { %540 = vmatpush1.msra.mxu0 %v376_v25  ;;  %892 = vmatpush1.msra.mxu1 %v846_v49  ;;  %v309_v10 = vld [vmem:[%s9027_s17 + $0x28] sm:$0xff]  ;;  %v869_v11 = vld [vmem:[%s12167_s2 + $0xf8] sm:$0xff]  ;;  %v868_v12 = vld [vmem:[%s12167_s2 + $0xf0] sm:$0xff] }
  0x2c   : > { %541 = vmatprep.subr.mxu0 %v375_v26  ;;  %893 = vmatprep.subr.mxu1 %v8874_v4  ;;  %v308_v13 = vld [vmem:[%s9027_s17 + $0x20] sm:$0xff]  ;;  %v311_v14 = vld [vmem:[%s9027_s17 + $0x38] sm:$0xff]  ;;  %v867_v15 = vld [vmem:[%s12167_s2 + $0xe8] sm:$0xff] }
  0x2d   : > { %542 = vmatpush1.msra.mxu0 %v374_v27  ;;  %894 = vmatpush1.msra.mxu1 %v845_v52  ;;  %v866_v16 = vld [vmem:[%s12167_s2 + $0xe0] sm:$0xff]  ;;  %v310_v17 = vld [vmem:[%s9027_s17 + $0x30] sm:$0xff]  ;;  %v313_v18 = vld [vmem:[%s9027_s17 + $0x48] sm:$0xff] }
  0x2e   : > { %543 = vmatprep.subr.mxu0 %v373_v28  ;;  %895 = vmatprep.subr.mxu1 %v8874_v4  ;;  %v865_v19 = vld [vmem:[%s12167_s2 + $0xd8] sm:$0xff]  ;;  %v864_v20 = vld [vmem:[%s12167_s2 + $0xd0] sm:$0xff]  ;;  %v312_v21 = vld [vmem:[%s9027_s17 + $0x40] sm:$0xff] }
  0x2f   : > { %544 = vmatpush1.msra.mxu0 %v372_v29  ;;  %896 = vmatpush1.msra.mxu1 %v844_v55  ;;  %v315_v22 = vld [vmem:[%s9027_s17 + $0x58] sm:$0xff]  ;;  %v863_v23 = vld [vmem:[%s12167_s2 + $0xc8] sm:$0xff]  ;;  %v862_v24 = vld [vmem:[%s12167_s2 + $0xc0] sm:$0xff] }
  0x30   : > { %545 = vmatprep.subr.mxu0 %v371_v31  ;;  %897 = vmatprep.subr.mxu1 %v8874_v4  ;;  %v314_v25 = vld [vmem:[%s9027_s17 + $0x50] sm:$0xff]  ;;  %v317_v26 = vld [vmem:[%s9027_s17 + $0x68] sm:$0xff]  ;;  %v861_v27 = vld [vmem:[%s12167_s2 + $0xb8] sm:$0xff] }
  0x31   : > { %546 = vmatpush1.msra.mxu0 %v370_v33  ;;  %898 = vmatpush1.msra.mxu1 %v843_v58  ;;  %v860_v28 = vld [vmem:[%s12167_s2 + $0xb0] sm:$0xff]  ;;  %v316_v29 = vld [vmem:[%s9027_s17 + $0x60] sm:$0xff]  ;;  %v319_v30 = vld [vmem:[%s9027_s17 + $0x78] sm:$0xff] }
  0x32   : > { %547 = vmatprep.subr.mxu0 %v369_v35  ;;  %899 = vmatprep.subr.mxu1 %v8874_v4  ;;  %v859_v31 = vld [vmem:[%s12167_s2 + $0xa8] sm:$0xff]  ;;  %v858_v32 = vld [vmem:[%s12167_s2 + $0xa0] sm:$0xff]  ;;  %v318_v33 = vld [vmem:[%s9027_s17 + $0x70] sm:$0xff] }
  0x33   : > { %548 = vmatpush1.msra.mxu0 %v368_v36  ;;  %900 = vmatpush1.msra.mxu1 %v842_v61  ;;  %v321_v34 = vld [vmem:[%s9027_s17 + $0x88] sm:$0xff]  ;;  %v857_v35 = vld [vmem:[%s12167_s2 + $0x98] sm:$0xff]  ;;  %v320_v36 = vld [vmem:[%s9027_s17 + $0x80] sm:$0xff] }
  0x34   : > { %561 = vmatprep.subr.mxu0 %v419_v38  ;;  %901 = vmatprep.subr.mxu1 %v8874_v4  ;;  %v323_v37 = vld [vmem:[%s9027_s17 + $0x98] sm:$0xff]  ;;  %v322_v38 = vld [vmem:[%s9027_s17 + $0x90] sm:$0xff]  ;;  %v324_v40 = vld [vmem:[%s9027_s17 + $0xa0] sm:$0xff] }
  0x35   : > { %562 = vmatpush2.msra.mxu0 %v418_v39  ;;  %902 = vmatpush1.msra.mxu1 %v841_v0  ;;  %v325_v39 = vld [vmem:[%s9027_s17 + $0xa8] sm:$0xff]  ;;  %v330_v46 = vld [vmem:[%s9027_s17 + $0xd0] sm:$0xff]  ;;  %v335_v49 = vld [vmem:[%s9027_s17 + $0xf8] sm:$0xff] }
  0x36   : > { %563 = vmatprep.subr.mxu0 %v417_v41  ;;  %903 = vmatprep.subr.mxu1 %v8874_v4  ;;  %v327_v41 = vld [vmem:[%s9027_s17 + $0xb8] sm:$0xff]  ;;  %v329_v43 = vld [vmem:[%s9027_s17 + $0xc8] sm:$0xff]  ;;  %v336_v52 = vld [vmem:[%s9027_s17 + $0x100] sm:$0xff] }
  0x37   : > { %564 = vmatpush2.msra.mxu0 %v416_v42  ;;  %904 = vmatpush1.msra.mxu1 %v840_v3  ;;  %v326_v42 = vld [vmem:[%s9027_s17 + $0xb0] sm:$0xff]  ;;  %v854_v58 = vld [vmem:[%s12167_s2 + $0x80] sm:$0xff]  ;;  %v347_v0 = vld [vmem:[%s9027_s17 + $0x158] sm:$0xff] }
  0x38   : > { %565 = vmatprep.subr.mxu0 %v415_v44  ;;  %905 = vmatprep.subr.mxu1 %v8874_v4  ;;  %v328_v44 = vld [vmem:[%s9027_s17 + $0xc0] sm:$0xff]  ;;  %v338_v55 = vld [vmem:[%s9027_s17 + $0x110] sm:$0xff] }
  0x39   : > { %566 = vmatpush2.msra.mxu0 %v414_v45  ;;  %906 = vmatpush1.msra.mxu1 %v839_v7  ;;  %v331_v45 = vld [vmem:[%s9027_s17 + $0xd8] sm:$0xff]  ;;  %v342_v61 = vld [vmem:[%s9027_s17 + $0x130] sm:$0xff]  ;;  %v348_v3 = vld [vmem:[%s9027_s17 + $0x160] sm:$0xff] }
  0x3a   : > { %567 = vmatprep.subr.mxu0 %v413_v47  ;;  %907 = vmatprep.subr.mxu1 %v8874_v4  ;;  %v333_v47 = vld [vmem:[%s9027_s17 + $0xe8] sm:$0xff] }
  0x3b   : > { %568 = vmatpush2.msra.mxu0 %v412_v48  ;;  %908 = vmatpush1.msra.mxu1 %v838_v8  ;;  %v332_v48 = vld [vmem:[%s9027_s17 + $0xe0] sm:$0xff]  ;;  %v353_v7 = vld [vmem:[%s9027_s17 + $0x188] sm:$0xff] }
  0x3c   : > { %569 = vmatprep.subr.mxu0 %v411_v50  ;;  %909 = vmatprep.subr.mxu1 %v8874_v4  ;;  %v334_v50 = vld [vmem:[%s9027_s17 + $0xf0] sm:$0xff]  ;;  %v352_v8 = vld [vmem:[%s9027_s17 + $0x180] sm:$0xff] }
  0x3d   : > { %570 = vmatpush2.msra.mxu0 %v410_v51  ;;  %910 = vmatpush2.msra.mxu1 %v869_v11  ;;  %v337_v51 = vld [vmem:[%s9027_s17 + $0x108] sm:$0xff] }
  0x3e   : > { %571 = vmatprep.subr.mxu0 %v409_v53  ;;  %911 = vmatprep.subr.mxu1 %v8874_v4  ;;  %v339_v53 = vld [vmem:[%s9027_s17 + $0x118] sm:$0xff]  ;;  %v357_v11 = vld [vmem:[%s9027_s17 + $0x1a8] sm:$0xff] }
  0x3f   : > { %572 = vmatpush2.msra.mxu0 %v408_v54  ;;  %912 = vmatpush2.msra.mxu1 %v868_v12  ;;  %v856_v54 = vld [vmem:[%s12167_s2 + $0x90] sm:$0xff]  ;;  %v1149_v12 = vld [vmem:[%s12169_s4 + $0x78] sm:$0xff] }
  0x40   : > { %573 = vmatprep.subr.mxu0 %v407_v56  ;;  %913 = vmatprep.subr.mxu1 %v8874_v4  ;;  %v341_v56 = vld [vmem:[%s9027_s17 + $0x128] sm:$0xff] }
  0x41   : > { %574 = vmatpush2.msra.mxu0 %v406_v57  ;;  %914 = vmatpush2.msra.mxu1 %v867_v15  ;;  %v855_v57 = vld [vmem:[%s12167_s2 + $0x88] sm:$0xff] }
  0x42   : > { %575 = vmatprep.subr.mxu0 %v405_v59  ;;  %915 = vmatprep.subr.mxu1 %v8874_v4  ;;  %v340_v59 = vld [vmem:[%s9027_s17 + $0x120] sm:$0xff]  ;;  %v1147_v15 = vld [vmem:[%s12169_s4 + $0x68] sm:$0xff] }
  0x43   : > { %576 = vmatpush2.msra.mxu0 %v404_v60  ;;  %916 = vmatpush2.msra.mxu1 %v866_v16  ;;  %v343_v60 = vld [vmem:[%s9027_s17 + $0x138] sm:$0xff] }
  0x44   : > { %577 = vmatprep.subr.mxu0 %v403_v62  ;;  %917 = vmatprep.subr.mxu1 %v8874_v4  ;;  %v345_v62 = vld [vmem:[%s9027_s17 + $0x148] sm:$0xff]  ;;  %v359_v16 = vld [vmem:[%s9027_s17 + $0x1b8] sm:$0xff] }
  0x45   : > { %578 = vmatpush2.msra.mxu0 %v402_v63  ;;  %918 = vmatpush2.msra.mxu1 %v865_v19  ;;  %v344_v63 = vld [vmem:[%s9027_s17 + $0x140] sm:$0xff]  ;;  %v1145_v19 = vld [vmem:[%s12169_s4 + $0x58] sm:$0xff] }
  0x46   : > { %579 = vmatprep.subr.mxu0 %v401_v1  ;;  %919 = vmatprep.subr.mxu1 %v8874_v4  ;;  %v346_v1 = vld [vmem:[%s9027_s17 + $0x150] sm:$0xff] }
  0x47   : > { %580 = vmatpush2.msra.mxu0 %v400_v2  ;;  %920 = vmatpush2.msra.mxu1 %v864_v20  ;;  %v349_v2 = vld [vmem:[%s9027_s17 + $0x168] sm:$0xff] }
  0x48   : > { %582 = vmatmul.mubr.f32.vlgmr.msra.gmra.mxu0 %v304_v5  ;;  %921 = vmatprep.subr.mxu1 %v8874_v4  ;;  %v351_v5 = vld [vmem:[%s9027_s17 + $0x178] sm:$0xff]  ;;  %v361_v20 = vld [vmem:[%s9027_s17 + $0x1c8] sm:$0xff] }
  0x49   : > { %6745 = vmatprep.mubr.msk.f32.mxu0 %vm420_vm0, %v307_v6  ;;  %922 = vmatpush2.msra.mxu1 %v863_v23  ;;  %v350_v6 = vld [vmem:[%s9027_s17 + $0x170] sm:$0xff]  ;;  %v1143_v23 = vld [vmem:[%s12169_s4 + $0x48] sm:$0xff] }
  0x4a   : > { %923 = vmatprep.subr.mxu1 %v8874_v4  ;;  %7472 = vmatprep.subr.mxu0 %v1149_v12 }
  0x4b   : > { %924 = vmatpush2.msra.mxu1 %v862_v24  ;;  %7473 = vmatpush3.msra.mxu0 %v1149_v12  ;;  %v363_v24 = vld [vmem:[%s9027_s17 + $0x1d8] sm:$0xff] }
  0x4c   : > { %588 = vmatmul.mubr.f32.gmra.mxu0 %v306_v9  ;;  %925 = vmatprep.subr.mxu1 %v8874_v4  ;;  %v355_v9 = vld [vmem:[%s9027_s17 + $0x198] sm:$0xff] }
  0x4d   : > { %6746 = vmatprep.mubr.msk.f32.mxu0 %vm420_vm0, %v309_v10  ;;  %926 = vmatpush2.msra.mxu1 %v861_v27  ;;  %v354_v10 = vld [vmem:[%s9027_s17 + $0x190] sm:$0xff]  ;;  %v364_v27 = vld [vmem:[%s9027_s17 + $0x1e0] sm:$0xff] }
  0x4e   : > { %927 = vmatprep.subr.mxu1 %v8874_v4 }
  0x4f   : > { %928 = vmatpush2.msra.mxu1 %v860_v28  ;;  %v1142_v28 = vld [vmem:[%s12169_s4 + $0x40] sm:$0xff] }
  0x50   : > { %594 = vmatmul.mubr.f32.gmra.mxu0 %v308_v13  ;;  %929 = vmatprep.subr.mxu1 %v8874_v4  ;;  %v1148_v13 = vld [vmem:[%s12169_s4 + $0x70] sm:$0xff] }
  0x51   : > { %6747 = vmatprep.mubr.msk.f32.mxu0 %vm420_vm0, %v311_v14  ;;  %930 = vmatpush2.msra.mxu1 %v859_v31  ;;  %v356_v14 = vld [vmem:[%s9027_s17 + $0x1a0] sm:$0xff]  ;;  %v1141_v31 = vld [vmem:[%s12169_s4 + $0x38] sm:$0xff] }
  0x52   : > { %931 = vmatprep.subr.mxu1 %v8874_v4  ;;  %7474 = vmatprep.subr.mxu0 %v1148_v13 }
  0x53   : > { %932 = vmatpush2.msra.mxu1 %v858_v32  ;;  %7475 = vmatpush3.msra.mxu0 %v1148_v13  ;;  %v1140_v32 = vld [vmem:[%s12169_s4 + $0x30] sm:$0xff] }
  0x54   : > { %600 = vmatmul.mubr.f32.gmra.mxu0 %v310_v17  ;;  %933 = vmatprep.subr.mxu1 %v8874_v4  ;;  %v1146_v17 = vld [vmem:[%s12169_s4 + $0x60] sm:$0xff] }
  0x55   : > { %6748 = vmatprep.mubr.msk.f32.mxu0 %vm420_vm0, %v313_v18  ;;  %934 = vmatpush2.msra.mxu1 %v857_v35  ;;  %v358_v18 = vld [vmem:[%s9027_s17 + $0x1b0] sm:$0xff]  ;;  %v1137_v35 = vld [vmem:[%s12169_s4 + $0x18] sm:$0xff] }
  0x56   : > { %935 = vmatprep.subr.mxu1 %v8874_v4  ;;  %7476 = vmatprep.subr.mxu0 %v1147_v15 }
  0x57   : > { %936 = vmatpush2.msra.mxu1 %v856_v54  ;;  %7477 = vmatpush3.msra.mxu0 %v1147_v15 }
  0x58   : > { %606 = vmatmul.mubr.f32.gmra.mxu0 %v312_v21  ;;  %937 = vmatprep.subr.mxu1 %v8874_v4  ;;  %v1144_v21 = vld [vmem:[%s12169_s4 + $0x50] sm:$0xff] }
  0x59   : > { %6749 = vmatprep.mubr.msk.f32.mxu0 %vm420_vm0, %v315_v22  ;;  %938 = vmatpush2.msra.mxu1 %v855_v57  ;;  %v360_v22 = vld [vmem:[%s9027_s17 + $0x1c0] sm:$0xff] }
  0x5a   : > { %939 = vmatprep.subr.mxu1 %v8874_v4  ;;  %7478 = vmatprep.subr.mxu0 %v1146_v17 }
  0x5b   : > { %940 = vmatpush2.msra.mxu1 %v854_v58  ;;  %7479 = vmatpush3.msra.mxu0 %v1146_v17 }
  0x5c   : > { %612 = vmatmul.mubr.f32.gmra.mxu0 %v314_v25  ;;  %7552 = vmatprep.subr.mxu1 %v8874_v4  ;;  %v362_v25 = vld [vmem:[%s9027_s17 + $0x1d0] sm:$0xff] }
  0x5d   : > { %6750 = vmatprep.mubr.msk.f32.mxu0 %vm420_vm0, %v317_v26  ;;  %7480 = vmatprep.subr.mxu0 %v1145_v19  ;;  %v365_v26 = vld [vmem:[%s9027_s17 + $0x1e8] sm:$0xff] }
  0x5e   : > { %7481 = vmatpush3.msra.mxu0 %v1145_v19 }
  0x5f   : > { %7482 = vmatprep.subr.mxu0 %v1144_v21 }
  0x60   : > { %618 = vmatmul.mubr.f32.gmra.mxu0 %v316_v29  ;;  %v367_v29 = vld [vmem:[%s9027_s17 + $0x1f8] sm:$0xff] }
  0x61   : > { %6751 = vmatprep.mubr.msk.f32.mxu0 %vm420_vm0, %v319_v30  ;;  %7483 = vmatpush3.msra.mxu0 %v1144_v21  ;;  %v366_v30 = vld [vmem:[%s9027_s17 + $0x1f0] sm:$0xff]  ;;  %s6676_s17 = scalar_lea.hbm %s12173_s8, %s6844_s25 }
  0x62   : > { %7484 = vmatprep.subr.mxu0 %v1143_v23 }
  0x63   : > { %7485 = vmatpush3.msra.mxu0 %v1143_v23 }
  0x64   : > { %624 = vmatmul.mubr.f32.gmra.mxu0 %v318_v33  ;;  %7486 = vmatprep.subr.mxu0 %v1142_v28  ;;  %v1139_v33 = vld [vmem:[%s12169_s4 + $0x28] sm:$0xff] }
  0x65   : > { %6752 = vmatprep.mubr.msk.f32.mxu0 %vm420_vm0, %v321_v34  ;;  %7487 = vmatpush3.msra.mxu0 %v1142_v28  ;;  %v1138_v34 = vld [vmem:[%s12169_s4 + $0x20] sm:$0xff] }
  0x66   : > { %7488 = vmatprep.subr.mxu0 %v1141_v31 }
  0x67   : > { %7489 = vmatpush3.msra.mxu0 %v1141_v31 }
  0x68   : > { %630 = vmatmul.mubr.f32.gmra.mxu0 %v320_v36  ;;  %7490 = vmatprep.subr.mxu0 %v1140_v32  ;;  %v1136_v36 = vld [vmem:[%s12169_s4 + $0x10] sm:$0xff] }
  0x69   : > { %6753 = vmatprep.mubr.msk.f32.mxu0 %vm420_vm0, %v323_v37  ;;  %7491 = vmatpush3.msra.mxu0 %v1140_v32 }
  0x6a   : > { %7492 = vmatprep.subr.mxu0 %v1139_v33 }
  0x6b   : > { %7493 = vmatpush3.msra.mxu0 %v1139_v33 }
  0x6c   : > { %636 = vmatmul.mubr.f32.gmra.mxu0 %v322_v38  ;;  %7494 = vmatprep.subr.mxu0 %v1138_v34 }
  0x6d   : > { %6754 = vmatprep.mubr.msk.f32.mxu0 %vm420_vm0, %v325_v39  ;;  %7495 = vmatpush3.msra.mxu0 %v1138_v34 }
  0x6e   : > { %7496 = vmatprep.subr.mxu0 %v1137_v35 }
  0x6f   : > { %7497 = vmatpush3.msra.mxu0 %v1137_v35 }
  0x70   : > { %642 = vmatmul.mubr.f32.gmra.mxu0 %v324_v40  ;;  %7498 = vmatprep.subr.mxu0 %v1136_v36 }
  0x71   : > { %6755 = vmatprep.mubr.msk.f32.mxu0 %vm420_vm0, %v327_v41  ;;  %7499 = vmatpush3.msra.mxu0 %v1136_v36 }
  0x74   : > { %648 = vmatmul.mubr.f32.gmra.mxu0 %v326_v42 }
  0x75   : > { %6756 = vmatprep.mubr.msk.f32.mxu0 %vm420_vm0, %v329_v43 }
  0x78   : > { %654 = vmatmul.mubr.f32.gmra.mxu0 %v328_v44 }
  0x79   : > { %6757 = vmatprep.mubr.msk.f32.mxu0 %vm420_vm0, %v331_v45 }
  0x7c   : > { %660 = vmatmul.mubr.f32.gmra.mxu0 %v330_v46 }
  0x7d   : > { %6758 = vmatprep.mubr.msk.f32.mxu0 %vm420_vm0, %v333_v47 }
  0x80   : > { %666 = vmatmul.mubr.f32.gmra.mxu0 %v332_v48 }
  0x81   : > { %6759 = vmatprep.mubr.msk.f32.mxu0 %vm420_vm0, %v335_v49 }
  0x84   : > { %672 = vmatmul.mubr.f32.gmra.mxu0 %v334_v50 }
  0x85   : > { %6760 = vmatprep.mubr.msk.f32.mxu0 %vm420_vm0, %v337_v51 }
  0x88   : > { %678 = vmatmul.mubr.f32.gmra.mxu0 %v336_v52 }
  0x89   : > { %6761 = vmatprep.mubr.msk.f32.mxu0 %vm420_vm0, %v339_v53 }
  0x8c   : > { %684 = vmatmul.mubr.f32.gmra.mxu0 %v338_v55 }
  0x8d   : > { %6762 = vmatprep.mubr.msk.f32.mxu0 %vm420_vm0, %v341_v56 }
  0x90   : > { %690 = vmatmul.mubr.f32.gmra.mxu0 %v340_v59 }
  0x91   : > { %6763 = vmatprep.mubr.msk.f32.mxu0 %vm420_vm0, %v343_v60 }
  0x94   : > { %696 = vmatmul.mubr.f32.gmra.mxu0 %v342_v61 }
  0x95   : > { %6764 = vmatprep.mubr.msk.f32.mxu0 %vm420_vm0, %v345_v62 }
  0x98   : > { %702 = vmatmul.mubr.f32.gmra.mxu0 %v344_v63 }
  0x99   : > { %6765 = vmatprep.mubr.msk.f32.mxu0 %vm420_vm0, %v347_v0 }
  0x9c   : > { %708 = vmatmul.mubr.f32.gmra.mxu0 %v346_v1 }
  0x9d   : > { %6766 = vmatprep.mubr.msk.f32.mxu0 %vm420_vm0, %v349_v2 }
  0xa0   : > { %714 = vmatmul.mubr.f32.gmra.mxu0 %v348_v3 }
  0xa1   : > { %6767 = vmatprep.mubr.msk.f32.mxu0 %vm420_vm0, %v351_v5 }
  0xa4   : > { %720 = vmatmul.mubr.f32.gmra.mxu0 %v350_v6 }
  0xa5   : > { %6768 = vmatprep.mubr.msk.f32.mxu0 %vm420_vm0, %v353_v7 }
  0xa8   : > { %726 = vmatmul.mubr.f32.gmra.mxu0 %v352_v8 }
  0xa9   : > { %6769 = vmatprep.mubr.msk.f32.mxu0 %vm420_vm0, %v355_v9 }
  0xac   : > { %732 = vmatmul.mubr.f32.gmra.mxu0 %v354_v10 }
  0xad   : > { %6770 = vmatprep.mubr.msk.f32.mxu0 %vm420_vm0, %v357_v11 }
  0xb0   : > { %738 = vmatmul.mubr.f32.gmra.mxu0 %v356_v14 }
  0xb1   : > { %6771 = vmatprep.mubr.msk.f32.mxu0 %vm420_vm0, %v359_v16 }
  0xb4   : > { %744 = vmatmul.mubr.f32.gmra.mxu0 %v358_v18 }
  0xb5   : > { %6772 = vmatprep.mubr.msk.f32.mxu0 %vm420_vm0, %v361_v20 }
  0xb8   : > { %750 = vmatmul.mubr.f32.gmra.mxu0 %v360_v22 }
  0xb9   : > { %6773 = vmatprep.mubr.msk.f32.mxu0 %vm420_vm0, %v363_v24 }
  0xbc   : > { %756 = vmatmul.mubr.f32.gmra.mxu0 %v362_v25 }
  0xbd   : > { %6774 = vmatprep.mubr.msk.f32.mxu0 %vm420_vm0, %v365_v26 }
  0xc0   : > { %762 = vmatmul.mubr.f32.gmra.mxu0 %v364_v27 }
  0xc1   : > { %6775 = vmatprep.mubr.msk.f32.mxu0 %vm420_vm0, %v367_v29 }
  0xc4   : > { %768 = vmatmul.mubr.f32.gmra.mxu0 %v366_v30 }
 0x108   : > { %v583_v37 = vpop.f32.mrf.mxu0 }
 0x109   : > { %v774_v40 = vmax.f32 %v583_v37, 0.0 }
 0x10a   : > { %v585_v38 = vpop.f32.mrf.mxu0 }
 0x10b   : > { %v775_v39 = vmax.f32 %v585_v38, 0.0 }
 0x10c   : > { %v589_v41 = vpop.f32.mrf.mxu0 }
 0x10d   : > { %941 = vmatprep.mubr.f32.mxu1 %v775_v39  ;;  %v776_v44 = vmax.f32 %v589_v41, 0.0 }
 0x10e   : > { %v591_v42 = vpop.f32.mrf.mxu0  ;;  %942 = vmatmul.mubr.f32.vlgmr.msra.gmra.mxu1 %v774_v40 }
 0x10f   : > { %v777_v43 = vmax.f32 %v591_v42, 0.0 }
 0x110   : > { %v595_v45 = vpop.f32.mrf.mxu0 }
 0x111   : > { %946 = vmatprep.mubr.f32.mxu1 %v777_v43  ;;  %v778_v48 = vmax.f32 %v595_v45, 0.0 }
 0x112   : > { %v597_v46 = vpop.f32.mrf.mxu0  ;;  %947 = vmatmul.mubr.f32.gmra.mxu1 %v776_v44 }
 0x113   : > { %v779_v47 = vmax.f32 %v597_v46, 0.0 }
 0x114   : > { %v601_v49 = vpop.f32.mrf.mxu0 }
 0x115   : > { %951 = vmatprep.mubr.f32.mxu1 %v779_v47  ;;  %v780_v52 = vmax.f32 %v601_v49, 0.0  ;;  %v1135_v47 = vld [vmem:[%s12169_s4 + $0x8] sm:$0xff] }
 0x116   : > { %v603_v50 = vpop.f32.mrf.mxu0  ;;  %952 = vmatmul.mubr.f32.gmra.mxu1 %v778_v48  ;;  %7500 = vmatprep.subr.mxu0 %v1135_v47 }
 0x117   : > { %v781_v51 = vmax.f32 %v603_v50, 0.0  ;;  %7501 = vmatpush3.msra.mxu0 %v1135_v47  ;;  %v1479_v47 = vld [vmem:[%s12171_s6 + $0x208] sm:$0xff] }
 0x118   : > { %v607_v53 = vpop.f32.mrf.mxu0 }
 0x119   : > { %956 = vmatprep.mubr.f32.mxu1 %v781_v51  ;;  %v782_v56 = vmax.f32 %v607_v53, 0.0 }
 0x11a   : > { %v609_v54 = vpop.f32.mrf.mxu0  ;;  %957 = vmatmul.mubr.f32.gmra.mxu1 %v780_v52  ;;  %v1134_v52 = vld [vmem:[%s12169_s4] sm:$0xff] }
 0x11b   : > { %v783_v55 = vmax.f32 %v609_v54, 0.0  ;;  %7502 = vmatprep.subr.mxu0 %v1134_v52 }
 0x11c   : > { %v613_v57 = vpop.f32.mrf.mxu0  ;;  %7503 = vmatpush3.msra.mxu0 %v1134_v52 }
 0x11d   : > { %961 = vmatprep.mubr.f32.mxu1 %v783_v55  ;;  %v784_v60 = vmax.f32 %v613_v57, 0.0  ;;  %7628 = vmatprep.subr.mxu0 %v8874_v4 }
 0x11e   : > { %v615_v58 = vpop.f32.mrf.mxu0  ;;  %962 = vmatmul.mubr.f32.gmra.mxu1 %v782_v56 }
 0x11f   : > { %v785_v59 = vmax.f32 %v615_v58, 0.0 }
 0x120   : > { %v619_v61 = vpop.f32.mrf.mxu0 }
 0x121   : > { %966 = vmatprep.mubr.f32.mxu1 %v785_v59  ;;  %v786_v62 = vmax.f32 %v619_v61, 0.0 }
 0x122   : > { %967 = vmatmul.mubr.f32.gmra.mxu1 %v784_v60  ;;  %v621_v63 = vpop.f32.mrf.mxu0 }
 0x123   : > { %v787_v0 = vmax.f32 %v621_v63, 0.0 }
 0x124   : > { %v625_v1 = vpop.f32.mrf.mxu0 }
 0x125   : > { %971 = vmatprep.mubr.f32.mxu1 %v787_v0  ;;  %v788_v2 = vmax.f32 %v625_v1, 0.0 }
 0x126   : > { %v627_v3 = vpop.f32.mrf.mxu0  ;;  %972 = vmatmul.mubr.f32.gmra.mxu1 %v786_v62 }
 0x127   : > { %v789_v5 = vmax.f32 %v627_v3, 0.0 }
 0x128   : > { %v631_v6 = vpop.f32.mrf.mxu0 }
 0x129   : > { %976 = vmatprep.mubr.f32.mxu1 %v789_v5  ;;  %v790_v7 = vmax.f32 %v631_v6, 0.0 }
 0x12a   : > { %977 = vmatmul.mubr.f32.gmra.mxu1 %v788_v2  ;;  %v633_v8 = vpop.f32.mrf.mxu0 }
 0x12b   : > { %v791_v9 = vmax.f32 %v633_v8, 0.0 }
 0x12c   : > { %v637_v10 = vpop.f32.mrf.mxu0 }
 0x12d   : > { %981 = vmatprep.mubr.f32.mxu1 %v791_v9  ;;  %v792_v11 = vmax.f32 %v637_v10, 0.0 }
 0x12e   : > { %v639_v12 = vpop.f32.mrf.mxu0  ;;  %982 = vmatmul.mubr.f32.gmra.mxu1 %v790_v7 }
 0x12f   : > { %v793_v13 = vmax.f32 %v639_v12, 0.0 }
 0x130   : > { %v643_v14 = vpop.f32.mrf.mxu0 }
 0x131   : > { %986 = vmatprep.mubr.f32.mxu1 %v793_v13  ;;  %v794_v15 = vmax.f32 %v643_v14, 0.0 }
 0x132   : > { %987 = vmatmul.mubr.f32.gmra.mxu1 %v792_v11  ;;  %v645_v16 = vpop.f32.mrf.mxu0 }
 0x133   : > { %v795_v17 = vmax.f32 %v645_v16, 0.0 }
 0x134   : > { %v649_v18 = vpop.f32.mrf.mxu0 }
 0x135   : > { %991 = vmatprep.mubr.f32.mxu1 %v795_v17  ;;  %v796_v19 = vmax.f32 %v649_v18, 0.0  ;;  %v1485_v17 = vld [vmem:[%s12171_s6 + $0x238] sm:$0xff] }
 0x136   : > { %v651_v20 = vpop.f32.mrf.mxu0  ;;  %992 = vmatmul.mubr.f32.gmra.mxu1 %v794_v15 }
 0x137   : > { %v797_v21 = vmax.f32 %v651_v20, 0.0  ;;  %7553 = vmatpush3.msra.mxu1 %v1485_v17 }
 0x138   : > { %v655_v22 = vpop.f32.mrf.mxu0  ;;  %7554 = vmatprep.subr.mxu1 %v8874_v4 }
 0x139   : > { %996 = vmatprep.mubr.f32.mxu1 %v797_v21  ;;  %v798_v23 = vmax.f32 %v655_v22, 0.0 }
 0x13a   : > { %v657_v24 = vpop.f32.mrf.mxu0  ;;  %997 = vmatmul.mubr.f32.gmra.mxu1 %v796_v19  ;;  %v1484_v19 = vld [vmem:[%s12171_s6 + $0x230] sm:$0xff] }
 0x13b   : > { %v799_v25 = vmax.f32 %v657_v24, 0.0  ;;  %7555 = vmatpush3.msra.mxu1 %v1484_v19 }
 0x13c   : > { %v661_v26 = vpop.f32.mrf.mxu0  ;;  %7556 = vmatprep.subr.mxu1 %v8874_v4 }
 0x13d   : > { %1001 = vmatprep.mubr.f32.mxu1 %v799_v25  ;;  %v800_v27 = vmax.f32 %v661_v26, 0.0 }
 0x13e   : > { %v663_v28 = vpop.f32.mrf.mxu0  ;;  %1002 = vmatmul.mubr.f32.gmra.mxu1 %v798_v23 }
 0x13f   : > { %v801_v29 = vmax.f32 %v663_v28, 0.0 }
 0x140   : > { %v667_v30 = vpop.f32.mrf.mxu0 }
 0x141   : > { %1006 = vmatprep.mubr.f32.mxu1 %v801_v29  ;;  %v802_v31 = vmax.f32 %v667_v30, 0.0 }
 0x142   : > { %v669_v32 = vpop.f32.mrf.mxu0  ;;  %1007 = vmatmul.mubr.f32.gmra.mxu1 %v800_v27  ;;  %v1483_v27 = vld [vmem:[%s12171_s6 + $0x228] sm:$0xff] }
 0x143   : > { %v803_v33 = vmax.f32 %v669_v32, 0.0  ;;  %7557 = vmatpush3.msra.mxu1 %v1483_v27 }
 0x144   : > { %v673_v34 = vpop.f32.mrf.mxu0  ;;  %7558 = vmatprep.subr.mxu1 %v8874_v4 }
 0x145   : > { %1011 = vmatprep.mubr.f32.mxu1 %v803_v33  ;;  %v804_v35 = vmax.f32 %v673_v34, 0.0 }
 0x146   : > { %v675_v36 = vpop.f32.mrf.mxu0  ;;  %1012 = vmatmul.mubr.f32.gmra.mxu1 %v802_v31 }
 0x147   : > { %v805_v37 = vmax.f32 %v675_v36, 0.0 }
 0x148   : > { %v679_v38 = vpop.f32.mrf.mxu0 }
 0x149   : > { %1016 = vmatprep.mubr.f32.mxu1 %v805_v37  ;;  %v806_v39 = vmax.f32 %v679_v38, 0.0 }
 0x14a   : > { %v681_v40 = vpop.f32.mrf.mxu0  ;;  %1017 = vmatmul.mubr.f32.gmra.mxu1 %v804_v35 }
 0x14b   : > { %v807_v41 = vmax.f32 %v681_v40, 0.0 }
 0x14c   : > { %v685_v42 = vpop.f32.mrf.mxu0 }
 0x14d   : > { %1021 = vmatprep.mubr.f32.mxu1 %v807_v41  ;;  %v808_v43 = vmax.f32 %v685_v42, 0.0  ;;  %v1482_v41 = vld [vmem:[%s12171_s6 + $0x220] sm:$0xff] }
 0x14e   : > { %v687_v44 = vpop.f32.mrf.mxu0  ;;  %1022 = vmatmul.mubr.f32.gmra.mxu1 %v806_v39 }
 0x14f   : > { %v809_v45 = vmax.f32 %v687_v44, 0.0  ;;  %7559 = vmatpush3.msra.mxu1 %v1482_v41 }
 0x150   : > { %v691_v46 = vpop.f32.mrf.mxu0  ;;  %7560 = vmatprep.subr.mxu1 %v8874_v4 }
 0x151   : > { %1026 = vmatprep.mubr.f32.mxu1 %v809_v45  ;;  %v810_v48 = vmax.f32 %v691_v46, 0.0  ;;  %v1481_v45 = vld [vmem:[%s12171_s6 + $0x218] sm:$0xff]  ;;  %v1480_v46 = vld [vmem:[%s12171_s6 + $0x210] sm:$0xff] }
 0x152   : > { %v693_v49 = vpop.f32.mrf.mxu0  ;;  %1027 = vmatmul.mubr.f32.gmra.mxu1 %v808_v43 }
 0x153   : > { %v811_v50 = vmax.f32 %v693_v49, 0.0  ;;  %7561 = vmatpush3.msra.mxu1 %v1481_v45 }
 0x154   : > { %v697_v51 = vpop.f32.mrf.mxu0  ;;  %7562 = vmatprep.subr.mxu1 %v8874_v4 }
 0x155   : > { %1031 = vmatprep.mubr.f32.mxu1 %v811_v50  ;;  %v812_v53 = vmax.f32 %v697_v51, 0.0  ;;  %7563 = vmatpush3.msra.mxu1 %v1480_v46 }
 0x156   : > { %v699_v54 = vpop.f32.mrf.mxu0  ;;  %1032 = vmatmul.mubr.f32.gmra.mxu1 %v810_v48  ;;  %7564 = vmatprep.subr.mxu1 %v8874_v4  ;;  %v9438_v48 = vld [vmem:[%s12168_s3] ss:$0 sm:$0xff] }
 0x157   : > { %v813_v55 = vmax.f32 %v699_v54, 0.0  ;;  %7565 = vmatpush3.msra.mxu1 %v1479_v47 }
 0x158   : > { %v703_v56 = vpop.f32.mrf.mxu0  ;;  %7566 = vmatprep.subr.mxu1 %v8874_v4 }
 0x159   : > { %1036 = vmatprep.mubr.f32.mxu1 %v813_v55  ;;  %v814_v57 = vmax.f32 %v703_v56, 0.0 }
 0x15a   : > { %v705_v58 = vpop.f32.mrf.mxu0  ;;  %1037 = vmatmul.mubr.f32.gmra.mxu1 %v812_v53 }
 0x15b   : > { %v815_v59 = vmax.f32 %v705_v58, 0.0 }
 0x15c   : > { %v709_v60 = vpop.f32.mrf.mxu0 }
 0x15d   : > { %1041 = vmatprep.mubr.f32.mxu1 %v815_v59  ;;  %v816_v61 = vmax.f32 %v709_v60, 0.0 }
 0x15e   : > { %v711_v62 = vpop.f32.mrf.mxu0  ;;  %1042 = vmatmul.mubr.f32.gmra.mxu1 %v814_v57 }
 0x15f   : > { %v817_v63 = vmax.f32 %v711_v62, 0.0 }
 0x160   : > { %v715_v0 = vpop.f32.mrf.mxu0 }
 0x161   : > { %1046 = vmatprep.mubr.f32.mxu1 %v817_v63  ;;  %v818_v1 = vmax.f32 %v715_v0, 0.0 }
 0x162   : > { %v717_v2 = vpop.f32.mrf.mxu0  ;;  %1047 = vmatmul.mubr.f32.gmra.mxu1 %v816_v61 }
 0x163   : > { %v819_v3 = vmax.f32 %v717_v2, 0.0 }
 0x164   : > { %v721_v5 = vpop.f32.mrf.mxu0 }
 0x165   : > { %1051 = vmatprep.mubr.f32.mxu1 %v819_v3  ;;  %v820_v6 = vmax.f32 %v721_v5, 0.0 }
 0x166   : > { %v723_v7 = vpop.f32.mrf.mxu0  ;;  %1052 = vmatmul.mubr.f32.gmra.mxu1 %v818_v1 }
 0x167   : > { %v821_v8 = vmax.f32 %v723_v7, 0.0 }
 0x168   : > { %v727_v9 = vpop.f32.mrf.mxu0 }
 0x169   : > { %1056 = vmatprep.mubr.f32.mxu1 %v821_v8  ;;  %v822_v10 = vmax.f32 %v727_v9, 0.0 }
 0x16a   : > { %v729_v11 = vpop.f32.mrf.mxu0  ;;  %1057 = vmatmul.mubr.f32.gmra.mxu1 %v820_v6 }
 0x16b   : > { %v823_v12 = vmax.f32 %v729_v11, 0.0 }
 0x16c   : > { %v733_v13 = vpop.f32.mrf.mxu0 }
 0x16d   : > { %1061 = vmatprep.mubr.f32.mxu1 %v823_v12  ;;  %v824_v14 = vmax.f32 %v733_v13, 0.0 }
 0x16e   : > { %v735_v15 = vpop.f32.mrf.mxu0  ;;  %1062 = vmatmul.mubr.f32.gmra.mxu1 %v822_v10 }
 0x16f   : > { %v825_v16 = vmax.f32 %v735_v15, 0.0 }
 0x170   : > { %v739_v18 = vpop.f32.mrf.mxu0 }
 0x171   : > { %1066 = vmatprep.mubr.f32.mxu1 %v825_v16  ;;  %v826_v20 = vmax.f32 %v739_v18, 0.0 }
 0x172   : > { %v741_v21 = vpop.f32.mrf.mxu0  ;;  %1067 = vmatmul.mubr.f32.gmra.mxu1 %v824_v14 }
 0x173   : > { %v827_v22 = vmax.f32 %v741_v21, 0.0 }
 0x174   : > { %v745_v23 = vpop.f32.mrf.mxu0 }
 0x175   : > { %1071 = vmatprep.mubr.f32.mxu1 %v827_v22  ;;  %v828_v24 = vmax.f32 %v745_v23, 0.0 }
 0x176   : > { %v747_v25 = vpop.f32.mrf.mxu0  ;;  %1072 = vmatmul.mubr.f32.gmra.mxu1 %v826_v20 }
 0x177   : > { %v829_v26 = vmax.f32 %v747_v25, 0.0 }
 0x178   : > { %v751_v28 = vpop.f32.mrf.mxu0 }
 0x179   : > { %1076 = vmatprep.mubr.f32.mxu1 %v829_v26  ;;  %v830_v29 = vmax.f32 %v751_v28, 0.0 }
 0x17a   : > { %v753_v30 = vpop.f32.mrf.mxu0  ;;  %1077 = vmatmul.mubr.f32.gmra.mxu1 %v828_v24 }
 0x17b   : > { %v831_v31 = vmax.f32 %v753_v30, 0.0 }
 0x17c   : > { %v757_v32 = vpop.f32.mrf.mxu0 }
 0x17d   : > { %1081 = vmatprep.mubr.f32.mxu1 %v831_v31  ;;  %v832_v33 = vmax.f32 %v757_v32, 0.0 }
 0x17e   : > { %v759_v34 = vpop.f32.mrf.mxu0  ;;  %1082 = vmatmul.mubr.f32.gmra.mxu1 %v830_v29 }
 0x17f   : > { %v833_v35 = vmax.f32 %v759_v34, 0.0 }
 0x180   : > { %v763_v36 = vpop.f32.mrf.mxu0 }
 0x181   : > { %1086 = vmatprep.mubr.f32.mxu1 %v833_v35  ;;  %v834_v37 = vmax.f32 %v763_v36, 0.0 }
 0x182   : > { %v765_v38 = vpop.f32.mrf.mxu0  ;;  %1087 = vmatmul.mubr.f32.gmra.mxu1 %v832_v33 }
 0x183   : > { %v835_v39 = vmax.f32 %v765_v38, 0.0 }
 0x184   : > { %v769_v40 = vpop.f32.mrf.mxu0 }
 0x185   : > { %1091 = vmatprep.mubr.f32.mxu1 %v835_v39  ;;  %v836_v42 = vmax.f32 %v769_v40, 0.0 }
 0x186   : > { %v771_v43 = vpop.f32.mrf.mxu0  ;;  %1092 = vmatmul.mubr.f32.gmra.mxu1 %v834_v37 }
 0x187   : > { %v837_v44 = vmax.f32 %v771_v43, 0.0 }
 0x189   : > { %1096 = vmatprep.mubr.f32.mxu1 %v837_v44 }
 0x18a   : > { %1097 = vmatmul.mubr.f32.gmra.mxu1 %v836_v42 }
 0x18b   : > { %7568 = vmatprep.mubr.msk.f32.mxu1 %vm8875_vm1, %v8874_v4 }
 0x1ce   : > { %v943_v49 = vpop.f32.mrf.mxu1 }
 0x1cf   : > { %v944_v50 = vadd.f32 %v9438_v48, %v943_v49 }
 0x1d0   : > { %v945_v51 = vpop.f32.mrf.mxu1 }
 0x1d1   : > { %v1102_v52 = vmax.f32 %v944_v50, 0.0 }
 0x1d2   : > { %v948_v53 = vpop.f32.mrf.mxu1 }
 0x1d3   : > { %v949_v54 = vadd.f32 %v9438_v48, %v948_v53  ;;  %7504 = vmatprep.mubr.f32.mxu0 %v1102_v52 }
 0x1d4   : > { %v950_v55 = vpop.f32.mrf.mxu1 }
 0x1d5   : > { %v1103_v56 = vmax.f32 %v949_v54, 0.0 }
 0x1d6   : > { %v953_v57 = vpop.f32.mrf.mxu1 }
 0x1d7   : > { %v954_v58 = vadd.f32 %v9438_v48, %v953_v57  ;;  %7505 = vmatmul.mubr.f32.vlgmr.msra.gmra.mxu0 %v1103_v56 }
 0x1d8   : > { %v955_v59 = vpop.f32.mrf.mxu1 }
 0x1d9   : > { %v1104_v60 = vmax.f32 %v954_v58, 0.0 }
 0x1da   : > { %v958_v61 = vpop.f32.mrf.mxu1 }
 0x1db   : > { %v959_v62 = vadd.f32 %v9438_v48, %v958_v61  ;;  %7507 = vmatprep.mubr.f32.mxu0 %v1104_v60 }
 0x1dc   : > { %v960_v63 = vpop.f32.mrf.mxu1 }
 0x1dd   : > { %v1105_v0 = vmax.f32 %v959_v62, 0.0 }
 0x1de   : > { %v963_v1 = vpop.f32.mrf.mxu1 }
 0x1df   : > { %v964_v2 = vadd.f32 %v9438_v48, %v963_v1  ;;  %7508 = vmatmul.mubr.f32.gmra.mxu0 %v1105_v0  ;;  %v1794_v1 = vld [vmem:[%s12171_s6 + $0x2b8] sm:$0xff] }
 0x1e0   : > { %v965_v3 = vpop.f32.mrf.mxu1  ;;  %7629 = vmatpush3.msra.mxu0 %v1794_v1 }
 0x1e1   : > { %v1106_v5 = vmax.f32 %v964_v2, 0.0  ;;  %7630 = vmatprep.subr.mxu0 %v8874_v4 }
 0x1e2   : > { %v968_v6 = vpop.f32.mrf.mxu1 }
 0x1e3   : > { %v969_v7 = vadd.f32 %v9438_v48, %v968_v6  ;;  %7510 = vmatprep.mubr.f32.mxu0 %v1106_v5  ;;  %v1793_v5 = vld [vmem:[%s12171_s6 + $0x2b0] sm:$0xff] }
 0x1e4   : > { %v970_v8 = vpop.f32.mrf.mxu1  ;;  %7631 = vmatpush3.msra.mxu0 %v1793_v5 }
 0x1e5   : > { %v1107_v9 = vmax.f32 %v969_v7, 0.0  ;;  %v1478_v7 = vld [vmem:[%s12171_s6 + $0x200] sm:$0xff]  ;;  %7632 = vmatprep.subr.mxu0 %v8874_v4 }
 0x1e6   : > { %v973_v10 = vpop.f32.mrf.mxu1  ;;  %7567 = vmatpush3.msra.mxu1 %v1478_v7 }
 0x1e7   : > { %7511 = vmatmul.mubr.f32.gmra.mxu0 %v1107_v9  ;;  %v974_v11 = vadd.f32 %v9438_v48, %v973_v10  ;;  %v1792_v9 = vld [vmem:[%s12171_s6 + $0x2a8] sm:$0xff]  ;;  %7571 = vmatprep.subr.mxu1 %v8874_v4 }
 0x1e8   : > { %v975_v12 = vpop.f32.mrf.mxu1  ;;  %7633 = vmatpush3.msra.mxu0 %v1792_v9 }
 0x1e9   : > { %v1108_v13 = vmax.f32 %v974_v11, 0.0  ;;  %v1791_v12 = vld [vmem:[%s12171_s6 + $0x2a0] sm:$0xff]  ;;  %7634 = vmatprep.subr.mxu0 %v8874_v4 }
 0x1ea   : > { %v978_v14 = vpop.f32.mrf.mxu1  ;;  %7635 = vmatpush3.msra.mxu0 %v1791_v12  ;;  %v1420_v12 = vld [vmem:[%s12171_s6 + $0x30] sm:$0xff] }
 0x1eb   : > { %v979_v15 = vadd.f32 %v9438_v48, %v978_v14  ;;  %7513 = vmatprep.mubr.f32.mxu0 %v1108_v13  ;;  %7636 = vmatprep.subr.mxu0 %v8874_v4 }
 0x1ec   : > { %v980_v16 = vpop.f32.mrf.mxu1 }
 0x1ed   : > { %v1109_v17 = vmax.f32 %v979_v15, 0.0  ;;  %v1790_v15 = vld [vmem:[%s12171_s6 + $0x298] sm:$0xff] }
 0x1ee   : > { %v983_v18 = vpop.f32.mrf.mxu1  ;;  %7637 = vmatpush3.msra.mxu0 %v1790_v15  ;;  %v1945_v15 = vld [vmem:[%s12171_s6 + $0x2e0] sm:$0xff] }
 0x1ef   : > { %7514 = vmatmul.mubr.f32.gmra.mxu0 %v1109_v17  ;;  %v984_v19 = vadd.f32 %v9438_v48, %v983_v18  ;;  %v1789_v18 = vld [vmem:[%s12171_s6 + $0x290] sm:$0xff]  ;;  %7638 = vmatprep.subr.mxu0 %v8874_v4 }
 0x1f0   : > { %v985_v20 = vpop.f32.mrf.mxu1  ;;  %7639 = vmatpush3.msra.mxu0 %v1789_v18  ;;  %v1417_v18 = vld [vmem:[%s12171_s6 + $0x18] sm:$0xff] }
 0x1f1   : > { %v1110_v21 = vmax.f32 %v984_v19, 0.0  ;;  %7640 = vmatprep.subr.mxu0 %v8874_v4 }
 0x1f2   : > { %v988_v22 = vpop.f32.mrf.mxu1 }
 0x1f3   : > { %v989_v23 = vadd.f32 %v9438_v48, %v988_v22  ;;  %7516 = vmatprep.mubr.f32.mxu0 %v1110_v21  ;;  %v1788_v21 = vld [vmem:[%s12171_s6 + $0x288] sm:$0xff] }
 0x1f4   : > { %v990_v24 = vpop.f32.mrf.mxu1  ;;  %7641 = vmatpush3.msra.mxu0 %v1788_v21  ;;  %v1942_v21 = vld [vmem:[%s12171_s6 + $0x2c8] sm:$0xff] }
 0x1f5   : > { %v1111_v25 = vmax.f32 %v989_v23, 0.0  ;;  %v1787_v24 = vld [vmem:[%s12171_s6 + $0x280] sm:$0xff]  ;;  %7642 = vmatprep.subr.mxu0 %v8874_v4 }
 0x1f6   : > { %v993_v26 = vpop.f32.mrf.mxu1  ;;  %7643 = vmatpush3.msra.mxu0 %v1787_v24 }
 0x1f7   : > { %7517 = vmatmul.mubr.f32.gmra.mxu0 %v1111_v25  ;;  %v994_v27 = vadd.f32 %v9438_v48, %v993_v26  ;;  %7666 = vmatprep.subr.mxu0 %v8874_v4 }
 0x1f8   : > { %v995_v28 = vpop.f32.mrf.mxu1 }
 0x1f9   : > { %v1112_v29 = vmax.f32 %v994_v27, 0.0 }
 0x1fa   : > { %v998_v30 = vpop.f32.mrf.mxu1 }
 0x1fb   : > { %v999_v31 = vadd.f32 %v9438_v48, %v998_v30  ;;  %7519 = vmatprep.mubr.f32.mxu0 %v1112_v29 }
 0x1fc   : > { %v1000_v32 = vpop.f32.mrf.mxu1 }
 0x1fd   : > { %v1113_v33 = vmax.f32 %v999_v31, 0.0 }
 0x1fe   : > { %v1003_v34 = vpop.f32.mrf.mxu1 }
 0x1ff   : > { %v1004_v35 = vadd.f32 %v9438_v48, %v1003_v34  ;;  %7520 = vmatmul.mubr.f32.gmra.mxu0 %v1113_v33 }
 0x200   : > { %v1005_v36 = vpop.f32.mrf.mxu1 }
 0x201   : > { %v1114_v37 = vmax.f32 %v1004_v35, 0.0 }
 0x202   : > { %v1008_v38 = vpop.f32.mrf.mxu1 }
 0x203   : > { %v1009_v39 = vadd.f32 %v9438_v48, %v1008_v38  ;;  %7522 = vmatprep.mubr.f32.mxu0 %v1114_v37 }
 0x204   : > { %v1010_v40 = vpop.f32.mrf.mxu1 }
 0x205   : > { %v1115_v41 = vmax.f32 %v1009_v39, 0.0 }
 0x206   : > { %v1013_v42 = vpop.f32.mrf.mxu1 }
 0x207   : > { %v1014_v43 = vadd.f32 %v9438_v48, %v1013_v42  ;;  %7523 = vmatmul.mubr.f32.gmra.mxu0 %v1115_v41 }
 0x208   : > { %v1015_v44 = vpop.f32.mrf.mxu1 }
 0x209   : > { %v1116_v45 = vmax.f32 %v1014_v43, 0.0 }
 0x20a   : > { %v1018_v46 = vpop.f32.mrf.mxu1 }
 0x20b   : > { %v1019_v47 = vadd.f32 %v9438_v48, %v1018_v46  ;;  %7525 = vmatprep.mubr.f32.mxu0 %v1116_v45 }
 0x20c   : > { %v1020_v49 = vpop.f32.mrf.mxu1 }
 0x20d   : > { %v1117_v50 = vmax.f32 %v1019_v47, 0.0 }
 0x20e   : > { %v1023_v51 = vpop.f32.mrf.mxu1 }
 0x20f   : > { %v1024_v52 = vadd.f32 %v9438_v48, %v1023_v51  ;;  %7526 = vmatmul.mubr.f32.gmra.mxu0 %v1117_v50 }
 0x210   : > { %v1025_v53 = vpop.f32.mrf.mxu1 }
 0x211   : > { %v1118_v54 = vmax.f32 %v1024_v52, 0.0 }
 0x212   : > { %v1028_v55 = vpop.f32.mrf.mxu1 }
 0x213   : > { %v1029_v56 = vadd.f32 %v9438_v48, %v1028_v55  ;;  %7528 = vmatprep.mubr.f32.mxu0 %v1118_v54 }
 0x214   : > { %v1030_v57 = vpop.f32.mrf.mxu1 }
 0x215   : > { %v1119_v58 = vmax.f32 %v1029_v56, 0.0 }
 0x216   : > { %v1033_v59 = vpop.f32.mrf.mxu1 }
 0x217   : > { %v1034_v60 = vadd.f32 %v9438_v48, %v1033_v59  ;;  %7529 = vmatmul.mubr.f32.gmra.mxu0 %v1119_v58 }
 0x218   : > { %v1035_v61 = vpop.f32.mrf.mxu1 }
 0x219   : > { %v1120_v62 = vmax.f32 %v1034_v60, 0.0 }
 0x21a   : > { %v1038_v63 = vpop.f32.mrf.mxu1 }
 0x21b   : > { %v1039_v0 = vadd.f32 %v9438_v48, %v1038_v63  ;;  %7531 = vmatprep.mubr.f32.mxu0 %v1120_v62 }
 0x21c   : > { %v1040_v2 = vpop.f32.mrf.mxu1 }
 0x21d   : > { %v1121_v3 = vmax.f32 %v1039_v0, 0.0  ;;  %v9521_v2 = vld [vmem:[%s12170_s5] ss:$0 sm:$0xff] }
 0x21e   : > { %v1043_v6 = vpop.f32.mrf.mxu1 }
 0x21f   : > { %v1044_v8 = vadd.f32 %v9438_v48, %v1043_v6  ;;  %7532 = vmatmul.mubr.f32.gmra.mxu0 %v1121_v3 }
 0x220   : > { %v1045_v10 = vpop.f32.mrf.mxu1 }
 0x221   : > { %v1122_v11 = vmax.f32 %v1044_v8, 0.0  ;;  %v1948_v8 = vld [vmem:[%s12171_s6 + $0x2f8] sm:$0xff] }
 0x222   : > { %v1048_v13 = vpop.f32.mrf.mxu1  ;;  %v1421_v10 = vld [vmem:[%s12171_s6 + $0x38] sm:$0xff] }
 0x223   : > { %v1049_v14 = vadd.f32 %v9438_v48, %v1048_v13  ;;  %7534 = vmatprep.mubr.f32.mxu0 %v1122_v11  ;;  %v1947_v11 = vld [vmem:[%s12171_s6 + $0x2f0] sm:$0xff]  ;;  %v1946_v13 = vld [vmem:[%s12171_s6 + $0x2e8] sm:$0xff] }
 0x224   : > { %v1050_v16 = vpop.f32.mrf.mxu1 }
 0x225   : > { %v1123_v17 = vmax.f32 %v1049_v14, 0.0  ;;  %v1419_v14 = vld [vmem:[%s12171_s6 + $0x28] sm:$0xff]  ;;  %v1418_v16 = vld [vmem:[%s12171_s6 + $0x20] sm:$0xff] }
 0x226   : > { %v1053_v19 = vpop.f32.mrf.mxu1 }
 0x227   : > { %v1054_v20 = vadd.f32 %v9438_v48, %v1053_v19  ;;  %7535 = vmatmul.mubr.f32.gmra.mxu0 %v1123_v17  ;;  %v1944_v17 = vld [vmem:[%s12171_s6 + $0x2d8] sm:$0xff]  ;;  %v1943_v19 = vld [vmem:[%s12171_s6 + $0x2d0] sm:$0xff] }
 0x228   : > { %v1055_v22 = vpop.f32.mrf.mxu1 }
 0x229   : > { %v1124_v23 = vmax.f32 %v1054_v20, 0.0  ;;  %v1416_v20 = vld [vmem:[%s12171_s6 + $0x10] sm:$0xff]  ;;  %v1415_v22 = vld [vmem:[%s12171_s6 + $0x8] sm:$0xff] }
 0x22a   : > { %v1058_v25 = vpop.f32.mrf.mxu1 }
 0x22b   : > { %v1059_v26 = vadd.f32 %v9438_v48, %v1058_v25  ;;  %7537 = vmatprep.mubr.f32.mxu0 %v1124_v23  ;;  %v1941_v23 = vld [vmem:[%s12171_s6 + $0x2c0] sm:$0xff] }
 0x22c   : > { %v1060_v27 = vpop.f32.mrf.mxu1 }
 0x22d   : > { %v1125_v28 = vmax.f32 %v1059_v26, 0.0  ;;  %v1414_v26 = vld [vmem:[%s12171_s6] sm:$0xff]  ;;  %v2102_v27 = vld [vmem:[%s12171_s6 + $0x338] sm:$0xff] }
 0x22e   : > { %v1063_v29 = vpop.f32.mrf.mxu1 }
 0x22f   : > { %v1064_v30 = vadd.f32 %v9438_v48, %v1063_v29  ;;  %7538 = vmatmul.mubr.f32.gmra.mxu0 %v1125_v28  ;;  %v1640_v29 = vld [vmem:[%s12171_s6 + $0x278] sm:$0xff] }
 0x230   : > { %v1065_v31 = vpop.f32.mrf.mxu1 }
 0x231   : > { %v1126_v32 = vmax.f32 %v1064_v30, 0.0  ;;  %v2101_v30 = vld [vmem:[%s12171_s6 + $0x330] sm:$0xff] }
 0x232   : > { %v1068_v33 = vpop.f32.mrf.mxu1  ;;  %v1639_v31 = vld [vmem:[%s12171_s6 + $0x270] sm:$0xff] }
 0x233   : > { %v1069_v34 = vadd.f32 %v9438_v48, %v1068_v33  ;;  %7540 = vmatprep.mubr.f32.mxu0 %v1126_v32  ;;  %v2100_v32 = vld [vmem:[%s12171_s6 + $0x328] sm:$0xff] }
 0x234   : > { %v1070_v35 = vpop.f32.mrf.mxu1  ;;  %v1638_v33 = vld [vmem:[%s12171_s6 + $0x268] sm:$0xff] }
 0x235   : > { %v1127_v36 = vmax.f32 %v1069_v34, 0.0  ;;  %v2099_v35 = vld [vmem:[%s12171_s6 + $0x320] sm:$0xff] }
 0x236   : > { %v1073_v37 = vpop.f32.mrf.mxu1 }
 0x237   : > { %v1074_v38 = vadd.f32 %v9438_v48, %v1073_v37  ;;  %7541 = vmatmul.mubr.f32.gmra.mxu0 %v1127_v36  ;;  %v1637_v36 = vld [vmem:[%s12171_s6 + $0x260] sm:$0xff]  ;;  %v2098_v37 = vld [vmem:[%s12171_s6 + $0x318] sm:$0xff] }
 0x238   : > { %v1075_v39 = vpop.f32.mrf.mxu1 }
 0x239   : > { %v1128_v40 = vmax.f32 %v1074_v38, 0.0  ;;  %v1636_v38 = vld [vmem:[%s12171_s6 + $0x258] sm:$0xff] }
 0x23a   : > { %v1078_v41 = vpop.f32.mrf.mxu1 }
 0x23b   : > { %v1079_v42 = vadd.f32 %v9438_v48, %v1078_v41  ;;  %7543 = vmatprep.mubr.f32.mxu0 %v1128_v40  ;;  %v2097_v40 = vld [vmem:[%s12171_s6 + $0x310] sm:$0xff] }
 0x23c   : > { %v1080_v43 = vpop.f32.mrf.mxu1  ;;  %v1635_v41 = vld [vmem:[%s12171_s6 + $0x250] sm:$0xff] }
 0x23d   : > { %v1129_v44 = vmax.f32 %v1079_v42, 0.0  ;;  %v2096_v43 = vld [vmem:[%s12171_s6 + $0x308] sm:$0xff] }
 0x23e   : > { %v1083_v45 = vpop.f32.mrf.mxu1 }
 0x23f   : > { %v1084_v46 = vadd.f32 %v9438_v48, %v1083_v45  ;;  %7544 = vmatmul.mubr.f32.gmra.mxu0 %v1129_v44  ;;  %v1634_v44 = vld [vmem:[%s12171_s6 + $0x248] sm:$0xff]  ;;  %v2095_v45 = vld [vmem:[%s12171_s6 + $0x300] sm:$0xff] }
 0x240   : > { %v1085_v47 = vpop.f32.mrf.mxu1 }
 0x241   : > { %v1130_v49 = vmax.f32 %v1084_v46, 0.0  ;;  %v1633_v47 = vld [vmem:[%s12171_s6 + $0x240] sm:$0xff] }
 0x242   : > { %v1088_v50 = vpop.f32.mrf.mxu1 }
 0x243   : > { %v1089_v51 = vadd.f32 %v9438_v48, %v1088_v50  ;;  %7546 = vmatprep.mubr.f32.mxu0 %v1130_v49  ;;  %v2256_v50 = vld [vmem:[%s12171_s6 + $0x378] sm:$0xff] }
 0x244   : > { %v1090_v52 = vpop.f32.mrf.mxu1 }
 0x245   : > { %v1131_v53 = vmax.f32 %v1089_v51, 0.0  ;;  %v1429_v51 = vld [vmem:[%s12171_s6 + $0x78] sm:$0xff]  ;;  %v2255_v52 = vld [vmem:[%s12171_s6 + $0x370] sm:$0xff] }
 0x246   : > { %v1093_v54 = vpop.f32.mrf.mxu1 }
 0x247   : > { %v1094_v55 = vadd.f32 %v9438_v48, %v1093_v54  ;;  %7547 = vmatmul.mubr.f32.gmra.mxu0 %v1131_v53  ;;  %v1428_v53 = vld [vmem:[%s12171_s6 + $0x70] sm:$0xff]  ;;  %v2254_v54 = vld [vmem:[%s12171_s6 + $0x368] sm:$0xff] }
 0x248   : > { %v1095_v56 = vpop.f32.mrf.mxu1 }
 0x249   : > { %v1132_v57 = vmax.f32 %v1094_v55, 0.0  ;;  %v1427_v55 = vld [vmem:[%s12171_s6 + $0x68] sm:$0xff]  ;;  %v2253_v56 = vld [vmem:[%s12171_s6 + $0x360] sm:$0xff] }
 0x24a   : > { %v1098_v58 = vpop.f32.mrf.mxu1 }
 0x24b   : > { %v1099_v59 = vadd.f32 %v9438_v48, %v1098_v58  ;;  %7549 = vmatprep.mubr.f32.mxu0 %v1132_v57  ;;  %v1426_v57 = vld [vmem:[%s12171_s6 + $0x60] sm:$0xff]  ;;  %v2252_v58 = vld [vmem:[%s12171_s6 + $0x358] sm:$0xff] }
 0x24c   : > { %v1100_v60 = vpop.f32.mrf.mxu1 }
 0x24d   : > { %v1133_v61 = vmax.f32 %v1099_v59, 0.0  ;;  %v1425_v59 = vld [vmem:[%s12171_s6 + $0x58] sm:$0xff]  ;;  %v2251_v60 = vld [vmem:[%s12171_s6 + $0x350] sm:$0xff] }
 0x24f   : > { %7550 = vmatmul.mubr.f32.gmra.mxu0 %v1133_v61  ;;  %v1424_v61 = vld [vmem:[%s12171_s6 + $0x50] sm:$0xff] }
 0x250   : > { %7644 = vmatprep.mubr.msk.f32.mxu0 %vm8875_vm1, %v8874_v4 }
 0x297   : > { %v9512_v62 = vpop.f32.mrf.mxu0 }
 0x299   : > { %v1223_v63 = vpop.f32.mrf.mxu0 }
 0x29a   : > { %v9591_v24 = vadd.f32 %v9521_v2, %v1223_v63  ;;  %v2250_v63 = vld [vmem:[%s12171_s6 + $0x348] sm:$0xff] }
 0x29c   : > { %v1382_v28 = vmax.f32 %v9591_v24, 0.0  ;;  %v2403_v24 = vld [vmem:[%s12171_s6 + $0x380] sm:$0xff] }
 0x29f   : > { %v9514_v0 = vpop.f32.mrf.mxu0 }
 0x2a1   : > { %v9516_v1 = vpop.f32.mrf.mxu0 }
 0x2a7   : > { %v7512_v48 = vpop.f32.mrf.mxu0 }
 0x2a8   : > { %v1249_v3 = vadd.f32 %v7512_v48, %v9521_v2  ;;  %v1423_v48 = vld [vmem:[%s12171_s6 + $0x48] sm:$0xff] }
 0x2a9   : > { %v1243_v5 = vpop.f32.mrf.mxu0 }
 0x2aa   : > { %v1387_v6 = vmax.f32 %v1249_v3, 0.0  ;;  %v9525_v7 = vadd.f32 %v9521_v2, %v1243_v5  ;;  %v2249_v3 = vld [vmem:[%s12171_s6 + $0x340] sm:$0xff] }
 0x2ac   : > { %v1386_v9 = vmax.f32 %v9525_v7, 0.0  ;;  %7645 = vmatmul.mubr.msk.f32.vlgmr.msra.gmra.mxu0 %vm1486_vm2, %v1387_v6  ;;  %v1949_v25 = vrot.slane %v1387_v6, 4  ;;  %v1422_v6 = vld [vmem:[%s12171_s6 + $0x40] sm:$0xff]  ;;  %v1714_v7 = vrot.slane %v1382_v28, 4 }
 0x2ad   : > { %7667 = vmatpush3.msra.mxu0 %v1948_v8  ;;  %7682 = vmatprep.mubr.msk.f32.mxu0 %vm8875_vm1, %v8874_v4  ;;  %v2410_v8 = vld [vmem:[%s12171_s6 + $0x3b8] sm:$0xff] }
 0x2ae   : > { %7668 = vmatprep.subr.mxu0 %v8874_v4  ;;  %7569 = vmatmul.mubr.msk.f32.vlgmr.msra.gmra.mxu1 %vm1486_vm2, %v1386_v9  ;;  %v1641_v49 = vrot.slane %v1386_v9, 4  ;;  %v1437_v9 = vld [vmem:[%s12171_s6 + $0xb8] sm:$0xff] }
 0x2af   : > { %7572 = vmatpush3.msra.mxu1 %v1421_v10  ;;  %7669 = vmatpush3.msra.mxu0 %v1947_v11  ;;  %v9628_v34 = vpop.f32.mrf.mxu0  ;;  %v2409_v10 = vld [vmem:[%s12171_s6 + $0x3b0] sm:$0xff] }
 0x2b0   : > { %7573 = vmatprep.subr.mxu1 %v8874_v4  ;;  %7670 = vmatprep.subr.mxu0 %v8874_v4  ;;  %v1436_v11 = vld [vmem:[%s12171_s6 + $0xb0] sm:$0xff] }
 0x2b1   : > { %7574 = vmatpush3.msra.mxu1 %v1420_v12  ;;  %7671 = vmatpush3.msra.mxu0 %v1946_v13  ;;  %v1253_v39 = vpop.f32.mrf.mxu0  ;;  %v2408_v12 = vld [vmem:[%s12171_s6 + $0x3a8] sm:$0xff] }
 0x2b2   : > { %7575 = vmatprep.subr.mxu1 %v8874_v4  ;;  %7672 = vmatprep.subr.mxu0 %v8874_v4  ;;  %v9656_v42 = vadd.f32 %v9521_v2, %v1253_v39  ;;  %v1435_v13 = vld [vmem:[%s12171_s6 + $0xa8] sm:$0xff] }
 0x2b3   : > { %7576 = vmatpush3.msra.mxu1 %v1419_v14  ;;  %7673 = vmatpush3.msra.mxu0 %v1945_v15  ;;  %v2407_v14 = vld [vmem:[%s12171_s6 + $0x3a0] sm:$0xff]  ;;  %v2558_v39 = vld [vmem:[%s12171_s6 + $0x3c8] sm:$0xff] }
 0x2b4   : > { %7577 = vmatprep.subr.mxu1 %v8874_v4  ;;  %7674 = vmatprep.subr.mxu0 %v8874_v4  ;;  %v1388_v46 = vmax.f32 %v9656_v42, 0.0  ;;  %v1434_v15 = vld [vmem:[%s12171_s6 + $0xa0] sm:$0xff] }
 0x2b5   : > { %7578 = vmatpush3.msra.mxu1 %v1418_v16  ;;  %7675 = vmatpush3.msra.mxu0 %v1944_v17  ;;  %v2406_v16 = vld [vmem:[%s12171_s6 + $0x398] sm:$0xff] }
 0x2b6   : > { %7579 = vmatprep.subr.mxu1 %v8874_v4  ;;  %7676 = vmatprep.subr.mxu0 %v8874_v4  ;;  %v2257_v5 = vrot.slane %v1388_v46, 4  ;;  %v1433_v17 = vld [vmem:[%s12171_s6 + $0x98] sm:$0xff] }
 0x2b7   : > { %7580 = vmatpush3.msra.mxu1 %v1417_v18  ;;  %7677 = vmatpush3.msra.mxu0 %v1943_v19  ;;  %v2405_v18 = vld [vmem:[%s12171_s6 + $0x390] sm:$0xff] }
 0x2b8   : > { %7581 = vmatprep.subr.mxu1 %v8874_v4  ;;  %7678 = vmatprep.subr.mxu0 %v8874_v4  ;;  %v1432_v19 = vld [vmem:[%s12171_s6 + $0x90] sm:$0xff] }
 0x2b9   : > { %7582 = vmatpush3.msra.mxu1 %v1416_v20  ;;  %7679 = vmatpush3.msra.mxu0 %v1942_v21  ;;  %v9804_v20 = vadd.f32 %v9628_v34, %v9521_v2  ;;  %v2404_v21 = vld [vmem:[%s12171_s6 + $0x388] sm:$0xff]  ;;  %v1442_v34 = vld [vmem:[%s12171_s6 + $0xe0] sm:$0xff] }
 0x2ba   : > { %7583 = vmatprep.subr.mxu1 %v8874_v4  ;;  %7680 = vmatprep.subr.mxu0 %v8874_v4 }
 0x2bb   : > { %7584 = vmatpush3.msra.mxu1 %v1415_v22  ;;  %7681 = vmatpush3.msra.mxu0 %v1941_v23  ;;  %v1431_v22 = vld [vmem:[%s12171_s6 + $0x88] sm:$0xff]  ;;  %v9816_v23 = vadd.f32 %v9512_v62, %v9521_v2  ;;  %v1430_v62 = vld [vmem:[%s12171_s6 + $0x80] sm:$0xff] }
 0x2bc   : > { %7585 = vmatprep.subr.mxu1 %v8874_v4  ;;  %7683 = vmatmul.mubr.msk.f32.vlgmr.msra.gmra.mxu0 %vm1486_vm2, %v1949_v25  ;;  %v1389_v25 = vmax.f32 %v9804_v20, 0.0 }
 0x2bd   : > { %7704 = vmatprep.subr.mxu0 %v8874_v4  ;;  %7586 = vmatpush3.msra.mxu1 %v1414_v26  ;;  %v1383_v26 = vmax.f32 %v9816_v23, 0.0  ;;  %v1456_v23 = vld [vmem:[%s12171_s6 + $0x150] sm:$0xff] }
 0x2be   : > { %7587 = vmatprep.mubr.msk.f32.mxu1 %vm8875_vm1, %v8874_v4  ;;  %7705 = vmatpush3.msra.mxu0 %v2102_v27  ;;  %v2564_v27 = vld [vmem:[%s12171_s6 + $0x3f8] sm:$0xff]  ;;  %v2565_v42 = vrot.slane %v1389_v25, 4 }
 0x2bf   : > { %7588 = vmatmul.mubr.msk.f32.vlgmr.msra.gmra.mxu1 %vm1486_vm2, %v1382_v28  ;;  %7590 = vmatprep.subr.mxu1 %v8874_v4  ;;  %v1445_v28 = vld [vmem:[%s12171_s6 + $0xf8] sm:$0xff] }
 0x2c0   : > { %7706 = vmatprep.subr.mxu0 %v8874_v4  ;;  %7591 = vmatpush3.msra.mxu1 %v1640_v29  ;;  %v2563_v29 = vld [vmem:[%s12171_s6 + $0x3f0] sm:$0xff] }
 0x2c1   : > { %7707 = vmatpush3.msra.mxu0 %v2101_v30  ;;  %7592 = vmatprep.subr.mxu1 %v8874_v4  ;;  %v1444_v30 = vld [vmem:[%s12171_s6 + $0xf0] sm:$0xff] }
 0x2c2   : > { %7708 = vmatprep.subr.mxu0 %v8874_v4  ;;  %7593 = vmatpush3.msra.mxu1 %v1639_v31  ;;  %v2562_v31 = vld [vmem:[%s12171_s6 + $0x3e8] sm:$0xff] }
 0x2c3   : > { %7709 = vmatpush3.msra.mxu0 %v2100_v32  ;;  %7594 = vmatprep.subr.mxu1 %v8874_v4  ;;  %v1443_v32 = vld [vmem:[%s12171_s6 + $0xe8] sm:$0xff] }
 0x2c4   : > { %7710 = vmatprep.subr.mxu0 %v8874_v4  ;;  %7595 = vmatpush3.msra.mxu1 %v1638_v33  ;;  %v2561_v33 = vld [vmem:[%s12171_s6 + $0x3e0] sm:$0xff] }
 0x2c5   : > { %7711 = vmatpush3.msra.mxu0 %v2099_v35  ;;  %7596 = vmatprep.subr.mxu1 %v8874_v4  ;;  %v2560_v35 = vld [vmem:[%s12171_s6 + $0x3d8] sm:$0xff] }
 0x2c6   : > { %7712 = vmatprep.subr.mxu0 %v8874_v4  ;;  %7597 = vmatpush3.msra.mxu1 %v1637_v36  ;;  %v1441_v36 = vld [vmem:[%s12171_s6 + $0xd8] sm:$0xff] }
 0x2c7   : > { %7713 = vmatpush3.msra.mxu0 %v2098_v37  ;;  %7598 = vmatprep.subr.mxu1 %v8874_v4  ;;  %v2559_v37 = vld [vmem:[%s12171_s6 + $0x3d0] sm:$0xff] }
 0x2c8   : > { %7714 = vmatprep.subr.mxu0 %v8874_v4  ;;  %7599 = vmatpush3.msra.mxu1 %v1636_v38  ;;  %v1440_v38 = vld [vmem:[%s12171_s6 + $0xd0] sm:$0xff] }
 0x2c9   : > { %7715 = vmatpush3.msra.mxu0 %v2097_v40  ;;  %7600 = vmatprep.subr.mxu1 %v8874_v4  ;;  %v1439_v40 = vld [vmem:[%s12171_s6 + $0xc8] sm:$0xff] }
 0x2ca   : > { %7716 = vmatprep.subr.mxu0 %v8874_v4  ;;  %7601 = vmatpush3.msra.mxu1 %v1635_v41  ;;  %v2557_v41 = vld [vmem:[%s12171_s6 + $0x3c0] sm:$0xff] }
 0x2cb   : > { %7717 = vmatpush3.msra.mxu0 %v2096_v43  ;;  %7602 = vmatprep.subr.mxu1 %v8874_v4  ;;  %v1438_v43 = vld [vmem:[%s12171_s6 + $0xc0] sm:$0xff] }
 0x2cc   : > { %7718 = vmatprep.subr.mxu0 %v8874_v4  ;;  %7603 = vmatpush3.msra.mxu1 %v1634_v44  ;;  %v2022_v44 = vrot.slane %v1383_v26, 4 }
 0x2cd   : > { %7719 = vmatpush3.msra.mxu0 %v2095_v45  ;;  %7604 = vmatprep.subr.mxu1 %v8874_v4  ;;  %v2718_v45 = vld [vmem:[%s12171_s6 + $0x438] sm:$0xff] }
 0x2ce   : > { %7720 = vmatprep.mubr.msk.f32.mxu0 %vm8875_vm1, %v8874_v4  ;;  %7742 = vmatprep.subr.mxu0 %v8874_v4 }
 0x2cf   : > { %7605 = vmatpush3.msra.mxu1 %v1633_v47  ;;  %7606 = vmatprep.mubr.msk.f32.mxu1 %vm8875_vm1, %v8874_v4  ;;  %v2717_v47 = vld [vmem:[%s12171_s6 + $0x430] sm:$0xff] }
 0x2d0   : > { %7721 = vmatmul.mubr.msk.f32.vlgmr.msra.gmra.mxu0 %vm1486_vm2, %v1388_v46  ;;  %7607 = vmatmul.mubr.msk.f32.vlgmr.msra.gmra.mxu1 %vm1486_vm2, %v1641_v49  ;;  %v1453_v46 = vld [vmem:[%s12171_s6 + $0x138] sm:$0xff]  ;;  %v1452_v49 = vld [vmem:[%s12171_s6 + $0x130] sm:$0xff] }
 0x2d1   : > { %7743 = vmatpush3.msra.mxu0 %v2256_v50  ;;  %7609 = vmatprep.subr.mxu1 %v8874_v4  ;;  %v9920_v50 = vpop.f32.mrf.mxu0 }
 0x2d2   : > { %7744 = vmatprep.subr.mxu0 %v8874_v4  ;;  %7610 = vmatpush3.msra.mxu1 %v1429_v51  ;;  %v2716_v51 = vld [vmem:[%s12171_s6 + $0x428] sm:$0xff]  ;;  %v10035_v20 = vadd.f32 %v9920_v50, %v9521_v2 }
 0x2d3   : > { %7745 = vmatpush3.msra.mxu0 %v2255_v52  ;;  %7611 = vmatprep.subr.mxu1 %v8874_v4  ;;  %v1451_v52 = vld [vmem:[%s12171_s6 + $0x128] sm:$0xff] }
 0x2d4   : > { %7746 = vmatprep.subr.mxu0 %v8874_v4  ;;  %7612 = vmatpush3.msra.mxu1 %v1428_v53  ;;  %v2715_v53 = vld [vmem:[%s12171_s6 + $0x420] sm:$0xff] }
 0x2d5   : > { %7747 = vmatpush3.msra.mxu0 %v2254_v54  ;;  %7613 = vmatprep.subr.mxu1 %v8874_v4  ;;  %v1450_v54 = vld [vmem:[%s12171_s6 + $0x120] sm:$0xff] }
 0x2d6   : > { %7748 = vmatprep.subr.mxu0 %v8874_v4  ;;  %7614 = vmatpush3.msra.mxu1 %v1427_v55  ;;  %v1263_v55 = vpop.f32.mrf.mxu0 }
 0x2d7   : > { %7749 = vmatpush3.msra.mxu0 %v2253_v56  ;;  %7615 = vmatprep.subr.mxu1 %v8874_v4  ;;  %v2714_v56 = vld [vmem:[%s12171_s6 + $0x418] sm:$0xff] }
 0x2d8   : > { %7750 = vmatprep.subr.mxu0 %v8874_v4  ;;  %7616 = vmatpush3.msra.mxu1 %v1426_v57  ;;  %v1449_v57 = vld [vmem:[%s12171_s6 + $0x118] sm:$0xff] }
 0x2d9   : > { %7751 = vmatpush3.msra.mxu0 %v2252_v58  ;;  %7617 = vmatprep.subr.mxu1 %v8874_v4  ;;  %v9948_v58 = vadd.f32 %v9521_v2, %v1263_v55 }
 0x2da   : > { %7752 = vmatprep.subr.mxu0 %v8874_v4  ;;  %7618 = vmatpush3.msra.mxu1 %v1425_v59  ;;  %v2713_v59 = vld [vmem:[%s12171_s6 + $0x410] sm:$0xff] }
 0x2db   : > { %7753 = vmatpush3.msra.mxu0 %v2251_v60  ;;  %7619 = vmatprep.subr.mxu1 %v8874_v4  ;;  %v1448_v60 = vld [vmem:[%s12171_s6 + $0x110] sm:$0xff] }
 0x2dc   : > { %7754 = vmatprep.subr.mxu0 %v8874_v4  ;;  %7620 = vmatpush3.msra.mxu1 %v1424_v61  ;;  %v2712_v61 = vld [vmem:[%s12171_s6 + $0x408] sm:$0xff] }
 0x2dd   : > { %7755 = vmatpush3.msra.mxu0 %v2250_v63  ;;  %7621 = vmatprep.subr.mxu1 %v8874_v4  ;;  %v1447_v63 = vld [vmem:[%s12171_s6 + $0x108] sm:$0xff] }
 0x2de   : > { %7756 = vmatprep.subr.mxu0 %v8874_v4  ;;  %7622 = vmatpush3.msra.mxu1 %v1423_v48  ;;  %v1390_v48 = vmax.f32 %v9948_v58, 0.0  ;;  %v2963_v58 = vld [vmem:[%s12171_s6 + $0x4f0] sm:$0xff] }
 0x2df   : > { %7757 = vmatpush3.msra.mxu0 %v2249_v3  ;;  %7623 = vmatprep.subr.mxu1 %v8874_v4  ;;  %v2711_v3 = vld [vmem:[%s12171_s6 + $0x400] sm:$0xff] }
 0x2e0   : > { %7758 = vmatprep.mubr.msk.f32.mxu0 %vm8875_vm1, %v8874_v4  ;;  %7780 = vmatprep.subr.mxu0 %v8874_v4 }
 0x2e1   : > { %7624 = vmatpush3.msra.mxu1 %v1422_v6  ;;  %7625 = vmatprep.mubr.msk.f32.mxu1 %vm8875_vm1, %v8874_v4  ;;  %v1446_v6 = vld [vmem:[%s12171_s6 + $0x100] sm:$0xff] }
 0x2e2   : > { %7759 = vmatmul.mubr.msk.f32.vlgmr.msra.gmra.mxu0 %vm1486_vm2, %v2257_v5  ;;  %7626 = vmatmul.mubr.msk.f32.vlgmr.msra.gmra.mxu1 %vm1486_vm2, %v1714_v7  ;;  %v9972_v5 = vadd.f32 %v9521_v2, %v9516_v1  ;;  %v2882_v7 = vld [vmem:[%s12171_s6 + $0x4b8] sm:$0xff]  ;;  %v9988_v1 = vpop.f32.mrf.mxu0 }
 0x2e3   : > { %7781 = vmatpush3.msra.mxu0 %v2410_v8  ;;  %7647 = vmatprep.subr.mxu1 %v8874_v4 }
 0x2e4   : > { %7782 = vmatprep.subr.mxu0 %v8874_v4  ;;  %7648 = vmatpush3.msra.mxu1 %v1437_v9  ;;  %v1384_v8 = vmax.f32 %v9972_v5, 0.0  ;;  %v1461_v9 = vld [vmem:[%s12171_s6 + $0x178] sm:$0xff] }
 0x2e5   : > { %7783 = vmatpush3.msra.mxu0 %v2409_v10  ;;  %7649 = vmatprep.subr.mxu1 %v8874_v4  ;;  %v2881_v10 = vld [vmem:[%s12171_s6 + $0x4b0] sm:$0xff] }
 0x2e6   : > { %7784 = vmatprep.subr.mxu0 %v8874_v4  ;;  %7650 = vmatpush3.msra.mxu1 %v1436_v11  ;;  %v1460_v11 = vld [vmem:[%s12171_s6 + $0x170] sm:$0xff] }
 0x2e7   : > { %7785 = vmatpush3.msra.mxu0 %v2408_v12  ;;  %7651 = vmatprep.subr.mxu1 %v8874_v4  ;;  %v2880_v12 = vld [vmem:[%s12171_s6 + $0x4a8] sm:$0xff] }
 0x2e8   : > { %7786 = vmatprep.subr.mxu0 %v8874_v4  ;;  %7652 = vmatpush3.msra.mxu1 %v1435_v13  ;;  %v10009_v13 = vpop.f32.mrf.mxu0 }
 0x2e9   : > { %7787 = vmatpush3.msra.mxu0 %v2407_v14  ;;  %7653 = vmatprep.subr.mxu1 %v8874_v4  ;;  %v1459_v14 = vld [vmem:[%s12171_s6 + $0x168] sm:$0xff] }
 0x2ea   : > { %7788 = vmatprep.subr.mxu0 %v8874_v4  ;;  %7654 = vmatpush3.msra.mxu1 %v1434_v15  ;;  %v2879_v15 = vld [vmem:[%s12171_s6 + $0x4a0] sm:$0xff] }
 0x2eb   : > { %7789 = vmatpush3.msra.mxu0 %v2406_v16  ;;  %7655 = vmatprep.subr.mxu1 %v8874_v4  ;;  %v10019_v16 = vpop.f32.mrf.mxu0 }
 0x2ec   : > { %7790 = vmatprep.subr.mxu0 %v8874_v4  ;;  %7656 = vmatpush3.msra.mxu1 %v1433_v17  ;;  %v1458_v17 = vld [vmem:[%s12171_s6 + $0x160] sm:$0xff] }
 0x2ed   : > { %7791 = vmatpush3.msra.mxu0 %v2405_v18  ;;  %7657 = vmatprep.subr.mxu1 %v8874_v4  ;;  %v2878_v18 = vld [vmem:[%s12171_s6 + $0x498] sm:$0xff] }
 0x2ee   : > { %7792 = vmatprep.subr.mxu0 %v8874_v4  ;;  %7658 = vmatpush3.msra.mxu1 %v1432_v19  ;;  %v1457_v19 = vld [vmem:[%s12171_s6 + $0x158] sm:$0xff] }
 0x2ef   : > { %7793 = vmatpush3.msra.mxu0 %v2404_v21  ;;  %7659 = vmatprep.subr.mxu1 %v8874_v4  ;;  %v2877_v21 = vld [vmem:[%s12171_s6 + $0x490] sm:$0xff] }
 0x2f0   : > { %7794 = vmatprep.subr.mxu0 %v8874_v4  ;;  %7660 = vmatpush3.msra.mxu1 %v1431_v22  ;;  %v10041_v22 = vpop.f32.mrf.mxu0 }
 0x2f1   : > { %7795 = vmatpush3.msra.mxu0 %v2403_v24  ;;  %7661 = vmatprep.subr.mxu1 %v8874_v4  ;;  %v2876_v24 = vld [vmem:[%s12171_s6 + $0x488] sm:$0xff] }
 0x2f2   : > { %7796 = vmatprep.mubr.msk.f32.mxu0 %vm8875_vm1, %v8874_v4  ;;  %7818 = vmatprep.subr.mxu0 %v8874_v4 }
 0x2f3   : > { %7662 = vmatpush3.msra.mxu1 %v1430_v62  ;;  %7663 = vmatprep.mubr.msk.f32.mxu1 %vm8875_vm1, %v8874_v4  ;;  %v1391_v62 = vmax.f32 %v10035_v20, 0.0  ;;  %v3127_v20 = vld [vmem:[%s12171_s6 + $0x570] sm:$0xff] }
 0x2f4   : > { %7797 = vmatmul.mubr.msk.f32.vlgmr.msra.gmra.mxu0 %vm1486_vm2, %v1389_v25  ;;  %7664 = vmatmul.mubr.msk.f32.vlgmr.msra.gmra.mxu1 %vm1486_vm2, %v1383_v26  ;;  %v1455_v25 = vld [vmem:[%s12171_s6 + $0x148] sm:$0xff]  ;;  %v2875_v26 = vld [vmem:[%s12171_s6 + $0x480] sm:$0xff] }
 0x2f5   : > { %7819 = vmatpush3.msra.mxu0 %v2564_v27  ;;  %7685 = vmatprep.subr.mxu1 %v8874_v4  ;;  %v10060_v27 = vpop.f32.mrf.mxu0 }
 0x2f6   : > { %7820 = vmatprep.subr.mxu0 %v8874_v4  ;;  %7686 = vmatpush3.msra.mxu1 %v1445_v28  ;;  %v1454_v28 = vld [vmem:[%s12171_s6 + $0x140] sm:$0xff] }
 0x2f7   : > { %7821 = vmatpush3.msra.mxu0 %v2563_v29  ;;  %7687 = vmatprep.subr.mxu1 %v8874_v4  ;;  %v3046_v29 = vld [vmem:[%s12171_s6 + $0x538] sm:$0xff] }
 0x2f8   : > { %7822 = vmatprep.subr.mxu0 %v8874_v4  ;;  %7688 = vmatpush3.msra.mxu1 %v1444_v30  ;;  %v10076_v30 = vpop.f32.mrf.mxu0 }
 0x2f9   : > { %7823 = vmatpush3.msra.mxu0 %v2562_v31  ;;  %7689 = vmatprep.subr.mxu1 %v8874_v4  ;;  %v2330_v31 = vrot.slane %v1384_v8, 4 }
 0x2fa   : > { %7824 = vmatprep.subr.mxu0 %v8874_v4  ;;  %7690 = vmatpush3.msra.mxu1 %v1443_v32  ;;  %v1469_v32 = vld [vmem:[%s12171_s6 + $0x1b8] sm:$0xff] }
 0x2fb   : > { %7825 = vmatpush3.msra.mxu0 %v2561_v33  ;;  %7691 = vmatprep.subr.mxu1 %v8874_v4  ;;  %v3045_v33 = vld [vmem:[%s12171_s6 + $0x530] sm:$0xff] }
 0x2fc   : > { %7826 = vmatprep.subr.mxu0 %v8874_v4  ;;  %7692 = vmatpush3.msra.mxu1 %v1442_v34  ;;  %v1468_v34 = vld [vmem:[%s12171_s6 + $0x1b0] sm:$0xff] }
 0x2fd   : > { %7827 = vmatpush3.msra.mxu0 %v2560_v35  ;;  %7693 = vmatprep.subr.mxu1 %v8874_v4  ;;  %v3044_v35 = vld [vmem:[%s12171_s6 + $0x528] sm:$0xff] }
 0x2fe   : > { %7828 = vmatprep.subr.mxu0 %v8874_v4  ;;  %7694 = vmatpush3.msra.mxu1 %v1441_v36  ;;  %v10096_v36 = vpop.f32.mrf.mxu0 }
 0x2ff   : > { %7829 = vmatpush3.msra.mxu0 %v2559_v37  ;;  %7695 = vmatprep.subr.mxu1 %v8874_v4  ;;  %v1467_v37 = vld [vmem:[%s12171_s6 + $0x1a8] sm:$0xff] }
 0x300   : > { %7830 = vmatprep.subr.mxu0 %v8874_v4  ;;  %7696 = vmatpush3.msra.mxu1 %v1440_v38  ;;  %v3043_v38 = vld [vmem:[%s12171_s6 + $0x520] sm:$0xff] }
 0x301   : > { %7831 = vmatpush3.msra.mxu0 %v2558_v39  ;;  %7697 = vmatprep.subr.mxu1 %v8874_v4  ;;  %v1466_v39 = vld [vmem:[%s12171_s6 + $0x1a0] sm:$0xff] }
 0x302   : > { %7832 = vmatprep.subr.mxu0 %v8874_v4  ;;  %7698 = vmatpush3.msra.mxu1 %v1439_v40  ;;  %v3042_v40 = vld [vmem:[%s12171_s6 + $0x518] sm:$0xff] }
 0x303   : > { %7833 = vmatpush3.msra.mxu0 %v2557_v41  ;;  %7699 = vmatprep.subr.mxu1 %v8874_v4  ;;  %v10114_v41 = vpop.f32.mrf.mxu0 }
 0x304   : > { %7834 = vmatprep.mubr.msk.f32.mxu0 %vm8875_vm1, %v8874_v4  ;;  %7856 = vmatprep.subr.mxu0 %v8874_v4 }
 0x305   : > { %7700 = vmatpush3.msra.mxu1 %v1438_v43  ;;  %7701 = vmatprep.mubr.msk.f32.mxu1 %vm8875_vm1, %v8874_v4  ;;  %v10123_v43 = vadd.f32 %v9521_v2, %v10009_v13 }
 0x306   : > { %7835 = vmatmul.mubr.msk.f32.vlgmr.msra.gmra.mxu0 %vm1486_vm2, %v2565_v42  ;;  %7702 = vmatmul.mubr.msk.f32.vlgmr.msra.gmra.mxu1 %vm1486_vm2, %v2022_v44  ;;  %v1465_v42 = vld [vmem:[%s12171_s6 + $0x198] sm:$0xff]  ;;  %v3041_v44 = vld [vmem:[%s12171_s6 + $0x510] sm:$0xff] }
 0x307   : > { %7857 = vmatpush3.msra.mxu0 %v2718_v45  ;;  %7723 = vmatprep.subr.mxu1 %v8874_v4  ;;  %v1464_v45 = vld [vmem:[%s12171_s6 + $0x190] sm:$0xff]  ;;  %v1392_v50 = vmax.f32 %v10123_v43, 0.0 }
 0x308   : > { %7858 = vmatprep.subr.mxu0 %v8874_v4  ;;  %7724 = vmatpush3.msra.mxu1 %v1453_v46  ;;  %v3040_v46 = vld [vmem:[%s12171_s6 + $0x508] sm:$0xff]  ;;  %v3291_v43 = vld [vmem:[%s12171_s6 + $0x5f0] sm:$0xff] }
 0x309   : > { %7859 = vmatpush3.msra.mxu0 %v2717_v47  ;;  %7725 = vmatprep.subr.mxu1 %v8874_v4  ;;  %v10136_v47 = vpop.f32.mrf.mxu0 }
 0x30a   : > { %7860 = vmatprep.subr.mxu0 %v8874_v4  ;;  %7726 = vmatpush3.msra.mxu1 %v1452_v49  ;;  %v1463_v49 = vld [vmem:[%s12171_s6 + $0x188] sm:$0xff] }
 0x30b   : > { %7861 = vmatpush3.msra.mxu0 %v2716_v51  ;;  %7727 = vmatprep.subr.mxu1 %v8874_v4  ;;  %v3039_v51 = vld [vmem:[%s12171_s6 + $0x500] sm:$0xff] }
 0x30c   : > { %7862 = vmatprep.subr.mxu0 %v8874_v4  ;;  %7728 = vmatpush3.msra.mxu1 %v1451_v52  ;;  %v10149_v52 = vadd.f32 %v9514_v0, %v9521_v2  ;;  %v3210_v0 = vld [vmem:[%s12171_s6 + $0x5b8] sm:$0xff] }
 0x30d   : > { %7863 = vmatpush3.msra.mxu0 %v2715_v53  ;;  %7729 = vmatprep.subr.mxu1 %v8874_v4  ;;  %v1462_v53 = vld [vmem:[%s12171_s6 + $0x180] sm:$0xff] }
 0x30e   : > { %7864 = vmatprep.subr.mxu0 %v8874_v4  ;;  %7730 = vmatpush3.msra.mxu1 %v1450_v54  ;;  %v10156_v54 = vpop.f32.mrf.mxu0  ;;  %v1385_v55 = vmax.f32 %v10149_v52, 0.0  ;;  %v3538_v52 = vld [vmem:[%s12171_s6 + $0x6b8] sm:$0xff] }
 0x30f   : > { %7865 = vmatpush3.msra.mxu0 %v2714_v56  ;;  %7731 = vmatprep.subr.mxu1 %v8874_v4  ;;  %v1477_v56 = vld [vmem:[%s12171_s6 + $0x1f8] sm:$0xff] }
 0x310   : > { %7866 = vmatprep.subr.mxu0 %v8874_v4  ;;  %7732 = vmatpush3.msra.mxu1 %v1449_v57  ;;  %v3209_v57 = vld [vmem:[%s12171_s6 + $0x5b0] sm:$0xff] }
 0x311   : > { %7867 = vmatpush3.msra.mxu0 %v2713_v59  ;;  %7733 = vmatprep.subr.mxu1 %v8874_v4  ;;  %v10177_v59 = vpop.f32.mrf.mxu0 }
 0x312   : > { %7868 = vmatprep.subr.mxu0 %v8874_v4  ;;  %7734 = vmatpush3.msra.mxu1 %v1448_v60  ;;  %v1476_v60 = vld [vmem:[%s12171_s6 + $0x1f0] sm:$0xff] }
 0x313   : > { %7869 = vmatpush3.msra.mxu0 %v2712_v61  ;;  %7735 = vmatprep.subr.mxu1 %v8874_v4  ;;  %v3208_v61 = vld [vmem:[%s12171_s6 + $0x5a8] sm:$0xff]  ;;  %v10196_v5 = vpop.f32.mrf.mxu0 }
 0x314   : > { %7870 = vmatprep.subr.mxu0 %v8874_v4  ;;  %7736 = vmatpush3.msra.mxu1 %v1447_v63  ;;  %v1475_v63 = vld [vmem:[%s12171_s6 + $0x1e8] sm:$0xff] }
 0x315   : > { %7871 = vmatpush3.msra.mxu0 %v2711_v3  ;;  %7872 = vmatprep.mubr.msk.f32.mxu0 %vm8875_vm1, %v8874_v4  ;;  %v3207_v3 = vld [vmem:[%s12171_s6 + $0x5a0] sm:$0xff] }
 0x316   : > { %7737 = vmatprep.subr.mxu1 %v8874_v4  ;;  %7873 = vmatmul.mubr.msk.f32.vlgmr.msra.gmra.mxu0 %vm1486_vm2, %v1390_v48 }
 0x317   : > { %7894 = vmatprep.subr.mxu0 %v8874_v4  ;;  %7738 = vmatpush3.msra.mxu1 %v1446_v6  ;;  %v1474_v6 = vld [vmem:[%s12171_s6 + $0x1e0] sm:$0xff] }
 0x318   : > { %7739 = vmatprep.mubr.msk.f32.mxu1 %vm8875_vm1, %v8874_v4  ;;  %7895 = vmatpush3.msra.mxu0 %v2882_v7  ;;  %v3206_v7 = vld [vmem:[%s12171_s6 + $0x598] sm:$0xff] }
 0x319   : > { %7740 = vmatmul.mubr.msk.f32.vlgmr.msra.gmra.mxu1 %vm1486_vm2, %v1384_v8  ;;  %7761 = vmatprep.subr.mxu1 %v8874_v4  ;;  %v1473_v8 = vld [vmem:[%s12171_s6 + $0x1d8] sm:$0xff] }
 0x31a   : > { %7896 = vmatprep.subr.mxu0 %v8874_v4  ;;  %7762 = vmatpush3.msra.mxu1 %v1461_v9  ;;  %v10212_v9 = vadd.f32 %v9988_v1, %v9521_v2  ;;  %v3204_v2 = vld [vmem:[%s12171_s6 + $0x588] sm:$0xff] }
 0x31b   : > { %7897 = vmatpush3.msra.mxu0 %v2881_v10  ;;  %7763 = vmatprep.subr.mxu1 %v8874_v4  ;;  %v3205_v10 = vld [vmem:[%s12171_s6 + $0x590] sm:$0xff]  ;;  %v1471_v1 = vld [vmem:[%s12171_s6 + $0x1c8] sm:$0xff] }
 0x31c   : > { %7898 = vmatprep.subr.mxu0 %v8874_v4  ;;  %7764 = vmatpush3.msra.mxu1 %v1460_v11  ;;  %v10218_v11 = vpop.f32.mrf.mxu0  ;;  %v1393_v13 = vmax.f32 %v10212_v9, 0.0  ;;  %v3455_v9 = vld [vmem:[%s12171_s6 + $0x670] sm:$0xff] }
 0x31d   : > { %7899 = vmatpush3.msra.mxu0 %v2880_v12  ;;  %7765 = vmatprep.subr.mxu1 %v8874_v4  ;;  %v1472_v12 = vld [vmem:[%s12171_s6 + $0x1d0] sm:$0xff] }
 0x31e   : > { %7900 = vmatprep.subr.mxu0 %v8874_v4  ;;  %7766 = vmatpush3.msra.mxu1 %v1459_v14  ;;  %v3203_v14 = vld [vmem:[%s12171_s6 + $0x580] sm:$0xff] }
 0x31f   : > { %7901 = vmatpush3.msra.mxu0 %v2879_v15  ;;  %7767 = vmatprep.subr.mxu1 %v8874_v4  ;;  %v10237_v15 = vpop.f32.mrf.mxu0 }
 0x320   : > { %7902 = vmatprep.subr.mxu0 %v8874_v4  ;;  %7768 = vmatpush3.msra.mxu1 %v1458_v17  ;;  %v1470_v17 = vld [vmem:[%s12171_s6 + $0x1c0] sm:$0xff] }
 0x321   : > { %7903 = vmatpush3.msra.mxu0 %v2878_v18  ;;  %7769 = vmatprep.subr.mxu1 %v8874_v4  ;;  %v3374_v18 = vld [vmem:[%s12171_s6 + $0x638] sm:$0xff] }
 0x322   : > { %7904 = vmatprep.subr.mxu0 %v8874_v4  ;;  %7770 = vmatpush3.msra.mxu1 %v1457_v19  ;;  %v10253_v19 = vpop.f32.mrf.mxu0 }
 0x323   : > { %7905 = vmatpush3.msra.mxu0 %v2877_v21  ;;  %7771 = vmatprep.subr.mxu1 %v8874_v4  ;;  %v2638_v21 = vrot.slane %v1385_v55, 4 }
 0x324   : > { %7906 = vmatprep.subr.mxu0 %v8874_v4  ;;  %7772 = vmatpush3.msra.mxu1 %v1456_v23  ;;  %v2800_v23 = vld [vmem:[%s12171_s6 + $0x478] sm:$0xff] }
 0x325   : > { %7907 = vmatpush3.msra.mxu0 %v2876_v24  ;;  %7773 = vmatprep.subr.mxu1 %v8874_v4  ;;  %v3373_v24 = vld [vmem:[%s12171_s6 + $0x630] sm:$0xff] }
 0x326   : > { %7908 = vmatprep.subr.mxu0 %v8874_v4  ;;  %7774 = vmatpush3.msra.mxu1 %v1455_v25  ;;  %v2799_v25 = vld [vmem:[%s12171_s6 + $0x470] sm:$0xff] }
 0x327   : > { %7909 = vmatpush3.msra.mxu0 %v2875_v26  ;;  %7910 = vmatprep.mubr.msk.f32.mxu0 %vm8875_vm1, %v8874_v4  ;;  %v3372_v26 = vld [vmem:[%s12171_s6 + $0x628] sm:$0xff] }
 0x328   : > { %7775 = vmatprep.subr.mxu1 %v8874_v4  ;;  %7911 = vmatmul.mubr.msk.f32.vlgmr.msra.gmra.mxu0 %vm1486_vm2, %v1391_v62 }
 0x329   : > { %7932 = vmatprep.subr.mxu0 %v8874_v4  ;;  %7776 = vmatpush3.msra.mxu1 %v1454_v28  ;;  %v10273_v28 = vpop.f32.mrf.mxu0 }
 0x32a   : > { %7777 = vmatprep.mubr.msk.f32.mxu1 %vm8875_vm1, %v8874_v4  ;;  %7933 = vmatpush3.msra.mxu0 %v3046_v29  ;;  %v2798_v29 = vld [vmem:[%s12171_s6 + $0x468] sm:$0xff] }
 0x32b   : > { %7778 = vmatmul.mubr.msk.f32.vlgmr.msra.gmra.mxu1 %vm1486_vm2, %v2330_v31  ;;  %7799 = vmatprep.subr.mxu1 %v8874_v4  ;;  %v3371_v31 = vld [vmem:[%s12171_s6 + $0x620] sm:$0xff] }
 0x32c   : > { %7934 = vmatprep.subr.mxu0 %v8874_v4  ;;  %7800 = vmatpush3.msra.mxu1 %v1469_v32  ;;  %v2797_v32 = vld [vmem:[%s12171_s6 + $0x460] sm:$0xff] }
 0x32d   : > { %7935 = vmatpush3.msra.mxu0 %v3045_v33  ;;  %7801 = vmatprep.subr.mxu1 %v8874_v4  ;;  %v3370_v33 = vld [vmem:[%s12171_s6 + $0x618] sm:$0xff] }
 0x32e   : > { %7936 = vmatprep.subr.mxu0 %v8874_v4  ;;  %7802 = vmatpush3.msra.mxu1 %v1468_v34  ;;  %v10291_v34 = vpop.f32.mrf.mxu0 }
 0x32f   : > { %7937 = vmatpush3.msra.mxu0 %v3044_v35  ;;  %7803 = vmatprep.subr.mxu1 %v8874_v4  ;;  %v2796_v35 = vld [vmem:[%s12171_s6 + $0x458] sm:$0xff] }
 0x330   : > { %7938 = vmatprep.subr.mxu0 %v8874_v4  ;;  %7804 = vmatpush3.msra.mxu1 %v1467_v37  ;;  %v10301_v37 = vld [vmem:[%s12170_s5] ss:$0 sm:$0xff] }
 0x331   : > { %7939 = vmatpush3.msra.mxu0 %v3043_v38  ;;  %7805 = vmatprep.subr.mxu1 %v8874_v4  ;;  %v10305_v38 = vadd.f32 %v10301_v37, %v10041_v22  ;;  %v10318_v22 = vpop.f32.mrf.mxu0 }
 0x332   : > { %7940 = vmatprep.subr.mxu0 %v8874_v4  ;;  %7806 = vmatpush3.msra.mxu1 %v1466_v39  ;;  %v3369_v39 = vld [vmem:[%s12171_s6 + $0x610] sm:$0xff] }
 0x333   : > { %7941 = vmatpush3.msra.mxu0 %v3042_v40  ;;  %7807 = vmatprep.subr.mxu1 %v8874_v4  ;;  %v2795_v40 = vld [vmem:[%s12171_s6 + $0x450] sm:$0xff] }
 0x334   : > { %7942 = vmatprep.subr.mxu0 %v8874_v4  ;;  %7808 = vmatpush3.msra.mxu1 %v1465_v42  ;;  %v3368_v42 = vld [vmem:[%s12171_s6 + $0x608] sm:$0xff] }
 0x335   : > { %7943 = vmatpush3.msra.mxu0 %v3041_v44  ;;  %7809 = vmatprep.subr.mxu1 %v8874_v4  ;;  %v2794_v44 = vld [vmem:[%s12171_s6 + $0x448] sm:$0xff] }
 0x336   : > { %7944 = vmatprep.subr.mxu0 %v8874_v4  ;;  %7810 = vmatpush3.msra.mxu1 %v1464_v45  ;;  %v1394_v45 = vmax.f32 %v10305_v38, 0.0  ;;  %v3619_v38 = vld [vmem:[%s12171_s6 + $0x6f0] sm:$0xff] }
 0x337   : > { %7945 = vmatpush3.msra.mxu0 %v3040_v46  ;;  %7811 = vmatprep.subr.mxu1 %v8874_v4  ;;  %v3367_v46 = vld [vmem:[%s12171_s6 + $0x600] sm:$0xff] }
 0x338   : > { %7946 = vmatprep.subr.mxu0 %v8874_v4  ;;  %7812 = vmatpush3.msra.mxu1 %v1463_v49  ;;  %v2793_v49 = vld [vmem:[%s12171_s6 + $0x440] sm:$0xff] }
 0x339   : > { %7947 = vmatpush3.msra.mxu0 %v3039_v51  ;;  %7948 = vmatprep.mubr.msk.f32.mxu0 %vm8875_vm1, %v8874_v4  ;;  %v10334_v51 = vpop.f32.mrf.mxu0 }
 0x33a   : > { %7813 = vmatprep.subr.mxu1 %v8874_v4  ;;  %7949 = vmatmul.mubr.msk.f32.vlgmr.msra.gmra.mxu0 %vm1486_vm2, %v1392_v50 }
 0x33b   : > { %7970 = vmatprep.subr.mxu0 %v8874_v4  ;;  %7814 = vmatpush3.msra.mxu1 %v1462_v53  ;;  %v2801_v53 = vrot.slane %v1390_v48, 4  ;;  %v3536_v48 = vld [vmem:[%s12171_s6 + $0x6a8] sm:$0xff] }
 0x33c   : > { %7815 = vmatprep.mubr.msk.f32.mxu1 %vm8875_vm1, %v8874_v4  ;;  %7971 = vmatpush3.msra.mxu0 %v3210_v0  ;;  %v2964_v0 = vld [vmem:[%s12171_s6 + $0x4f8] sm:$0xff] }
 0x33d   : > { %7816 = vmatmul.mubr.msk.f32.vlgmr.msra.gmra.mxu1 %vm1486_vm2, %v1385_v55  ;;  %7837 = vmatprep.subr.mxu1 %v8874_v4  ;;  %v3537_v55 = vld [vmem:[%s12171_s6 + $0x6b0] sm:$0xff] }
 0x33e   : > { %7972 = vmatprep.subr.mxu0 %v8874_v4  ;;  %7838 = vmatpush3.msra.mxu1 %v1477_v56  ;;  %v10356_v56 = vpop.f32.mrf.mxu0 }
 0x33f   : > { %7973 = vmatpush3.msra.mxu0 %v3209_v57  ;;  %7839 = vmatprep.subr.mxu1 %v8874_v4  ;;  %v2962_v57 = vld [vmem:[%s12171_s6 + $0x4e8] sm:$0xff] }
 0x340   : > { %7974 = vmatprep.subr.mxu0 %v8874_v4  ;;  %7840 = vmatpush3.msra.mxu1 %v1476_v60  ;;  %v3535_v60 = vld [vmem:[%s12171_s6 + $0x6a0] sm:$0xff] }
 0x341   : > { %7975 = vmatpush3.msra.mxu0 %v3208_v61  ;;  %7841 = vmatprep.subr.mxu1 %v8874_v4  ;;  %v10375_v61 = vpop.f32.mrf.mxu0 }
 0x342   : > { %7976 = vmatprep.subr.mxu0 %v8874_v4  ;;  %7842 = vmatpush3.msra.mxu1 %v1475_v63  ;;  %v2961_v63 = vld [vmem:[%s12171_s6 + $0x4e0] sm:$0xff] }
 0x343   : > { %7977 = vmatpush3.msra.mxu0 %v3207_v3  ;;  %7843 = vmatprep.subr.mxu1 %v8874_v4  ;;  %v3534_v3 = vld [vmem:[%s12171_s6 + $0x698] sm:$0xff] }
 0x344   : > { %7978 = vmatprep.subr.mxu0 %v8874_v4  ;;  %7844 = vmatpush3.msra.mxu1 %v1474_v6  ;;  %v2960_v6 = vld [vmem:[%s12171_s6 + $0x4d8] sm:$0xff] }
 0x345   : > { %7979 = vmatpush3.msra.mxu0 %v3206_v7  ;;  %7845 = vmatprep.subr.mxu1 %v8874_v4  ;;  %v10391_v7 = vadd.f32 %v10301_v37, %v10019_v16  ;;  %v3532_v16 = vld [vmem:[%s12171_s6 + $0x688] sm:$0xff] }
 0x346   : > { %7980 = vmatprep.subr.mxu0 %v8874_v4  ;;  %7846 = vmatpush3.msra.mxu1 %v1473_v8  ;;  %v3533_v8 = vld [vmem:[%s12171_s6 + $0x690] sm:$0xff] }
 0x347   : > { %7981 = vmatpush3.msra.mxu0 %v3205_v10  ;;  %7847 = vmatprep.subr.mxu1 %v8874_v4  ;;  %v10397_v10 = vpop.f32.mrf.mxu0 }
 0x348   : > { %7982 = vmatprep.subr.mxu0 %v8874_v4  ;;  %7848 = vmatpush3.msra.mxu1 %v1472_v12  ;;  %v2959_v12 = vld [vmem:[%s12171_s6 + $0x4d0] sm:$0xff] }
 0x349   : > { %7983 = vmatpush3.msra.mxu0 %v3204_v2  ;;  %7849 = vmatprep.subr.mxu1 %v8874_v4  ;;  %v2958_v2 = vld [vmem:[%s12171_s6 + $0x4c8] sm:$0xff] }
 0x34a   : > { %7984 = vmatprep.subr.mxu0 %v8874_v4  ;;  %7850 = vmatpush3.msra.mxu1 %v1471_v1  ;;  %v1395_v1 = vmax.f32 %v10391_v7, 0.0  ;;  %v3783_v7 = vld [vmem:[%s12171_s6 + $0x770] sm:$0xff] }
 0x34b   : > { %7985 = vmatpush3.msra.mxu0 %v3203_v14  ;;  %7986 = vmatprep.mubr.msk.f32.mxu0 %vm8875_vm1, %v8874_v4  ;;  %v3531_v14 = vld [vmem:[%s12171_s6 + $0x680] sm:$0xff] }
 0x34c   : > { %7851 = vmatprep.subr.mxu1 %v8874_v4  ;;  %7987 = vmatmul.mubr.msk.f32.vlgmr.msra.gmra.mxu0 %vm1486_vm2, %v1393_v13 }
 0x34d   : > { %8008 = vmatprep.subr.mxu0 %v8874_v4  ;;  %7852 = vmatpush3.msra.mxu1 %v1470_v17 }
 0x34e   : > { %7853 = vmatprep.mubr.msk.f32.mxu1 %vm8875_vm1, %v8874_v4  ;;  %8009 = vmatpush3.msra.mxu0 %v3374_v18  ;;  %v2957_v18 = vld [vmem:[%s12171_s6 + $0x4c0] sm:$0xff] }
 0x34f   : > { %7854 = vmatmul.mubr.msk.f32.vlgmr.msra.gmra.mxu1 %vm1486_vm2, %v2638_v21  ;;  %7875 = vmatprep.subr.mxu1 %v8874_v4 }
 0x350   : > { %8010 = vmatprep.subr.mxu0 %v8874_v4  ;;  %7876 = vmatpush3.msra.mxu1 %v2800_v23 }
 0x351   : > { %8011 = vmatpush3.msra.mxu0 %v3373_v24  ;;  %7877 = vmatprep.subr.mxu1 %v8874_v4  ;;  %v3702_v24 = vld [vmem:[%s12171_s6 + $0x738] sm:$0xff] }
 0x352   : > { %8012 = vmatprep.subr.mxu0 %v8874_v4  ;;  %7878 = vmatpush3.msra.mxu1 %v2799_v25 }
 0x353   : > { %8013 = vmatpush3.msra.mxu0 %v3372_v26  ;;  %7879 = vmatprep.subr.mxu1 %v8874_v4  ;;  %v2965_v26 = vrot.slane %v1391_v62, 4  ;;  %v3700_v62 = vld [vmem:[%s12171_s6 + $0x728] sm:$0xff] }
 0x354   : > { %8014 = vmatprep.subr.mxu0 %v8874_v4  ;;  %7880 = vmatpush3.msra.mxu1 %v2798_v29  ;;  %v3128_v29 = vld [vmem:[%s12171_s6 + $0x578] sm:$0xff] }
 0x355   : > { %8015 = vmatpush3.msra.mxu0 %v3371_v31  ;;  %7881 = vmatprep.subr.mxu1 %v8874_v4  ;;  %v3701_v31 = vld [vmem:[%s12171_s6 + $0x730] sm:$0xff] }
 0x356   : > { %8016 = vmatprep.subr.mxu0 %v8874_v4  ;;  %7882 = vmatpush3.msra.mxu1 %v2797_v32  ;;  %v3126_v32 = vld [vmem:[%s12171_s6 + $0x568] sm:$0xff] }
 0x357   : > { %8017 = vmatpush3.msra.mxu0 %v3370_v33  ;;  %7883 = vmatprep.subr.mxu1 %v8874_v4  ;;  %v3699_v33 = vld [vmem:[%s12171_s6 + $0x720] sm:$0xff] }
 0x358   : > { %8018 = vmatprep.subr.mxu0 %v8874_v4  ;;  %7884 = vmatpush3.msra.mxu1 %v2796_v35  ;;  %v3125_v35 = vld [vmem:[%s12171_s6 + $0x560] sm:$0xff] }
 0x359   : > { %8019 = vmatpush3.msra.mxu0 %v3369_v39  ;;  %7885 = vmatprep.subr.mxu1 %v8874_v4  ;;  %v3698_v39 = vld [vmem:[%s12171_s6 + $0x718] sm:$0xff] }
 0x35a   : > { %8020 = vmatprep.subr.mxu0 %v8874_v4  ;;  %7886 = vmatpush3.msra.mxu1 %v2795_v40  ;;  %v3124_v40 = vld [vmem:[%s12171_s6 + $0x558] sm:$0xff] }
 0x35b   : > { %8021 = vmatpush3.msra.mxu0 %v3368_v42  ;;  %7887 = vmatprep.subr.mxu1 %v8874_v4  ;;  %v10474_v42 = vadd.f32 %v10301_v37, %v10076_v30  ;;  %v3696_v30 = vld [vmem:[%s12171_s6 + $0x708] sm:$0xff] }
 0x35c   : > { %8022 = vmatprep.subr.mxu0 %v8874_v4  ;;  %7888 = vmatpush3.msra.mxu1 %v2794_v44  ;;  %v3697_v44 = vld [vmem:[%s12171_s6 + $0x710] sm:$0xff] }
 0x35d   : > { %8023 = vmatpush3.msra.mxu0 %v3367_v46  ;;  %8024 = vmatprep.mubr.msk.f32.mxu0 %vm8875_vm1, %v8874_v4  ;;  %v3123_v46 = vld [vmem:[%s12171_s6 + $0x550] sm:$0xff] }
 0x35e   : > { %7889 = vmatprep.subr.mxu1 %v8874_v4  ;;  %8025 = vmatmul.mubr.msk.f32.vlgmr.msra.gmra.mxu0 %vm1486_vm2, %v1394_v45 }
 0x35f   : > { %8046 = vmatprep.subr.mxu0 %v8874_v4  ;;  %7890 = vmatpush3.msra.mxu1 %v2793_v49 }
 0x360   : > { %7891 = vmatprep.mubr.msk.f32.mxu1 %vm8875_vm1, %v8874_v4  ;;  %8047 = vmatpush3.msra.mxu0 %v3538_v52  ;;  %v3122_v52 = vld [vmem:[%s12171_s6 + $0x548] sm:$0xff] }
 0x361   : > { %7892 = vmatmul.mubr.msk.f32.vlgmr.msra.gmra.mxu1 %vm1486_vm2, %v2801_v53  ;;  %7913 = vmatprep.subr.mxu1 %v8874_v4  ;;  %v1396_v53 = vmax.f32 %v10474_v42, 0.0  ;;  %v3947_v42 = vld [vmem:[%s12171_s6 + $0x7f0] sm:$0xff] }
 0x362   : > { %8048 = vmatprep.subr.mxu0 %v8874_v4  ;;  %7914 = vmatpush3.msra.mxu1 %v2964_v0  ;;  %v3695_v0 = vld [vmem:[%s12171_s6 + $0x700] sm:$0xff] }
 0x363   : > { %8049 = vmatpush3.msra.mxu0 %v3537_v55  ;;  %7915 = vmatprep.subr.mxu1 %v8874_v4 }
 0x364   : > { %8050 = vmatprep.subr.mxu0 %v8874_v4  ;;  %7916 = vmatpush3.msra.mxu1 %v2963_v58 }
 0x365   : > { %8051 = vmatpush3.msra.mxu0 %v3536_v48  ;;  %7917 = vmatprep.subr.mxu1 %v8874_v4  ;;  %v3121_v48 = vld [vmem:[%s12171_s6 + $0x540] sm:$0xff] }
 0x366   : > { %8052 = vmatprep.subr.mxu0 %v8874_v4  ;;  %7918 = vmatpush3.msra.mxu1 %v2962_v57 }
 0x367   : > { %8053 = vmatpush3.msra.mxu0 %v3535_v60  ;;  %7919 = vmatprep.subr.mxu1 %v8874_v4  ;;  %v3866_v60 = vld [vmem:[%s12171_s6 + $0x7b8] sm:$0xff] }
 0x368   : > { %8054 = vmatprep.subr.mxu0 %v8874_v4  ;;  %7920 = vmatpush3.msra.mxu1 %v2961_v63 }
 0x369   : > { %8055 = vmatpush3.msra.mxu0 %v3534_v3  ;;  %7921 = vmatprep.subr.mxu1 %v8874_v4  ;;  %v3129_v3 = vrot.slane %v1392_v50, 4  ;;  %v3864_v50 = vld [vmem:[%s12171_s6 + $0x7a8] sm:$0xff] }
 0x36a   : > { %8056 = vmatprep.subr.mxu0 %v8874_v4  ;;  %7922 = vmatpush3.msra.mxu1 %v2960_v6  ;;  %v3292_v6 = vld [vmem:[%s12171_s6 + $0x5f8] sm:$0xff] }
 0x36b   : > { %8057 = vmatpush3.msra.mxu0 %v3533_v8  ;;  %7923 = vmatprep.subr.mxu1 %v8874_v4  ;;  %v3865_v8 = vld [vmem:[%s12171_s6 + $0x7b0] sm:$0xff] }
 0x36c   : > { %8058 = vmatprep.subr.mxu0 %v8874_v4  ;;  %7924 = vmatpush3.msra.mxu1 %v2959_v12  ;;  %v10416_v17 = vpop.f32.mrf.mxu0  ;;  %v3290_v12 = vld [vmem:[%s12171_s6 + $0x5e8] sm:$0xff] }
 0x36d   : > { %8059 = vmatpush3.msra.mxu0 %v3532_v16  ;;  %7925 = vmatprep.subr.mxu1 %v8874_v4  ;;  %v3863_v16 = vld [vmem:[%s12171_s6 + $0x7a0] sm:$0xff] }
 0x36e   : > { %8060 = vmatprep.subr.mxu0 %v8874_v4  ;;  %7926 = vmatpush3.msra.mxu1 %v2958_v2  ;;  %v1556_v21 = vpop.f32.mrf.mxu1  ;;  %v7646_v23 = vpop.f32.mrf.mxu0  ;;  %v3289_v2 = vld [vmem:[%s12171_s6 + $0x5e0] sm:$0xff] }
 0x36f   : > { %8061 = vmatpush3.msra.mxu0 %v3531_v14  ;;  %8062 = vmatprep.mubr.msk.f32.mxu0 %vm8875_vm1, %v8874_v4  ;;  %v3862_v14 = vld [vmem:[%s12171_s6 + $0x798] sm:$0xff]  ;;  %v3287_v23 = vld [vmem:[%s12171_s6 + $0x5d0] sm:$0xff] }
 0x370   : > { %7927 = vmatprep.subr.mxu1 %v8874_v4  ;;  %8063 = vmatmul.mubr.msk.f32.vlgmr.msra.gmra.mxu0 %vm1486_vm2, %v1395_v1  ;;  %v7570_v25 = vpop.f32.mrf.mxu1 }
 0x371   : > { %8084 = vmatprep.subr.mxu0 %v8874_v4  ;;  %7928 = vmatpush3.msra.mxu1 %v2957_v18  ;;  %v3288_v18 = vld [vmem:[%s12171_s6 + $0x5d8] sm:$0xff]  ;;  %v3860_v25 = vld [vmem:[%s12171_s6 + $0x788] sm:$0xff] }
 0x372   : > { %7929 = vmatprep.mubr.msk.f32.mxu1 %vm8875_vm1, %v8874_v4  ;;  %8085 = vmatpush3.msra.mxu0 %v3702_v24  ;;  %v10565_v24 = vadd.f32 %v10301_v37, %v10060_v27  ;;  %v3859_v27 = vld [vmem:[%s12171_s6 + $0x780] sm:$0xff] }
 0x373   : > { %7930 = vmatmul.mubr.msk.f32.vlgmr.msra.gmra.mxu1 %vm1486_vm2, %v2965_v26  ;;  %7951 = vmatprep.subr.mxu1 %v8874_v4  ;;  %v3286_v26 = vld [vmem:[%s12171_s6 + $0x5c8] sm:$0xff] }
 0x374   : > { %8086 = vmatprep.subr.mxu0 %v8874_v4  ;;  %7952 = vmatpush3.msra.mxu1 %v3128_v29 }
 0x375   : > { %8087 = vmatpush3.msra.mxu0 %v3701_v31  ;;  %7953 = vmatprep.subr.mxu1 %v8874_v4 }
 0x376   : > { %8088 = vmatprep.subr.mxu0 %v8874_v4  ;;  %7954 = vmatpush3.msra.mxu1 %v3127_v20  ;;  %v1397_v20 = vmax.f32 %v10565_v24, 0.0  ;;  %v4111_v24 = vld [vmem:[%s12171_s6 + $0x870] sm:$0xff] }
 0x377   : > { %8089 = vmatpush3.msra.mxu0 %v3700_v62  ;;  %7955 = vmatprep.subr.mxu1 %v8874_v4  ;;  %v3285_v62 = vld [vmem:[%s12171_s6 + $0x5c0] sm:$0xff] }
 0x378   : > { %8090 = vmatprep.subr.mxu0 %v8874_v4  ;;  %7956 = vmatpush3.msra.mxu1 %v3126_v32 }
 0x379   : > { %8091 = vmatpush3.msra.mxu0 %v3699_v33  ;;  %7957 = vmatprep.subr.mxu1 %v8874_v4 }
 0x37a   : > { %8092 = vmatprep.subr.mxu0 %v8874_v4  ;;  %7958 = vmatpush3.msra.mxu1 %v3125_v35  ;;  %v4030_v35 = vld [vmem:[%s12171_s6 + $0x838] sm:$0xff] }
 0x37b   : > { %8093 = vmatpush3.msra.mxu0 %v3698_v39  ;;  %7959 = vmatprep.subr.mxu1 %v8874_v4  ;;  %v3293_v39 = vrot.slane %v1393_v13, 4  ;;  %v4028_v13 = vld [vmem:[%s12171_s6 + $0x828] sm:$0xff] }
 0x37c   : > { %8094 = vmatprep.subr.mxu0 %v8874_v4  ;;  %7960 = vmatpush3.msra.mxu1 %v3124_v40  ;;  %v10488_v49 = vpop.f32.mrf.mxu0  ;;  %v3456_v40 = vld [vmem:[%s12171_s6 + $0x678] sm:$0xff] }
 0x37d   : > { %8095 = vmatpush3.msra.mxu0 %v3697_v44  ;;  %7961 = vmatprep.subr.mxu1 %v8874_v4  ;;  %v4029_v44 = vld [vmem:[%s12171_s6 + $0x830] sm:$0xff] }
 0x37e   : > { %8096 = vmatprep.subr.mxu0 %v8874_v4  ;;  %7962 = vmatpush3.msra.mxu1 %v3123_v46  ;;  %v7684_v55 = vpop.f32.mrf.mxu0  ;;  %v3454_v46 = vld [vmem:[%s12171_s6 + $0x668] sm:$0xff] }
 0x37f   : > { %8097 = vmatpush3.msra.mxu0 %v3696_v30  ;;  %7963 = vmatprep.subr.mxu1 %v8874_v4  ;;  %v1629_v58 = vpop.f32.mrf.mxu1  ;;  %v4027_v30 = vld [vmem:[%s12171_s6 + $0x820] sm:$0xff]  ;;  %v3452_v55 = vld [vmem:[%s12171_s6 + $0x658] sm:$0xff] }
 0x380   : > { %8098 = vmatprep.subr.mxu0 %v8874_v4  ;;  %7964 = vmatpush3.msra.mxu1 %v3122_v52  ;;  %v10504_v57 = vadd.f32 %v1629_v58, %v1556_v21  ;;  %v3861_v21 = vld [vmem:[%s12171_s6 + $0x790] sm:$0xff]  ;;  %v3453_v52 = vld [vmem:[%s12171_s6 + $0x660] sm:$0xff] }
 0x381   : > { %8099 = vmatpush3.msra.mxu0 %v3695_v0  ;;  %8100 = vmatprep.mubr.msk.f32.mxu0 %vm8875_vm1, %v8874_v4  ;;  %v7589_v63 = vpop.f32.mrf.mxu1  ;;  %v4026_v0 = vld [vmem:[%s12171_s6 + $0x818] sm:$0xff]  ;;  %v4025_v58 = vld [vmem:[%s12171_s6 + $0x810] sm:$0xff] }
 0x382   : > { %7965 = vmatprep.subr.mxu1 %v8874_v4  ;;  %8101 = vmatmul.mubr.msk.f32.vlgmr.msra.gmra.mxu0 %vm1486_vm2, %v1396_v53  ;;  %v4024_v63 = vld [vmem:[%s12171_s6 + $0x808] sm:$0xff] }
 0x383   : > { %8122 = vmatprep.subr.mxu0 %v8874_v4  ;;  %7966 = vmatpush3.msra.mxu1 %v3121_v48  ;;  %v3451_v48 = vld [vmem:[%s12171_s6 + $0x650] sm:$0xff] }
 0x384   : > { %7967 = vmatprep.mubr.msk.f32.mxu1 %vm8875_vm1, %v8874_v4  ;;  %8123 = vmatpush3.msra.mxu0 %v3866_v60  ;;  %v10648_v60 = vadd.f32 %v10301_v37, %v10114_v41  ;;  %v4023_v41 = vld [vmem:[%s12171_s6 + $0x800] sm:$0xff] }
 0x385   : > { %7968 = vmatmul.mubr.msk.f32.vlgmr.msra.gmra.mxu1 %vm1486_vm2, %v3129_v3  ;;  %7989 = vmatprep.subr.mxu1 %v8874_v4  ;;  %v3450_v3 = vld [vmem:[%s12171_s6 + $0x648] sm:$0xff] }
 0x386   : > { %8124 = vmatprep.subr.mxu0 %v8874_v4  ;;  %7990 = vmatpush3.msra.mxu1 %v3292_v6 }
 0x387   : > { %8125 = vmatpush3.msra.mxu0 %v3865_v8  ;;  %7991 = vmatprep.subr.mxu1 %v8874_v4 }
 0x388   : > { %8126 = vmatprep.subr.mxu0 %v8874_v4  ;;  %7992 = vmatpush3.msra.mxu1 %v3291_v43 }
 0x389   : > { %8127 = vmatpush3.msra.mxu0 %v3864_v50  ;;  %7993 = vmatprep.subr.mxu1 %v8874_v4  ;;  %v1398_v50 = vmax.f32 %v10648_v60, 0.0  ;;  %v4275_v60 = vld [vmem:[%s12171_s6 + $0x8f0] sm:$0xff] }
 0x38a   : > { %8128 = vmatprep.subr.mxu0 %v8874_v4  ;;  %7994 = vmatpush3.msra.mxu1 %v3290_v12  ;;  %v3449_v12 = vld [vmem:[%s12171_s6 + $0x640] sm:$0xff] }
 0x38b   : > { %8129 = vmatpush3.msra.mxu0 %v3863_v16  ;;  %7995 = vmatprep.subr.mxu1 %v8874_v4 }
 0x38c   : > { %8130 = vmatprep.subr.mxu0 %v8874_v4  ;;  %7996 = vmatpush3.msra.mxu1 %v3289_v2 }
 0x38d   : > { %8131 = vmatpush3.msra.mxu0 %v3862_v14  ;;  %7997 = vmatprep.subr.mxu1 %v8874_v4  ;;  %v4194_v14 = vld [vmem:[%s12171_s6 + $0x8b8] sm:$0xff] }
 0x38e   : > { %8132 = vmatprep.subr.mxu0 %v8874_v4  ;;  %7998 = vmatpush3.msra.mxu1 %v3288_v18  ;;  %v3457_v18 = vrot.slane %v1394_v45, 4  ;;  %v4192_v45 = vld [vmem:[%s12171_s6 + $0x8a8] sm:$0xff] }
 0x38f   : > { %8133 = vmatpush3.msra.mxu0 %v3861_v21  ;;  %7999 = vmatprep.subr.mxu1 %v8874_v4  ;;  %v3620_v21 = vld [vmem:[%s12171_s6 + $0x6f8] sm:$0xff] }
 0x390   : > { %8134 = vmatprep.subr.mxu0 %v8874_v4  ;;  %8000 = vmatpush3.msra.mxu1 %v3287_v23  ;;  %v10579_v29 = vpop.f32.mrf.mxu1  ;;  %v10581_v31 = vpop.f32.mrf.mxu0  ;;  %v4193_v23 = vld [vmem:[%s12171_s6 + $0x8b0] sm:$0xff] }
 0x391   : > { %8135 = vmatpush3.msra.mxu0 %v3860_v25  ;;  %8001 = vmatprep.subr.mxu1 %v8874_v4  ;;  %v3618_v25 = vld [vmem:[%s12171_s6 + $0x6e8] sm:$0xff] }
 0x392   : > { %8136 = vmatprep.subr.mxu0 %v8874_v4  ;;  %8002 = vmatpush3.msra.mxu1 %v3286_v26  ;;  %v7608_v32 = vpop.f32.mrf.mxu1  ;;  %v7722_v33 = vpop.f32.mrf.mxu0  ;;  %v4191_v26 = vld [vmem:[%s12171_s6 + $0x8a0] sm:$0xff] }
 0x393   : > { %8137 = vmatpush3.msra.mxu0 %v3859_v27  ;;  %8138 = vmatprep.mubr.msk.f32.mxu0 %vm8875_vm1, %v8874_v4  ;;  %v3617_v27 = vld [vmem:[%s12171_s6 + $0x6e0] sm:$0xff]  ;;  %v4189_v32 = vld [vmem:[%s12171_s6 + $0x890] sm:$0xff] }
 0x394   : > { %8003 = vmatprep.subr.mxu1 %v8874_v4  ;;  %8139 = vmatmul.mubr.msk.f32.vlgmr.msra.gmra.mxu0 %vm1486_vm2, %v1397_v20  ;;  %v3615_v33 = vld [vmem:[%s12171_s6 + $0x6d0] sm:$0xff] }
 0x395   : > { %8160 = vmatprep.subr.mxu0 %v8874_v4  ;;  %8004 = vmatpush3.msra.mxu1 %v3285_v62  ;;  %v3616_v62 = vld [vmem:[%s12171_s6 + $0x6d8] sm:$0xff] }
 0x396   : > { %8005 = vmatprep.mubr.msk.f32.mxu1 %vm8875_vm1, %v8874_v4  ;;  %8161 = vmatpush3.msra.mxu0 %v4030_v35  ;;  %v10732_v35 = vadd.f32 %v10301_v37, %v10096_v36  ;;  %v4187_v36 = vld [vmem:[%s12171_s6 + $0x880] sm:$0xff] }
 0x397   : > { %8006 = vmatmul.mubr.msk.f32.vlgmr.msra.gmra.mxu1 %vm1486_vm2, %v3293_v39  ;;  %8027 = vmatprep.subr.mxu1 %v8874_v4  ;;  %v4188_v39 = vld [vmem:[%s12171_s6 + $0x888] sm:$0xff] }
 0x398   : > { %8162 = vmatprep.subr.mxu0 %v8874_v4  ;;  %8028 = vmatpush3.msra.mxu1 %v3456_v40  ;;  %v3614_v40 = vld [vmem:[%s12171_s6 + $0x6c8] sm:$0xff] }
 0x399   : > { %8163 = vmatpush3.msra.mxu0 %v4029_v44  ;;  %8029 = vmatprep.subr.mxu1 %v8874_v4 }
 0x39a   : > { %8164 = vmatprep.subr.mxu0 %v8874_v4  ;;  %8030 = vmatpush3.msra.mxu1 %v3455_v9 }
 0x39b   : > { %8165 = vmatpush3.msra.mxu0 %v4028_v13  ;;  %8031 = vmatprep.subr.mxu1 %v8874_v4  ;;  %v1399_v13 = vmax.f32 %v10732_v35, 0.0  ;;  %v4439_v35 = vld [vmem:[%s12171_s6 + $0x970] sm:$0xff] }
 0x39c   : > { %8166 = vmatprep.subr.mxu0 %v8874_v4  ;;  %8032 = vmatpush3.msra.mxu1 %v3454_v46  ;;  %v3613_v46 = vld [vmem:[%s12171_s6 + $0x6c0] sm:$0xff] }
 0x39d   : > { %8167 = vmatpush3.msra.mxu0 %v4027_v30  ;;  %8033 = vmatprep.subr.mxu1 %v8874_v4 }
 0x39e   : > { %8168 = vmatprep.subr.mxu0 %v8874_v4  ;;  %8034 = vmatpush3.msra.mxu1 %v3453_v52 }
 0x39f   : > { %8169 = vmatpush3.msra.mxu0 %v4026_v0  ;;  %8035 = vmatprep.subr.mxu1 %v8874_v4  ;;  %v4358_v0 = vld [vmem:[%s12171_s6 + $0x938] sm:$0xff] }
 0x3a0   : > { %8170 = vmatprep.subr.mxu0 %v8874_v4  ;;  %8036 = vmatpush3.msra.mxu1 %v3452_v55  ;;  %v3621_v55 = vrot.slane %v1395_v1, 4  ;;  %v4356_v1 = vld [vmem:[%s12171_s6 + $0x928] sm:$0xff] }
 0x3a1   : > { %8171 = vmatpush3.msra.mxu0 %v4025_v58  ;;  %8037 = vmatprep.subr.mxu1 %v8874_v4  ;;  %v3784_v58 = vld [vmem:[%s12171_s6 + $0x778] sm:$0xff] }
 0x3a2   : > { %8172 = vmatprep.subr.mxu0 %v8874_v4  ;;  %8038 = vmatpush3.msra.mxu1 %v3451_v48  ;;  %v1783_v6 = vpop.f32.mrf.mxu1  ;;  %v10662_v8 = vpop.f32.mrf.mxu0  ;;  %v4357_v48 = vld [vmem:[%s12171_s6 + $0x930] sm:$0xff] }
 0x3a3   : > { %8173 = vmatpush3.msra.mxu0 %v4024_v63  ;;  %8039 = vmatprep.subr.mxu1 %v8874_v4  ;;  %v10666_v43 = vadd.f32 %v1783_v6, %v10579_v29  ;;  %v4190_v29 = vld [vmem:[%s12171_s6 + $0x898] sm:$0xff]  ;;  %v3782_v63 = vld [vmem:[%s12171_s6 + $0x768] sm:$0xff] }
 0x3a4   : > { %8174 = vmatprep.subr.mxu0 %v8874_v4  ;;  %8040 = vmatpush3.msra.mxu1 %v3450_v3  ;;  %v7627_v16 = vpop.f32.mrf.mxu1  ;;  %v7760_v2 = vpop.f32.mrf.mxu0  ;;  %v4355_v3 = vld [vmem:[%s12171_s6 + $0x920] sm:$0xff]  ;;  %v4354_v6 = vld [vmem:[%s12171_s6 + $0x918] sm:$0xff] }
 0x3a5   : > { %8175 = vmatpush3.msra.mxu0 %v4023_v41  ;;  %8176 = vmatprep.mubr.msk.f32.mxu0 %vm8875_vm1, %v8874_v4  ;;  %v3781_v41 = vld [vmem:[%s12171_s6 + $0x760] sm:$0xff]  ;;  %v4353_v16 = vld [vmem:[%s12171_s6 + $0x910] sm:$0xff] }
 0x3a6   : > { %8041 = vmatprep.subr.mxu1 %v8874_v4  ;;  %8177 = vmatmul.mubr.msk.f32.vlgmr.msra.gmra.mxu0 %vm1486_vm2, %v1398_v50  ;;  %v3779_v2 = vld [vmem:[%s12171_s6 + $0x750] sm:$0xff] }
 0x3a7   : > { %8198 = vmatprep.subr.mxu0 %v8874_v4  ;;  %8042 = vmatpush3.msra.mxu1 %v3449_v12  ;;  %v3780_v12 = vld [vmem:[%s12171_s6 + $0x758] sm:$0xff] }
 0x3a8   : > { %8043 = vmatprep.mubr.msk.f32.mxu1 %vm8875_vm1, %v8874_v4  ;;  %8199 = vmatpush3.msra.mxu0 %v4194_v14  ;;  %v10815_v14 = vadd.f32 %v10301_v37, %v10156_v54  ;;  %v4351_v54 = vld [vmem:[%s12171_s6 + $0x900] sm:$0xff] }
 0x3a9   : > { %8044 = vmatmul.mubr.msk.f32.vlgmr.msra.gmra.mxu1 %vm1486_vm2, %v3457_v18  ;;  %8065 = vmatprep.subr.mxu1 %v8874_v4  ;;  %v4352_v18 = vld [vmem:[%s12171_s6 + $0x908] sm:$0xff] }
 0x3aa   : > { %8200 = vmatprep.subr.mxu0 %v8874_v4  ;;  %8066 = vmatpush3.msra.mxu1 %v3620_v21  ;;  %v3778_v21 = vld [vmem:[%s12171_s6 + $0x748] sm:$0xff] }
 0x3ab   : > { %8201 = vmatpush3.msra.mxu0 %v4193_v23  ;;  %8067 = vmatprep.subr.mxu1 %v8874_v4 }
 0x3ac   : > { %8202 = vmatprep.subr.mxu0 %v8874_v4  ;;  %8068 = vmatpush3.msra.mxu1 %v3619_v38 }
 0x3ad   : > { %8203 = vmatpush3.msra.mxu0 %v4192_v45  ;;  %8069 = vmatprep.subr.mxu1 %v8874_v4  ;;  %v1400_v45 = vmax.f32 %v10815_v14, 0.0  ;;  %v4603_v14 = vld [vmem:[%s12171_s6 + $0x9f0] sm:$0xff] }
 0x3ae   : > { %8204 = vmatprep.subr.mxu0 %v8874_v4  ;;  %8070 = vmatpush3.msra.mxu1 %v3618_v25  ;;  %v3777_v25 = vld [vmem:[%s12171_s6 + $0x740] sm:$0xff] }
 0x3af   : > { %8205 = vmatpush3.msra.mxu0 %v4191_v26  ;;  %8071 = vmatprep.subr.mxu1 %v8874_v4 }
 0x3b0   : > { %8206 = vmatprep.subr.mxu0 %v8874_v4  ;;  %8072 = vmatpush3.msra.mxu1 %v3617_v27 }
 0x3b1   : > { %8207 = vmatpush3.msra.mxu0 %v4190_v29  ;;  %8073 = vmatprep.subr.mxu1 %v8874_v4  ;;  %v4522_v29 = vld [vmem:[%s12171_s6 + $0x9b8] sm:$0xff] }
 0x3b2   : > { %8208 = vmatprep.subr.mxu0 %v8874_v4  ;;  %8074 = vmatpush3.msra.mxu1 %v3616_v62  ;;  %v3785_v62 = vrot.slane %v1396_v53, 4  ;;  %v4520_v53 = vld [vmem:[%s12171_s6 + $0x9a8] sm:$0xff] }
 0x3b3   : > { %8209 = vmatpush3.msra.mxu0 %v4189_v32  ;;  %8075 = vmatprep.subr.mxu1 %v8874_v4  ;;  %v3948_v32 = vld [vmem:[%s12171_s6 + $0x7f8] sm:$0xff] }
 0x3b4   : > { %8210 = vmatprep.subr.mxu0 %v8874_v4  ;;  %8076 = vmatpush3.msra.mxu1 %v3615_v33  ;;  %v10746_v44 = vpop.f32.mrf.mxu1  ;;  %v10748_v9 = vpop.f32.mrf.mxu0  ;;  %v4521_v33 = vld [vmem:[%s12171_s6 + $0x9b0] sm:$0xff] }
 0x3b5   : > { %8211 = vmatpush3.msra.mxu0 %v4188_v39  ;;  %8077 = vmatprep.subr.mxu1 %v8874_v4  ;;  %v3946_v39 = vld [vmem:[%s12171_s6 + $0x7e8] sm:$0xff] }
 0x3b6   : > { %8212 = vmatprep.subr.mxu0 %v8874_v4  ;;  %8078 = vmatpush3.msra.mxu1 %v3614_v40  ;;  %v7665_v30 = vpop.f32.mrf.mxu1  ;;  %v7798_v52 = vpop.f32.mrf.mxu0  ;;  %v4519_v40 = vld [vmem:[%s12171_s6 + $0x9a0] sm:$0xff] }
 0x3b7   : > { %8213 = vmatpush3.msra.mxu0 %v4187_v36  ;;  %8214 = vmatprep.mubr.msk.f32.mxu0 %vm8875_vm1, %v8874_v4  ;;  %v3945_v36 = vld [vmem:[%s12171_s6 + $0x7e0] sm:$0xff]  ;;  %v3944_v30 = vld [vmem:[%s12171_s6 + $0x7d8] sm:$0xff]  ;;  %v4517_v52 = vld [vmem:[%s12171_s6 + $0x990] sm:$0xff] }
 0x3b8   : > { %8079 = vmatprep.subr.mxu1 %v8874_v4  ;;  %8215 = vmatmul.mubr.msk.f32.vlgmr.msra.gmra.mxu0 %vm1486_vm2, %v1399_v13 }
 0x3b9   : > { %8236 = vmatprep.subr.mxu0 %v8874_v4  ;;  %8080 = vmatpush3.msra.mxu1 %v3613_v46  ;;  %v4518_v46 = vld [vmem:[%s12171_s6 + $0x998] sm:$0xff] }
 0x3ba   : > { %8081 = vmatprep.mubr.msk.f32.mxu1 %vm8875_vm1, %v8874_v4  ;;  %8237 = vmatpush3.msra.mxu0 %v4358_v0  ;;  %v3943_v0 = vld [vmem:[%s12171_s6 + $0x7d0] sm:$0xff] }
 0x3bb   : > { %8082 = vmatmul.mubr.msk.f32.vlgmr.msra.gmra.mxu1 %vm1486_vm2, %v3621_v55  ;;  %8103 = vmatprep.subr.mxu1 %v8874_v4  ;;  %v10898_v55 = vadd.f32 %v10301_v37, %v10136_v47  ;;  %v4515_v47 = vld [vmem:[%s12171_s6 + $0x980] sm:$0xff] }
 0x3bc   : > { %8238 = vmatprep.subr.mxu0 %v8874_v4  ;;  %8104 = vmatpush3.msra.mxu1 %v3784_v58  ;;  %v4516_v58 = vld [vmem:[%s12171_s6 + $0x988] sm:$0xff] }
 0x3bd   : > { %8239 = vmatpush3.msra.mxu0 %v4357_v48  ;;  %8105 = vmatprep.subr.mxu1 %v8874_v4 }
 0x3be   : > { %8240 = vmatprep.subr.mxu0 %v8874_v4  ;;  %8106 = vmatpush3.msra.mxu1 %v3783_v7  ;;  %v3942_v7 = vld [vmem:[%s12171_s6 + $0x7c8] sm:$0xff] }
 0x3bf   : > { %8241 = vmatpush3.msra.mxu0 %v4356_v1  ;;  %8107 = vmatprep.subr.mxu1 %v8874_v4 }
 0x3c0   : > { %8242 = vmatprep.subr.mxu0 %v8874_v4  ;;  %8108 = vmatpush3.msra.mxu1 %v3782_v63 }
 0x3c1   : > { %8243 = vmatpush3.msra.mxu0 %v4355_v3  ;;  %8109 = vmatprep.subr.mxu1 %v8874_v4 }
 0x3c2   : > { %8244 = vmatprep.subr.mxu0 %v8874_v4  ;;  %8110 = vmatpush3.msra.mxu1 %v3781_v41  ;;  %v1401_v41 = vmax.f32 %v10898_v55, 0.0  ;;  %v4767_v55 = vld [vmem:[%s12171_s6 + $0xa70] sm:$0xff] }
 0x3c3   : > { %8245 = vmatpush3.msra.mxu0 %v4354_v6  ;;  %8111 = vmatprep.subr.mxu1 %v8874_v4  ;;  %v4686_v6 = vld [vmem:[%s12171_s6 + $0xa38] sm:$0xff] }
 0x3c4   : > { %8246 = vmatprep.subr.mxu0 %v8874_v4  ;;  %8112 = vmatpush3.msra.mxu1 %v3780_v12 }
 0x3c5   : > { %8247 = vmatpush3.msra.mxu0 %v4353_v16  ;;  %8113 = vmatprep.subr.mxu1 %v8874_v4  ;;  %v3949_v16 = vrot.slane %v1397_v20, 4  ;;  %v4684_v20 = vld [vmem:[%s12171_s6 + $0xa28] sm:$0xff] }
 0x3c6   : > { %8248 = vmatprep.subr.mxu0 %v8874_v4  ;;  %8114 = vmatpush3.msra.mxu1 %v3779_v2  ;;  %v10829_v23 = vpop.f32.mrf.mxu1  ;;  %v10831_v38 = vpop.f32.mrf.mxu0  ;;  %v4112_v2 = vld [vmem:[%s12171_s6 + $0x878] sm:$0xff] }
 0x3c7   : > { %8249 = vmatpush3.msra.mxu0 %v4352_v18  ;;  %8115 = vmatprep.subr.mxu1 %v8874_v4  ;;  %v4685_v18 = vld [vmem:[%s12171_s6 + $0xa30] sm:$0xff] }
 0x3c8   : > { %8250 = vmatprep.subr.mxu0 %v8874_v4  ;;  %8116 = vmatpush3.msra.mxu1 %v3778_v21  ;;  %v7703_v26 = vpop.f32.mrf.mxu1  ;;  %v7836_v27 = vpop.f32.mrf.mxu0  ;;  %v4110_v21 = vld [vmem:[%s12171_s6 + $0x868] sm:$0xff] }
 0x3c9   : > { %8251 = vmatpush3.msra.mxu0 %v4351_v54  ;;  %8252 = vmatprep.mubr.msk.f32.mxu0 %vm8875_vm1, %v8874_v4  ;;  %v4683_v54 = vld [vmem:[%s12171_s6 + $0xa20] sm:$0xff]  ;;  %v4682_v26 = vld [vmem:[%s12171_s6 + $0xa18] sm:$0xff] }
 0x3ca   : > { %8117 = vmatprep.subr.mxu1 %v8874_v4  ;;  %8253 = vmatmul.mubr.msk.f32.vlgmr.msra.gmra.mxu0 %vm1486_vm2, %v1400_v45  ;;  %v4108_v27 = vld [vmem:[%s12171_s6 + $0x858] sm:$0xff] }
 0x3cb   : > { %8274 = vmatprep.subr.mxu0 %v8874_v4  ;;  %8118 = vmatpush3.msra.mxu1 %v3777_v25  ;;  %v4109_v25 = vld [vmem:[%s12171_s6 + $0x860] sm:$0xff] }
 0x3cc   : > { %8119 = vmatprep.mubr.msk.f32.mxu1 %vm8875_vm1, %v8874_v4  ;;  %8275 = vmatpush3.msra.mxu0 %v4522_v29  ;;  %v4681_v29 = vld [vmem:[%s12171_s6 + $0xa10] sm:$0xff] }
 0x3cd   : > { %8120 = vmatmul.mubr.msk.f32.vlgmr.msra.gmra.mxu1 %vm1486_vm2, %v3785_v62  ;;  %8141 = vmatprep.subr.mxu1 %v8874_v4  ;;  %v1938_v62 = vadd.f32 %v10746_v44, %v10416_v17  ;;  %v4106_v17 = vld [vmem:[%s12171_s6 + $0x848] sm:$0xff] }
 0x3ce   : > { %8276 = vmatprep.subr.mxu0 %v8874_v4  ;;  %8142 = vmatpush3.msra.mxu1 %v3948_v32  ;;  %v4107_v32 = vld [vmem:[%s12171_s6 + $0x850] sm:$0xff] }
 0x3cf   : > { %8277 = vmatpush3.msra.mxu0 %v4521_v33  ;;  %8143 = vmatprep.subr.mxu1 %v8874_v4  ;;  %v10984_v33 = vadd.f32 %v10301_v37, %v10196_v5  ;;  %v4679_v5 = vld [vmem:[%s12171_s6 + $0xa00] sm:$0xff] }
 0x3d0   : > { %8278 = vmatprep.subr.mxu0 %v8874_v4  ;;  %8144 = vmatpush3.msra.mxu1 %v3947_v42  ;;  %v4680_v42 = vld [vmem:[%s12171_s6 + $0xa08] sm:$0xff] }
 0x3d1   : > { %8279 = vmatpush3.msra.mxu0 %v4520_v53  ;;  %8145 = vmatprep.subr.mxu1 %v8874_v4 }
 0x3d2   : > { %8280 = vmatprep.subr.mxu0 %v8874_v4  ;;  %8146 = vmatpush3.msra.mxu1 %v3946_v39 }
 0x3d3   : > { %8281 = vmatpush3.msra.mxu0 %v4519_v40  ;;  %8147 = vmatprep.subr.mxu1 %v8874_v4  ;;  %v1402_v40 = vmax.f32 %v10984_v33, 0.0  ;;  %v4931_v33 = vld [vmem:[%s12171_s6 + $0xaf0] sm:$0xff] }
 0x3d4   : > { %8282 = vmatprep.subr.mxu0 %v8874_v4  ;;  %8148 = vmatpush3.msra.mxu1 %v3945_v36  ;;  %v4105_v36 = vld [vmem:[%s12171_s6 + $0x840] sm:$0xff] }
 0x3d5   : > { %8283 = vmatpush3.msra.mxu0 %v4518_v46  ;;  %8149 = vmatprep.subr.mxu1 %v8874_v4  ;;  %v4850_v46 = vld [vmem:[%s12171_s6 + $0xab8] sm:$0xff] }
 0x3d6   : > { %8284 = vmatprep.subr.mxu0 %v8874_v4  ;;  %8150 = vmatpush3.msra.mxu1 %v3944_v30  ;;  %v2788_v48 = vpop.f32.mrf.mxu0 }
 0x3d7   : > { %8285 = vmatpush3.msra.mxu0 %v4517_v52  ;;  %8151 = vmatprep.subr.mxu1 %v8874_v4  ;;  %v10909_v1 = vadd.f32 %v2788_v48, %v10504_v57  ;;  %v3941_v57 = vld [vmem:[%s12171_s6 + $0x7c0] sm:$0xff]  ;;  %v4113_v52 = vrot.slane %v1398_v50, 4  ;;  %v4848_v50 = vld [vmem:[%s12171_s6 + $0xaa8] sm:$0xff] }
 0x3d8   : > { %8286 = vmatprep.subr.mxu0 %v8874_v4  ;;  %8152 = vmatpush3.msra.mxu1 %v3943_v0  ;;  %v7874_v63 = vpop.f32.mrf.mxu0  ;;  %v4276_v0 = vld [vmem:[%s12171_s6 + $0x8f8] sm:$0xff]  ;;  %v4274_v48 = vld [vmem:[%s12171_s6 + $0x8e8] sm:$0xff] }
 0x3d9   : > { %8287 = vmatpush3.msra.mxu0 %v4516_v58  ;;  %8153 = vmatprep.subr.mxu1 %v8874_v4  ;;  %v10916_v3 = vpop.f32.mrf.mxu1  ;;  %v4849_v58 = vld [vmem:[%s12171_s6 + $0xab0] sm:$0xff]  ;;  %v4846_v63 = vld [vmem:[%s12171_s6 + $0xa98] sm:$0xff] }
 0x3da   : > { %8288 = vmatprep.subr.mxu0 %v8874_v4  ;;  %8154 = vmatpush3.msra.mxu1 %v3942_v7  ;;  %v4847_v7 = vld [vmem:[%s12171_s6 + $0xaa0] sm:$0xff] }
 0x3db   : > { %8289 = vmatpush3.msra.mxu0 %v4515_v47  ;;  %8290 = vmatprep.mubr.msk.f32.mxu0 %vm8875_vm1, %v8874_v4  ;;  %v7741_v12 = vpop.f32.mrf.mxu1  ;;  %v4273_v47 = vld [vmem:[%s12171_s6 + $0x8e0] sm:$0xff] }
 0x3dc   : > { %8155 = vmatprep.subr.mxu1 %v8874_v4  ;;  %8291 = vmatmul.mubr.msk.f32.vlgmr.msra.gmra.mxu0 %vm1486_vm2, %v1401_v41  ;;  %v2246_v12 = vadd.f32 %v10916_v3, %v10581_v31  ;;  %v4844_v31 = vld [vmem:[%s12171_s6 + $0xa88] sm:$0xff] }
 0x3dd   : > { %8312 = vmatprep.subr.mxu0 %v8874_v4  ;;  %8156 = vmatpush3.msra.mxu1 %v3941_v57  ;;  %v4272_v57 = vld [vmem:[%s12171_s6 + $0x8d8] sm:$0xff] }
 0x3de   : > { %8157 = vmatprep.mubr.msk.f32.mxu1 %vm8875_vm1, %v8874_v4  ;;  %8313 = vmatpush3.msra.mxu0 %v4686_v6  ;;  %v4845_v6 = vld [vmem:[%s12171_s6 + $0xa90] sm:$0xff] }
 0x3df   : > { %8158 = vmatmul.mubr.msk.f32.vlgmr.msra.gmra.mxu1 %vm1486_vm2, %v3949_v16  ;;  %8179 = vmatprep.subr.mxu1 %v8874_v4  ;;  %v4271_v16 = vld [vmem:[%s12171_s6 + $0x8d0] sm:$0xff] }
 0x3e0   : > { %8314 = vmatprep.subr.mxu0 %v8874_v4  ;;  %8180 = vmatpush3.msra.mxu1 %v4112_v2  ;;  %v11070_v2 = vld [vmem:[%s12170_s5] ss:$0 sm:$0xff] }
 0x3e1   : > { %8315 = vmatpush3.msra.mxu0 %v4685_v18  ;;  %8181 = vmatprep.subr.mxu1 %v8874_v4  ;;  %v11074_v18 = vadd.f32 %v11070_v2, %v10177_v59  ;;  %v4843_v59 = vld [vmem:[%s12171_s6 + $0xa80] sm:$0xff] }
 0x3e2   : > { %8316 = vmatprep.subr.mxu0 %v8874_v4  ;;  %8182 = vmatpush3.msra.mxu1 %v4111_v24  ;;  %v4270_v24 = vld [vmem:[%s12171_s6 + $0x8c8] sm:$0xff] }
 0x3e3   : > { %8317 = vmatpush3.msra.mxu0 %v4684_v20  ;;  %8183 = vmatprep.subr.mxu1 %v8874_v4 }
 0x3e4   : > { %8318 = vmatprep.subr.mxu0 %v8874_v4  ;;  %8184 = vmatpush3.msra.mxu1 %v4110_v21 }
 0x3e5   : > { %8319 = vmatpush3.msra.mxu0 %v4683_v54  ;;  %8185 = vmatprep.subr.mxu1 %v8874_v4 }
 0x3e6   : > { %8320 = vmatprep.subr.mxu0 %v8874_v4  ;;  %8186 = vmatpush3.msra.mxu1 %v4109_v25  ;;  %v1403_v25 = vmax.f32 %v11074_v18, 0.0  ;;  %v5095_v18 = vld [vmem:[%s12171_s6 + $0xb70] sm:$0xff] }
 0x3e7   : > { %8321 = vmatpush3.msra.mxu0 %v4682_v26  ;;  %8187 = vmatprep.subr.mxu1 %v8874_v4  ;;  %v4269_v26 = vld [vmem:[%s12171_s6 + $0x8c0] sm:$0xff] }
 0x3e8   : > { %8322 = vmatprep.subr.mxu0 %v8874_v4  ;;  %8188 = vmatpush3.msra.mxu1 %v4108_v27  ;;  %v2952_v53 = vpop.f32.mrf.mxu0  ;;  %v5014_v27 = vld [vmem:[%s12171_s6 + $0xb38] sm:$0xff] }
 0x3e9   : > { %8323 = vmatpush3.msra.mxu0 %v4681_v29  ;;  %8189 = vmatprep.subr.mxu1 %v8874_v4  ;;  %v10994_v44 = vadd.f32 %v2952_v53, %v1938_v62  ;;  %v4277_v62 = vrot.slane %v1399_v13, 4  ;;  %v5012_v13 = vld [vmem:[%s12171_s6 + $0xb28] sm:$0xff] }
 0x3ea   : > { %8324 = vmatprep.subr.mxu0 %v8874_v4  ;;  %8190 = vmatpush3.msra.mxu1 %v4107_v32  ;;  %v7912_v37 = vpop.f32.mrf.mxu0  ;;  %v4440_v32 = vld [vmem:[%s12171_s6 + $0x978] sm:$0xff]  ;;  %v4438_v53 = vld [vmem:[%s12171_s6 + $0x968] sm:$0xff] }
 0x3eb   : > { %8325 = vmatpush3.msra.mxu0 %v4680_v42  ;;  %8191 = vmatprep.subr.mxu1 %v8874_v4  ;;  %v11001_v39 = vpop.f32.mrf.mxu1  ;;  %v5013_v42 = vld [vmem:[%s12171_s6 + $0xb30] sm:$0xff]  ;;  %v5010_v37 = vld [vmem:[%s12171_s6 + $0xb18] sm:$0xff] }
 0x3ec   : > { %8326 = vmatprep.subr.mxu0 %v8874_v4  ;;  %8192 = vmatpush3.msra.mxu1 %v4106_v17  ;;  %v5011_v17 = vld [vmem:[%s12171_s6 + $0xb20] sm:$0xff] }
 0x3ed   : > { %8327 = vmatpush3.msra.mxu0 %v4679_v5  ;;  %8328 = vmatprep.mubr.msk.f32.mxu0 %vm8875_vm1, %v8874_v4  ;;  %v7779_v30 = vpop.f32.mrf.mxu1  ;;  %v4437_v5 = vld [vmem:[%s12171_s6 + $0x960] sm:$0xff] }
 0x3ee   : > { %8193 = vmatprep.subr.mxu1 %v8874_v4  ;;  %8329 = vmatmul.mubr.msk.f32.vlgmr.msra.gmra.mxu0 %vm1486_vm2, %v1402_v40  ;;  %v4435_v30 = vld [vmem:[%s12171_s6 + $0x950] sm:$0xff] }
 0x3ef   : > { %8350 = vmatprep.subr.mxu0 %v8874_v4  ;;  %8194 = vmatpush3.msra.mxu1 %v4105_v36  ;;  %v4436_v36 = vld [vmem:[%s12171_s6 + $0x958] sm:$0xff] }
 0x3f0   : > { %8195 = vmatprep.mubr.msk.f32.mxu1 %vm8875_vm1, %v8874_v4  ;;  %8351 = vmatpush3.msra.mxu0 %v4850_v46  ;;  %v5009_v46 = vld [vmem:[%s12171_s6 + $0xb10] sm:$0xff] }
 0x3f1   : > { %8196 = vmatmul.mubr.msk.f32.vlgmr.msra.gmra.mxu1 %vm1486_vm2, %v4113_v52  ;;  %8217 = vmatprep.subr.mxu1 %v8874_v4 }
 0x3f2   : > { %8352 = vmatprep.subr.mxu0 %v8874_v4  ;;  %8218 = vmatpush3.msra.mxu1 %v4276_v0  ;;  %v11156_v0 = vadd.f32 %v11070_v2, %v10237_v15  ;;  %v5007_v15 = vld [vmem:[%s12171_s6 + $0xb00] sm:$0xff] }
 0x3f3   : > { %8353 = vmatpush3.msra.mxu0 %v4849_v58  ;;  %8219 = vmatprep.subr.mxu1 %v8874_v4  ;;  %v5008_v58 = vld [vmem:[%s12171_s6 + $0xb08] sm:$0xff] }
 0x3f4   : > { %8354 = vmatprep.subr.mxu0 %v8874_v4  ;;  %8220 = vmatpush3.msra.mxu1 %v4275_v60 }
 0x3f5   : > { %8355 = vmatpush3.msra.mxu0 %v4848_v50  ;;  %8221 = vmatprep.subr.mxu1 %v8874_v4  ;;  %v4434_v50 = vld [vmem:[%s12171_s6 + $0x948] sm:$0xff] }
 0x3f6   : > { %8356 = vmatprep.subr.mxu0 %v8874_v4  ;;  %8222 = vmatpush3.msra.mxu1 %v4274_v48 }
 0x3f7   : > { %8357 = vmatpush3.msra.mxu0 %v4847_v7  ;;  %8223 = vmatprep.subr.mxu1 %v8874_v4 }
 0x3f8   : > { %8358 = vmatprep.subr.mxu0 %v8874_v4  ;;  %8224 = vmatpush3.msra.mxu1 %v4273_v47  ;;  %v1404_v47 = vmax.f32 %v11156_v0, 0.0  ;;  %v5259_v0 = vld [vmem:[%s12171_s6 + $0xbf0] sm:$0xff] }
 0x3f9   : > { %8359 = vmatpush3.msra.mxu0 %v4846_v63  ;;  %8225 = vmatprep.subr.mxu1 %v8874_v4  ;;  %v4433_v63 = vld [vmem:[%s12171_s6 + $0x940] sm:$0xff] }
 0x3fa   : > { %8360 = vmatprep.subr.mxu0 %v8874_v4  ;;  %8226 = vmatpush3.msra.mxu1 %v4272_v57  ;;  %v3116_v3 = vpop.f32.mrf.mxu0  ;;  %v5178_v57 = vld [vmem:[%s12171_s6 + $0xbb8] sm:$0xff] }
 0x3fb   : > { %8361 = vmatpush3.msra.mxu0 %v4845_v6  ;;  %8227 = vmatprep.subr.mxu1 %v8874_v4  ;;  %v11084_v20 = vadd.f32 %v3116_v3, %v2246_v12  ;;  %v4441_v12 = vrot.slane %v1400_v45, 4  ;;  %v5176_v45 = vld [vmem:[%s12171_s6 + $0xba8] sm:$0xff] }
 0x3fc   : > { %8362 = vmatprep.subr.mxu0 %v8874_v4  ;;  %8228 = vmatpush3.msra.mxu1 %v4271_v16  ;;  %v7950_v21 = vpop.f32.mrf.mxu0  ;;  %v4604_v16 = vld [vmem:[%s12171_s6 + $0x9f8] sm:$0xff]  ;;  %v4602_v3 = vld [vmem:[%s12171_s6 + $0x9e8] sm:$0xff] }
 0x3fd   : > { %8363 = vmatpush3.msra.mxu0 %v4844_v31  ;;  %8229 = vmatprep.subr.mxu1 %v8874_v4  ;;  %v2553_v54 = vpop.f32.mrf.mxu1  ;;  %v5177_v31 = vld [vmem:[%s12171_s6 + $0xbb0] sm:$0xff]  ;;  %v5174_v21 = vld [vmem:[%s12171_s6 + $0xb98] sm:$0xff] }
 0x3fe   : > { %8364 = vmatprep.subr.mxu0 %v8874_v4  ;;  %8230 = vmatpush3.msra.mxu1 %v4270_v24  ;;  %v2554_v52 = vadd.f32 %v2553_v54, %v10748_v9  ;;  %v5175_v24 = vld [vmem:[%s12171_s6 + $0xba0] sm:$0xff]  ;;  %v4600_v54 = vld [vmem:[%s12171_s6 + $0x9d8] sm:$0xff] }
 0x3ff   : > { %8365 = vmatpush3.msra.mxu0 %v4843_v59  ;;  %8366 = vmatprep.mubr.msk.f32.mxu0 %vm8875_vm1, %v8874_v4  ;;  %v7817_v29 = vpop.f32.mrf.mxu1  ;;  %v4601_v59 = vld [vmem:[%s12171_s6 + $0x9e0] sm:$0xff] }
 0x400   : > { %8231 = vmatprep.subr.mxu1 %v8874_v4  ;;  %8367 = vmatmul.mubr.msk.f32.vlgmr.msra.gmra.mxu0 %vm1486_vm2, %v1403_v25  ;;  %v11239_v29 = vadd.f32 %v11070_v2, %v10218_v11  ;;  %v5171_v11 = vld [vmem:[%s12171_s6 + $0xb80] sm:$0xff] }
 0x401   : > { %8388 = vmatprep.subr.mxu0 %v8874_v4  ;;  %8232 = vmatpush3.msra.mxu1 %v4269_v26  ;;  %v5173_v26 = vld [vmem:[%s12171_s6 + $0xb90] sm:$0xff] }
 0x402   : > { %8233 = vmatprep.mubr.msk.f32.mxu1 %vm8875_vm1, %v8874_v4  ;;  %8389 = vmatpush3.msra.mxu0 %v5014_v27  ;;  %v4599_v27 = vld [vmem:[%s12171_s6 + $0x9d0] sm:$0xff] }
 0x403   : > { %8234 = vmatmul.mubr.msk.f32.vlgmr.msra.gmra.mxu1 %vm1486_vm2, %v4277_v62  ;;  %8255 = vmatprep.subr.mxu1 %v8874_v4  ;;  %v5172_v62 = vld [vmem:[%s12171_s6 + $0xb88] sm:$0xff] }
 0x404   : > { %8390 = vmatprep.subr.mxu0 %v8874_v4  ;;  %8256 = vmatpush3.msra.mxu1 %v4440_v32 }
 0x405   : > { %8391 = vmatpush3.msra.mxu0 %v5013_v42  ;;  %8257 = vmatprep.subr.mxu1 %v8874_v4  ;;  %v4598_v42 = vld [vmem:[%s12171_s6 + $0x9c8] sm:$0xff] }
 0x406   : > { %8392 = vmatprep.subr.mxu0 %v8874_v4  ;;  %8258 = vmatpush3.msra.mxu1 %v4439_v35 }
 0x407   : > { %8393 = vmatpush3.msra.mxu0 %v5012_v13  ;;  %8259 = vmatprep.subr.mxu1 %v8874_v4 }
 0x408   : > { %8394 = vmatprep.subr.mxu0 %v8874_v4  ;;  %8260 = vmatpush3.msra.mxu1 %v4438_v53 }
 0x409   : > { %8395 = vmatpush3.msra.mxu0 %v5011_v17  ;;  %8261 = vmatprep.subr.mxu1 %v8874_v4  ;;  %v1405_v17 = vmax.f32 %v11239_v29, 0.0  ;;  %v5423_v29 = vld [vmem:[%s12171_s6 + $0xc70] sm:$0xff] }
 0x40a   : > { %8396 = vmatprep.subr.mxu0 %v8874_v4  ;;  %8262 = vmatpush3.msra.mxu1 %v4437_v5 }
 0x40b   : > { %8397 = vmatpush3.msra.mxu0 %v5010_v37  ;;  %8263 = vmatprep.subr.mxu1 %v8874_v4  ;;  %v5342_v37 = vld [vmem:[%s12171_s6 + $0xc38] sm:$0xff] }
 0x40c   : > { %8398 = vmatprep.subr.mxu0 %v8874_v4  ;;  %8264 = vmatpush3.msra.mxu1 %v4436_v36  ;;  %v3280_v60 = vpop.f32.mrf.mxu0 }
 0x40d   : > { %8399 = vmatpush3.msra.mxu0 %v5009_v46  ;;  %8265 = vmatprep.subr.mxu1 %v8874_v4  ;;  %v11166_v9 = vadd.f32 %v3280_v60, %v2554_v52  ;;  %v4605_v46 = vrot.slane %v1401_v41, 4  ;;  %v5340_v41 = vld [vmem:[%s12171_s6 + $0xc28] sm:$0xff]  ;;  %v4765_v60 = vld [vmem:[%s12171_s6 + $0xa60] sm:$0xff] }
 0x40e   : > { %8400 = vmatprep.subr.mxu0 %v8874_v4  ;;  %8266 = vmatpush3.msra.mxu1 %v4435_v30  ;;  %v7988_v48 = vpop.f32.mrf.mxu0  ;;  %v5341_v30 = vld [vmem:[%s12171_s6 + $0xc30] sm:$0xff]  ;;  %v4766_v52 = vld [vmem:[%s12171_s6 + $0xa68] sm:$0xff] }
 0x40f   : > { %8401 = vmatpush3.msra.mxu0 %v5008_v58  ;;  %8267 = vmatprep.subr.mxu1 %v8874_v4  ;;  %v11173_v7 = vpop.f32.mrf.mxu1  ;;  %v5339_v58 = vld [vmem:[%s12171_s6 + $0xc20] sm:$0xff]  ;;  %v5337_v48 = vld [vmem:[%s12171_s6 + $0xc10] sm:$0xff] }
 0x410   : > { %8402 = vmatprep.subr.mxu0 %v8874_v4  ;;  %8268 = vmatpush3.msra.mxu1 %v4434_v50  ;;  %v5338_v50 = vld [vmem:[%s12171_s6 + $0xc18] sm:$0xff] }
 0x411   : > { %8403 = vmatpush3.msra.mxu0 %v5007_v15  ;;  %8404 = vmatprep.mubr.msk.f32.mxu0 %vm8875_vm1, %v8874_v4  ;;  %v7855_v6 = vpop.f32.mrf.mxu1  ;;  %v4764_v15 = vld [vmem:[%s12171_s6 + $0xa58] sm:$0xff] }
 0x412   : > { %8269 = vmatprep.subr.mxu1 %v8874_v4  ;;  %8405 = vmatmul.mubr.msk.f32.vlgmr.msra.gmra.mxu0 %vm1486_vm2, %v1404_v47  ;;  %v5336_v6 = vld [vmem:[%s12171_s6 + $0xc08] sm:$0xff] }
 0x413   : > { %8426 = vmatprep.subr.mxu0 %v8874_v4  ;;  %8270 = vmatpush3.msra.mxu1 %v4433_v63  ;;  %v4763_v63 = vld [vmem:[%s12171_s6 + $0xa50] sm:$0xff] }
 0x414   : > { %8271 = vmatprep.mubr.msk.f32.mxu1 %vm8875_vm1, %v8874_v4  ;;  %8427 = vmatpush3.msra.mxu0 %v5178_v57  ;;  %v11324_v57 = vadd.f32 %v11070_v2, %v10273_v28  ;;  %v2092_v28 = vadd.f32 %v10829_v23, %v10488_v49  ;;  %v4761_v49 = vld [vmem:[%s12171_s6 + $0xa40] sm:$0xff] }
 0x415   : > { %8272 = vmatmul.mubr.msk.f32.vlgmr.msra.gmra.mxu1 %vm1486_vm2, %v4441_v12  ;;  %8293 = vmatprep.subr.mxu1 %v8874_v4 }
 0x416   : > { %8428 = vmatprep.subr.mxu0 %v8874_v4  ;;  %8294 = vmatpush3.msra.mxu1 %v4604_v16  ;;  %v4762_v16 = vld [vmem:[%s12171_s6 + $0xa48] sm:$0xff] }
 0x417   : > { %8429 = vmatpush3.msra.mxu0 %v5177_v31  ;;  %8295 = vmatprep.subr.mxu1 %v8874_v4 }
 0x418   : > { %8430 = vmatprep.subr.mxu0 %v8874_v4  ;;  %8296 = vmatpush3.msra.mxu1 %v4603_v14  ;;  %v5335_v14 = vld [vmem:[%s12171_s6 + $0xc00] sm:$0xff] }
 0x419   : > { %8431 = vmatpush3.msra.mxu0 %v5176_v45  ;;  %8297 = vmatprep.subr.mxu1 %v8874_v4 }
 0x41a   : > { %8432 = vmatprep.subr.mxu0 %v8874_v4  ;;  %8298 = vmatpush3.msra.mxu1 %v4602_v3 }
 0x41b   : > { %8433 = vmatpush3.msra.mxu0 %v5175_v24  ;;  %8299 = vmatprep.subr.mxu1 %v8874_v4  ;;  %v1406_v24 = vmax.f32 %v11324_v57, 0.0  ;;  %v5587_v57 = vld [vmem:[%s12171_s6 + $0xcf0] sm:$0xff] }
 0x41c   : > { %8434 = vmatprep.subr.mxu0 %v8874_v4  ;;  %8300 = vmatpush3.msra.mxu1 %v4601_v59 }
 0x41d   : > { %8435 = vmatpush3.msra.mxu0 %v5174_v21  ;;  %8301 = vmatprep.subr.mxu1 %v8874_v4  ;;  %v4769_v21 = vrot.slane %v1402_v40, 4  ;;  %v5504_v40 = vld [vmem:[%s12171_s6 + $0xca8] sm:$0xff] }
 0x41e   : > { %8436 = vmatprep.subr.mxu0 %v8874_v4  ;;  %8302 = vmatpush3.msra.mxu1 %v4600_v54  ;;  %v3444_v32 = vpop.f32.mrf.mxu0  ;;  %v4932_v54 = vld [vmem:[%s12171_s6 + $0xaf8] sm:$0xff] }
 0x41f   : > { %8437 = vmatpush3.msra.mxu0 %v5173_v26  ;;  %8303 = vmatprep.subr.mxu1 %v8874_v4  ;;  %v11250_v35 = vadd.f32 %v3444_v32, %v10909_v1  ;;  %v4597_v1 = vld [vmem:[%s12171_s6 + $0x9c0] sm:$0xff]  ;;  %v5505_v26 = vld [vmem:[%s12171_s6 + $0xcb0] sm:$0xff] }
 0x420   : > { %8438 = vmatprep.subr.mxu0 %v8874_v4  ;;  %8304 = vmatpush3.msra.mxu1 %v4599_v27  ;;  %v8026_v13 = vpop.f32.mrf.mxu0  ;;  %v4930_v27 = vld [vmem:[%s12171_s6 + $0xae8] sm:$0xff]  ;;  %v4929_v32 = vld [vmem:[%s12171_s6 + $0xae0] sm:$0xff] }
 0x421   : > { %8439 = vmatpush3.msra.mxu0 %v5172_v62  ;;  %8305 = vmatprep.subr.mxu1 %v8874_v4  ;;  %v2870_v53 = vpop.f32.mrf.mxu1  ;;  %v5503_v62 = vld [vmem:[%s12171_s6 + $0xca0] sm:$0xff]  ;;  %v5501_v13 = vld [vmem:[%s12171_s6 + $0xc90] sm:$0xff] }
 0x422   : > { %8440 = vmatprep.subr.mxu0 %v8874_v4  ;;  %8306 = vmatpush3.msra.mxu1 %v4598_v42  ;;  %v11263_v5 = vadd.f32 %v2870_v53, %v10666_v43  ;;  %v4768_v43 = vld [vmem:[%s12171_s6 + $0xa78] sm:$0xff]  ;;  %v4927_v53 = vld [vmem:[%s12171_s6 + $0xad0] sm:$0xff] }
 0x423   : > { %8441 = vmatpush3.msra.mxu0 %v5171_v11  ;;  %8442 = vmatprep.mubr.msk.f32.mxu0 %vm8875_vm1, %v8874_v4  ;;  %v7893_v36 = vpop.f32.mrf.mxu1  ;;  %v5502_v42 = vld [vmem:[%s12171_s6 + $0xc98] sm:$0xff] }
 0x424   : > { %8307 = vmatprep.subr.mxu1 %v8874_v4  ;;  %8443 = vmatmul.mubr.msk.f32.vlgmr.msra.gmra.mxu0 %vm1486_vm2, %v1405_v17  ;;  %v4928_v11 = vld [vmem:[%s12171_s6 + $0xad8] sm:$0xff] }
 0x425   : > { %8464 = vmatprep.subr.mxu0 %v8874_v4  ;;  %8308 = vmatpush3.msra.mxu1 %v4597_v1  ;;  %v11410_v1 = vadd.f32 %v11070_v2, %v10253_v19  ;;  %v2400_v19 = vadd.f32 %v11001_v39, %v10662_v8  ;;  %v4925_v8 = vld [vmem:[%s12171_s6 + $0xac0] sm:$0xff] }
 0x426   : > { %8309 = vmatprep.mubr.msk.f32.mxu1 %vm8875_vm1, %v8874_v4  ;;  %8465 = vmatpush3.msra.mxu0 %v5342_v37  ;;  %v5500_v37 = vld [vmem:[%s12171_s6 + $0xc88] sm:$0xff] }
 0x427   : > { %8310 = vmatmul.mubr.msk.f32.vlgmr.msra.gmra.mxu1 %vm1486_vm2, %v4605_v46  ;;  %8331 = vmatprep.subr.mxu1 %v8874_v4  ;;  %v4926_v46 = vld [vmem:[%s12171_s6 + $0xac8] sm:$0xff] }
 0x428   : > { %8466 = vmatprep.subr.mxu0 %v8874_v4  ;;  %8332 = vmatpush3.msra.mxu1 %v4768_v43 }
 0x429   : > { %8467 = vmatpush3.msra.mxu0 %v5341_v30  ;;  %8333 = vmatprep.subr.mxu1 %v8874_v4  ;;  %v5499_v30 = vld [vmem:[%s12171_s6 + $0xc80] sm:$0xff] }
 0x42a   : > { %8468 = vmatprep.subr.mxu0 %v8874_v4  ;;  %8334 = vmatpush3.msra.mxu1 %v4767_v55 }
 0x42b   : > { %8469 = vmatpush3.msra.mxu0 %v5340_v41  ;;  %8335 = vmatprep.subr.mxu1 %v8874_v4 }
 0x42c   : > { %8470 = vmatprep.subr.mxu0 %v8874_v4  ;;  %8336 = vmatpush3.msra.mxu1 %v4766_v52  ;;  %v1407_v52 = vmax.f32 %v11410_v1, 0.0  ;;  %v5751_v1 = vld [vmem:[%s12171_s6 + $0xd70] sm:$0xff] }
 0x42d   : > { %8471 = vmatpush3.msra.mxu0 %v5339_v58  ;;  %8337 = vmatprep.subr.mxu1 %v8874_v4 }
 0x42e   : > { %8472 = vmatprep.subr.mxu0 %v8874_v4  ;;  %8338 = vmatpush3.msra.mxu1 %v4765_v60  ;;  %v4933_v60 = vrot.slane %v1403_v25, 4  ;;  %v5668_v25 = vld [vmem:[%s12171_s6 + $0xd28] sm:$0xff] }
 0x42f   : > { %8473 = vmatpush3.msra.mxu0 %v5338_v50  ;;  %8339 = vmatprep.subr.mxu1 %v8874_v4  ;;  %v5096_v50 = vld [vmem:[%s12171_s6 + $0xb78] sm:$0xff] }
 0x430   : > { %8474 = vmatprep.subr.mxu0 %v8874_v4  ;;  %8340 = vmatpush3.msra.mxu1 %v4764_v15  ;;  %v3608_v12 = vpop.f32.mrf.mxu0  ;;  %v5669_v15 = vld [vmem:[%s12171_s6 + $0xd30] sm:$0xff] }
 0x431   : > { %8475 = vmatpush3.msra.mxu0 %v5337_v48  ;;  %8341 = vmatprep.subr.mxu1 %v8874_v4  ;;  %v11335_v31 = vadd.f32 %v3608_v12, %v10994_v44  ;;  %v5506_v44 = vld [vmem:[%s12171_s6 + $0xcb8] sm:$0xff]  ;;  %v5094_v48 = vld [vmem:[%s12171_s6 + $0xb68] sm:$0xff] }
 0x432   : > { %8476 = vmatprep.subr.mxu0 %v8874_v4  ;;  %8342 = vmatpush3.msra.mxu1 %v4763_v63  ;;  %v8064_v45 = vpop.f32.mrf.mxu0  ;;  %v5667_v63 = vld [vmem:[%s12171_s6 + $0xd20] sm:$0xff]  ;;  %v5666_v12 = vld [vmem:[%s12171_s6 + $0xd18] sm:$0xff] }
 0x433   : > { %8477 = vmatpush3.msra.mxu0 %v5336_v6  ;;  %8343 = vmatprep.subr.mxu1 %v8874_v4  ;;  %v3034_v3 = vpop.f32.mrf.mxu1  ;;  %v5093_v6 = vld [vmem:[%s12171_s6 + $0xb60] sm:$0xff]  ;;  %v11496_v45 = vadd.f32 %v11070_v2, %v10318_v22  ;;  %v2708_v22 = vadd.f32 %v11173_v7, %v10831_v38  ;;  %v5834_v7 = vld [vmem:[%s12171_s6 + $0xdb8] sm:$0xff] }
 0x434   : > { %8478 = vmatprep.subr.mxu0 %v8874_v4  ;;  %8344 = vmatpush3.msra.mxu1 %v4762_v16  ;;  %v11349_v23 = vadd.f32 %v3034_v3, %v2092_v28  ;;  %v5092_v16 = vld [vmem:[%s12171_s6 + $0xb58] sm:$0xff]  ;;  %v5665_v28 = vld [vmem:[%s12171_s6 + $0xd10] sm:$0xff]  ;;  %v5664_v3 = vld [vmem:[%s12171_s6 + $0xd08] sm:$0xff] }
 0x435   : > { %8479 = vmatpush3.msra.mxu0 %v5335_v14  ;;  %8480 = vmatprep.mubr.msk.f32.mxu0 %vm8875_vm1, %v8874_v4  ;;  %v7931_v59 = vpop.f32.mrf.mxu1  ;;  %v5091_v14 = vld [vmem:[%s12171_s6 + $0xb50] sm:$0xff]  ;;  %v5089_v38 = vld [vmem:[%s12171_s6 + $0xb40] sm:$0xff] }
 0x436   : > { %8345 = vmatprep.subr.mxu1 %v8874_v4  ;;  %8481 = vmatmul.mubr.msk.f32.vlgmr.msra.gmra.mxu0 %vm1486_vm2, %v1406_v24 }
 0x437   : > { %8502 = vmatprep.subr.mxu0 %v8874_v4  ;;  %8346 = vmatpush3.msra.mxu1 %v4761_v49 }
 0x438   : > { %8347 = vmatprep.mubr.msk.f32.mxu1 %vm8875_vm1, %v8874_v4  ;;  %8503 = vmatpush3.msra.mxu0 %v5506_v44  ;;  %v5090_v44 = vld [vmem:[%s12171_s6 + $0xb48] sm:$0xff] }
 0x439   : > { %8348 = vmatmul.mubr.msk.f32.vlgmr.msra.gmra.mxu1 %vm1486_vm2, %v4769_v21  ;;  %8369 = vmatprep.subr.mxu1 %v8874_v4  ;;  %v5663_v21 = vld [vmem:[%s12171_s6 + $0xd00] sm:$0xff] }
 0x43a   : > { %8504 = vmatprep.subr.mxu0 %v8874_v4  ;;  %8370 = vmatpush3.msra.mxu1 %v4932_v54 }
 0x43b   : > { %8505 = vmatpush3.msra.mxu0 %v5505_v26  ;;  %8371 = vmatprep.subr.mxu1 %v8874_v4 }
 0x43c   : > { %8506 = vmatprep.subr.mxu0 %v8874_v4  ;;  %8372 = vmatpush3.msra.mxu1 %v4931_v33  ;;  %v1408_v33 = vmax.f32 %v11496_v45, 0.0  ;;  %v5915_v45 = vld [vmem:[%s12171_s6 + $0xdf0] sm:$0xff] }
 0x43d   : > { %8507 = vmatpush3.msra.mxu0 %v5504_v40  ;;  %8373 = vmatprep.subr.mxu1 %v8874_v4 }
 0x43e   : > { %8508 = vmatprep.subr.mxu0 %v8874_v4  ;;  %8374 = vmatpush3.msra.mxu1 %v4930_v27  ;;  %v5097_v27 = vrot.slane %v1404_v47, 4  ;;  %v5832_v47 = vld [vmem:[%s12171_s6 + $0xda8] sm:$0xff] }
 0x43f   : > { %8509 = vmatpush3.msra.mxu0 %v5503_v62  ;;  %8375 = vmatprep.subr.mxu1 %v8874_v4  ;;  %v5260_v62 = vld [vmem:[%s12171_s6 + $0xbf8] sm:$0xff] }
 0x440   : > { %8510 = vmatprep.subr.mxu0 %v8874_v4  ;;  %8376 = vmatpush3.msra.mxu1 %v4929_v32  ;;  %v5833_v32 = vld [vmem:[%s12171_s6 + $0xdb0] sm:$0xff] }
 0x441   : > { %8511 = vmatpush3.msra.mxu0 %v5502_v42  ;;  %8377 = vmatprep.subr.mxu1 %v8874_v4  ;;  %v5258_v42 = vld [vmem:[%s12171_s6 + $0xbe8] sm:$0xff] }
 0x442   : > { %8512 = vmatprep.subr.mxu0 %v8874_v4  ;;  %8378 = vmatpush3.msra.mxu1 %v4928_v11  ;;  %v3772_v36 = vpop.f32.mrf.mxu0  ;;  %v5831_v11 = vld [vmem:[%s12171_s6 + $0xda0] sm:$0xff] }
 0x443   : > { %8513 = vmatpush3.msra.mxu0 %v5501_v13  ;;  %8379 = vmatprep.subr.mxu1 %v8874_v4  ;;  %v11421_v43 = vadd.f32 %v3772_v36, %v11084_v20  ;;  %v5670_v20 = vld [vmem:[%s12171_s6 + $0xd38] sm:$0xff]  ;;  %v5257_v13 = vld [vmem:[%s12171_s6 + $0xbe0] sm:$0xff]  ;;  %v5829_v36 = vld [vmem:[%s12171_s6 + $0xd90] sm:$0xff] }
 0x444   : > { %8514 = vmatprep.subr.mxu0 %v8874_v4  ;;  %8380 = vmatpush3.msra.mxu1 %v4927_v53  ;;  %v8102_v55 = vpop.f32.mrf.mxu0  ;;  %v5830_v53 = vld [vmem:[%s12171_s6 + $0xd98] sm:$0xff] }
 0x445   : > { %8515 = vmatpush3.msra.mxu0 %v5500_v37  ;;  %8381 = vmatprep.subr.mxu1 %v8874_v4  ;;  %v3198_v41 = vpop.f32.mrf.mxu1  ;;  %v5256_v37 = vld [vmem:[%s12171_s6 + $0xbd8] sm:$0xff] }
 0x446   : > { %8516 = vmatprep.subr.mxu0 %v8874_v4  ;;  %8382 = vmatpush3.msra.mxu1 %v4926_v46  ;;  %v11435_v39 = vadd.f32 %v3198_v41, %v2400_v19  ;;  %v5255_v46 = vld [vmem:[%s12171_s6 + $0xbd0] sm:$0xff]  ;;  %v11582_v19 = vadd.f32 %v11070_v2, %v10291_v34  ;;  %v5254_v41 = vld [vmem:[%s12171_s6 + $0xbc8] sm:$0xff]  ;;  %v5827_v34 = vld [vmem:[%s12171_s6 + $0xd80] sm:$0xff] }
 0x447   : > { %8517 = vmatpush3.msra.mxu0 %v5499_v30  ;;  %8518 = vmatprep.mubr.msk.f32.mxu0 %vm8875_vm1, %v8874_v4  ;;  %v7969_v58 = vpop.f32.mrf.mxu1  ;;  %v5828_v30 = vld [vmem:[%s12171_s6 + $0xd88] sm:$0xff] }
 0x448   : > { %8383 = vmatprep.subr.mxu1 %v8874_v4  ;;  %8519 = vmatmul.mubr.msk.f32.vlgmr.msra.gmra.mxu0 %vm1486_vm2, %v1407_v52 }
 0x449   : > { %8540 = vmatprep.subr.mxu0 %v8874_v4  ;;  %8384 = vmatpush3.msra.mxu1 %v4925_v8 }
 0x44a   : > { %8385 = vmatprep.mubr.msk.f32.mxu1 %vm8875_vm1, %v8874_v4  ;;  %8541 = vmatpush3.msra.mxu0 %v5670_v20 }
 0x44b   : > { %8386 = vmatmul.mubr.msk.f32.vlgmr.msra.gmra.mxu1 %vm1486_vm2, %v4933_v60  ;;  %8407 = vmatprep.subr.mxu1 %v8874_v4  ;;  %v1409_v60 = vmax.f32 %v11582_v19, 0.0  ;;  %v6079_v19 = vld [vmem:[%s12171_s6 + $0xe70] sm:$0xff] }
 0x44c   : > { %8542 = vmatprep.subr.mxu0 %v8874_v4  ;;  %8408 = vmatpush3.msra.mxu1 %v5096_v50 }
 0x44d   : > { %8543 = vmatpush3.msra.mxu0 %v5669_v15  ;;  %8409 = vmatprep.subr.mxu1 %v8874_v4  ;;  %v5998_v15 = vld [vmem:[%s12171_s6 + $0xe38] sm:$0xff] }
 0x44e   : > { %8544 = vmatprep.subr.mxu0 %v8874_v4  ;;  %8410 = vmatpush3.msra.mxu1 %v5095_v18 }
 0x44f   : > { %8545 = vmatpush3.msra.mxu0 %v5668_v25  ;;  %8411 = vmatprep.subr.mxu1 %v8874_v4  ;;  %v5261_v25 = vrot.slane %v1405_v17, 4  ;;  %v5996_v17 = vld [vmem:[%s12171_s6 + $0xe28] sm:$0xff] }
 0x450   : > { %8546 = vmatprep.subr.mxu0 %v8874_v4  ;;  %8412 = vmatpush3.msra.mxu1 %v5094_v48  ;;  %v5997_v48 = vld [vmem:[%s12171_s6 + $0xe30] sm:$0xff] }
 0x451   : > { %8547 = vmatpush3.msra.mxu0 %v5667_v63  ;;  %8413 = vmatprep.subr.mxu1 %v8874_v4  ;;  %v5422_v63 = vld [vmem:[%s12171_s6 + $0xc68] sm:$0xff] }
 0x452   : > { %8548 = vmatprep.subr.mxu0 %v8874_v4  ;;  %8414 = vmatpush3.msra.mxu1 %v5093_v6  ;;  %v5995_v6 = vld [vmem:[%s12171_s6 + $0xe20] sm:$0xff] }
 0x453   : > { %8549 = vmatpush3.msra.mxu0 %v5666_v12  ;;  %8415 = vmatprep.subr.mxu1 %v8874_v4  ;;  %v5421_v12 = vld [vmem:[%s12171_s6 + $0xc60] sm:$0xff] }
 0x454   : > { %8550 = vmatprep.subr.mxu0 %v8874_v4  ;;  %8416 = vmatpush3.msra.mxu1 %v5092_v16  ;;  %v3936_v49 = vpop.f32.mrf.mxu0  ;;  %v5994_v16 = vld [vmem:[%s12171_s6 + $0xe18] sm:$0xff] }
 0x455   : > { %8551 = vmatpush3.msra.mxu0 %v5665_v28  ;;  %8417 = vmatprep.subr.mxu1 %v8874_v4  ;;  %v11507_v59 = vadd.f32 %v3936_v49, %v11166_v9  ;;  %v5420_v28 = vld [vmem:[%s12171_s6 + $0xc58] sm:$0xff]  ;;  %v11667_v49 = vadd.f32 %v11070_v2, %v10356_v56  ;;  %v5991_v56 = vld [vmem:[%s12171_s6 + $0xe00] sm:$0xff] }
 0x456   : > { %8552 = vmatprep.subr.mxu0 %v8874_v4  ;;  %8418 = vmatpush3.msra.mxu1 %v5091_v14  ;;  %v8140_v54 = vpop.f32.mrf.mxu0  ;;  %v5993_v14 = vld [vmem:[%s12171_s6 + $0xe10] sm:$0xff] }
 0x457   : > { %8553 = vmatpush3.msra.mxu0 %v5664_v3  ;;  %8419 = vmatprep.subr.mxu1 %v8874_v4  ;;  %v3362_v26 = vpop.f32.mrf.mxu1  ;;  %v5419_v3 = vld [vmem:[%s12171_s6 + $0xc50] sm:$0xff] }
 0x458   : > { %8554 = vmatprep.subr.mxu0 %v8874_v4  ;;  %8420 = vmatpush3.msra.mxu1 %v5090_v44  ;;  %v11521_v9 = vadd.f32 %v3362_v26, %v2708_v22  ;;  %v5992_v44 = vld [vmem:[%s12171_s6 + $0xe08] sm:$0xff] }
 0x459   : > { %8555 = vmatpush3.msra.mxu0 %v5663_v21  ;;  %8556 = vmatprep.mubr.msk.f32.mxu0 %vm8875_vm1, %v8874_v4  ;;  %v8007_v40 = vpop.f32.mrf.mxu1  ;;  %v5418_v21 = vld [vmem:[%s12171_s6 + $0xc48] sm:$0xff] }
 0x45a   : > { %8421 = vmatprep.subr.mxu1 %v8874_v4  ;;  %8557 = vmatmul.mubr.msk.f32.vlgmr.msra.gmra.mxu0 %vm1486_vm2, %v1408_v33 }
 0x45b   : > { %8578 = vmatprep.subr.mxu0 %v8874_v4  ;;  %8422 = vmatpush3.msra.mxu1 %v5089_v38 }
 0x45c   : > { %8423 = vmatprep.mubr.msk.f32.mxu1 %vm8875_vm1, %v8874_v4  ;;  %8579 = vmatpush3.msra.mxu0 %v5834_v7  ;;  %v1410_v7 = vmax.f32 %v11667_v49, 0.0  ;;  %v6243_v49 = vld [vmem:[%s12171_s6 + $0xef0] sm:$0xff] }
 0x45d   : > { %8424 = vmatmul.mubr.msk.f32.vlgmr.msra.gmra.mxu1 %vm1486_vm2, %v5097_v27  ;;  %8445 = vmatprep.subr.mxu1 %v8874_v4  ;;  %v6162_v27 = vld [vmem:[%s12171_s6 + $0xeb8] sm:$0xff] }
 0x45e   : > { %8580 = vmatprep.subr.mxu0 %v8874_v4  ;;  %8446 = vmatpush3.msra.mxu1 %v5260_v62 }
 0x45f   : > { %8581 = vmatpush3.msra.mxu0 %v5833_v32  ;;  %8447 = vmatprep.subr.mxu1 %v8874_v4  ;;  %v5425_v32 = vrot.slane %v1406_v24, 4  ;;  %v6160_v24 = vld [vmem:[%s12171_s6 + $0xea8] sm:$0xff] }
 0x460   : > { %8582 = vmatprep.subr.mxu0 %v8874_v4  ;;  %8448 = vmatpush3.msra.mxu1 %v5259_v0  ;;  %v6161_v0 = vld [vmem:[%s12171_s6 + $0xeb0] sm:$0xff] }
 0x461   : > { %8583 = vmatpush3.msra.mxu0 %v5832_v47  ;;  %8449 = vmatprep.subr.mxu1 %v8874_v4  ;;  %v5586_v47 = vld [vmem:[%s12171_s6 + $0xce8] sm:$0xff] }
 0x462   : > { %8584 = vmatprep.subr.mxu0 %v8874_v4  ;;  %8450 = vmatpush3.msra.mxu1 %v5258_v42  ;;  %v6159_v42 = vld [vmem:[%s12171_s6 + $0xea0] sm:$0xff] }
 0x463   : > { %8585 = vmatpush3.msra.mxu0 %v5831_v11  ;;  %8451 = vmatprep.subr.mxu1 %v8874_v4  ;;  %v5585_v11 = vld [vmem:[%s12171_s6 + $0xce0] sm:$0xff] }
 0x464   : > { %8586 = vmatprep.subr.mxu0 %v8874_v4  ;;  %8452 = vmatpush3.msra.mxu1 %v5257_v13  ;;  %v6158_v13 = vld [vmem:[%s12171_s6 + $0xe98] sm:$0xff] }
 0x465   : > { %8587 = vmatpush3.msra.mxu0 %v5830_v53  ;;  %8453 = vmatprep.subr.mxu1 %v8874_v4  ;;  %v5584_v53 = vld [vmem:[%s12171_s6 + $0xcd8] sm:$0xff] }
 0x466   : > { %8588 = vmatprep.subr.mxu0 %v8874_v4  ;;  %8454 = vmatpush3.msra.mxu1 %v5256_v37  ;;  %v4100_v55 = vpop.f32.mrf.mxu0  ;;  %v6157_v37 = vld [vmem:[%s12171_s6 + $0xe90] sm:$0xff] }
 0x467   : > { %8589 = vmatpush3.msra.mxu0 %v5829_v36  ;;  %8455 = vmatprep.subr.mxu1 %v8874_v4  ;;  %v11593_v8 = vadd.f32 %v4100_v55, %v11250_v35  ;;  %v5253_v35 = vld [vmem:[%s12171_s6 + $0xbc0] sm:$0xff]  ;;  %v5583_v36 = vld [vmem:[%s12171_s6 + $0xcd0] sm:$0xff] }
 0x468   : > { %8590 = vmatprep.subr.mxu0 %v8874_v4  ;;  %8456 = vmatpush3.msra.mxu1 %v5255_v46  ;;  %v8178_v20 = vpop.f32.mrf.mxu0  ;;  %v11752_v46 = vadd.f32 %v11070_v2, %v10334_v51  ;;  %v6155_v51 = vld [vmem:[%s12171_s6 + $0xe80] sm:$0xff] }
 0x469   : > { %8591 = vmatpush3.msra.mxu0 %v5828_v30  ;;  %8457 = vmatprep.subr.mxu1 %v8874_v4  ;;  %v3526_v58 = vpop.f32.mrf.mxu1  ;;  %v6156_v30 = vld [vmem:[%s12171_s6 + $0xe88] sm:$0xff] }
 0x46a   : > { %8592 = vmatprep.subr.mxu0 %v8874_v4  ;;  %8458 = vmatpush3.msra.mxu1 %v5254_v41  ;;  %v11606_v50 = vadd.f32 %v3526_v58, %v11263_v5  ;;  %v5424_v5 = vld [vmem:[%s12171_s6 + $0xc78] sm:$0xff]  ;;  %v5582_v41 = vld [vmem:[%s12171_s6 + $0xcc8] sm:$0xff]  ;;  %v1411_v58 = vmax.f32 %v11752_v46, 0.0 }
 0x46b   : > { %8593 = vmatpush3.msra.mxu0 %v5827_v34  ;;  %8594 = vmatprep.mubr.msk.f32.mxu0 %vm8875_vm1, %v8874_v4  ;;  %v8045_v18 = vpop.f32.mrf.mxu1 }
 0x46c   : > { %8459 = vmatprep.subr.mxu1 %v8874_v4  ;;  %8595 = vmatmul.mubr.msk.f32.vlgmr.msra.gmra.mxu0 %vm1486_vm2, %v1409_v60 }
 0x46d   : > { %8616 = vmatprep.subr.mxu0 %v8874_v4  ;;  %8460 = vmatpush3.msra.mxu1 %v5253_v35 }
 0x46e   : > { %8461 = vmatprep.mubr.msk.f32.mxu1 %vm8875_vm1, %v8874_v4  ;;  %8617 = vmatpush3.msra.mxu0 %v5998_v15  ;;  %v6326_v15 = vld [vmem:[%s12171_s6 + $0xf38] sm:$0xff] }
 0x46f   : > { %8462 = vmatmul.mubr.msk.f32.vlgmr.msra.gmra.mxu1 %vm1486_vm2, %v5261_v25  ;;  %8483 = vmatprep.subr.mxu1 %v8874_v4  ;;  %v5589_v25 = vrot.slane %v1407_v52, 4  ;;  %v6324_v52 = vld [vmem:[%s12171_s6 + $0xf28] sm:$0xff] }
 0x470   : > { %8618 = vmatprep.subr.mxu0 %v8874_v4  ;;  %8484 = vmatpush3.msra.mxu1 %v5424_v5  ;;  %v6325_v5 = vld [vmem:[%s12171_s6 + $0xf30] sm:$0xff] }
 0x471   : > { %8619 = vmatpush3.msra.mxu0 %v5997_v48  ;;  %8485 = vmatprep.subr.mxu1 %v8874_v4  ;;  %v5750_v48 = vld [vmem:[%s12171_s6 + $0xd68] sm:$0xff] }
 0x472   : > { %8620 = vmatprep.subr.mxu0 %v8874_v4  ;;  %8486 = vmatpush3.msra.mxu1 %v5423_v29  ;;  %v6323_v29 = vld [vmem:[%s12171_s6 + $0xf20] sm:$0xff] }
 0x473   : > { %8621 = vmatpush3.msra.mxu0 %v5996_v17  ;;  %8487 = vmatprep.subr.mxu1 %v8874_v4  ;;  %v5749_v17 = vld [vmem:[%s12171_s6 + $0xd60] sm:$0xff] }
 0x474   : > { %8622 = vmatprep.subr.mxu0 %v8874_v4  ;;  %8488 = vmatpush3.msra.mxu1 %v5422_v63  ;;  %v6322_v63 = vld [vmem:[%s12171_s6 + $0xf18] sm:$0xff] }
 0x475   : > { %8623 = vmatpush3.msra.mxu0 %v5995_v6  ;;  %8489 = vmatprep.subr.mxu1 %v8874_v4  ;;  %v5748_v6 = vld [vmem:[%s12171_s6 + $0xd58] sm:$0xff] }
 0x476   : > { %8624 = vmatprep.subr.mxu0 %v8874_v4  ;;  %8490 = vmatpush3.msra.mxu1 %v5421_v12  ;;  %v6321_v12 = vld [vmem:[%s12171_s6 + $0xf10] sm:$0xff] }
 0x477   : > { %8625 = vmatpush3.msra.mxu0 %v5994_v16  ;;  %8491 = vmatprep.subr.mxu1 %v8874_v4  ;;  %v5747_v16 = vld [vmem:[%s12171_s6 + $0xd50] sm:$0xff] }
 0x478   : > { %8626 = vmatprep.subr.mxu0 %v8874_v4  ;;  %8492 = vmatpush3.msra.mxu1 %v5420_v28  ;;  %v4264_v22 = vpop.f32.mrf.mxu0  ;;  %v8811_v28 = vld [vmem:[%s12170_s5] ss:$0 sm:$0xff] }
 0x479   : > { %8627 = vmatpush3.msra.mxu0 %v5993_v14  ;;  %8493 = vmatprep.subr.mxu1 %v8874_v4  ;;  %v11678_v54 = vadd.f32 %v4264_v22, %v11335_v31  ;;  %v5417_v31 = vld [vmem:[%s12171_s6 + $0xc40] sm:$0xff]  ;;  %v11839_v14 = vadd.f32 %v8811_v28, %v10397_v10  ;;  %v5746_v22 = vld [vmem:[%s12171_s6 + $0xd48] sm:$0xff] }
 0x47a   : > { %8628 = vmatprep.subr.mxu0 %v8874_v4  ;;  %8494 = vmatpush3.msra.mxu1 %v5419_v3  ;;  %v8216_v26 = vpop.f32.mrf.mxu0  ;;  %v6320_v3 = vld [vmem:[%s12171_s6 + $0xf08] sm:$0xff]  ;;  %v6319_v10 = vld [vmem:[%s12171_s6 + $0xf00] sm:$0xff] }
 0x47b   : > { %8629 = vmatpush3.msra.mxu0 %v5992_v44  ;;  %8495 = vmatprep.subr.mxu1 %v8874_v4  ;;  %v3690_v38 = vpop.f32.mrf.mxu1 }
 0x47c   : > { %8630 = vmatprep.subr.mxu0 %v8874_v4  ;;  %8496 = vmatpush3.msra.mxu1 %v5418_v21  ;;  %v11691_v40 = vadd.f32 %v3690_v38, %v11349_v23  ;;  %v5588_v23 = vld [vmem:[%s12171_s6 + $0xcf8] sm:$0xff]  ;;  %v1412_v38 = vmax.f32 %v11839_v14, 0.0 }
 0x47d   : > { %8631 = vmatpush3.msra.mxu0 %v5991_v56  ;;  %8632 = vmatprep.mubr.msk.f32.mxu0 %vm8875_vm1, %v8874_v4  ;;  %v8083_v62 = vpop.f32.mrf.mxu1 }
 0x47e   : > { %8497 = vmatprep.subr.mxu1 %v8874_v4  ;;  %8633 = vmatmul.mubr.msk.f32.vlgmr.msra.gmra.mxu0 %vm1486_vm2, %v1410_v7 }
 0x47f   : > { %8654 = vmatprep.subr.mxu0 %v8874_v4  ;;  %8498 = vmatpush3.msra.mxu1 %v5417_v31 }
 0x480   : > { %8499 = vmatprep.mubr.msk.f32.mxu1 %vm8875_vm1, %v8874_v4  ;;  %8655 = vmatpush3.msra.mxu0 %v6162_v27  ;;  %v6490_v27 = vld [vmem:[%s12171_s6 + $0xfb8] sm:$0xff] }
 0x481   : > { %8500 = vmatmul.mubr.msk.f32.vlgmr.msra.gmra.mxu1 %vm1486_vm2, %v5425_v32  ;;  %8521 = vmatprep.subr.mxu1 %v8874_v4  ;;  %v5753_v32 = vrot.slane %v1408_v33, 4  ;;  %v6488_v33 = vld [vmem:[%s12171_s6 + $0xfa8] sm:$0xff] }
 0x482   : > { %8656 = vmatprep.subr.mxu0 %v8874_v4  ;;  %8522 = vmatpush3.msra.mxu1 %v5588_v23  ;;  %v6489_v23 = vld [vmem:[%s12171_s6 + $0xfb0] sm:$0xff] }
 0x483   : > { %8657 = vmatpush3.msra.mxu0 %v6161_v0  ;;  %8523 = vmatprep.subr.mxu1 %v8874_v4  ;;  %v5914_v0 = vld [vmem:[%s12171_s6 + $0xde8] sm:$0xff] }
 0x484   : > { %8658 = vmatprep.subr.mxu0 %v8874_v4  ;;  %8524 = vmatpush3.msra.mxu1 %v5587_v57  ;;  %v6487_v57 = vld [vmem:[%s12171_s6 + $0xfa0] sm:$0xff] }
 0x485   : > { %8659 = vmatpush3.msra.mxu0 %v6160_v24  ;;  %8525 = vmatprep.subr.mxu1 %v8874_v4  ;;  %v5913_v24 = vld [vmem:[%s12171_s6 + $0xde0] sm:$0xff] }
 0x486   : > { %8660 = vmatprep.subr.mxu0 %v8874_v4  ;;  %8526 = vmatpush3.msra.mxu1 %v5586_v47  ;;  %v6486_v47 = vld [vmem:[%s12171_s6 + $0xf98] sm:$0xff] }
 0x487   : > { %8661 = vmatpush3.msra.mxu0 %v6159_v42  ;;  %8527 = vmatprep.subr.mxu1 %v8874_v4  ;;  %v5912_v42 = vld [vmem:[%s12171_s6 + $0xdd8] sm:$0xff] }
 0x488   : > { %8662 = vmatprep.subr.mxu0 %v8874_v4  ;;  %8528 = vmatpush3.msra.mxu1 %v5585_v11  ;;  %v6485_v11 = vld [vmem:[%s12171_s6 + $0xf90] sm:$0xff] }
 0x489   : > { %8663 = vmatpush3.msra.mxu0 %v6158_v13  ;;  %8529 = vmatprep.subr.mxu1 %v8874_v4  ;;  %v5911_v13 = vld [vmem:[%s12171_s6 + $0xdd0] sm:$0xff] }
 0x48a   : > { %8664 = vmatprep.subr.mxu0 %v8874_v4  ;;  %8530 = vmatpush3.msra.mxu1 %v5584_v53  ;;  %v4428_v55 = vpop.f32.mrf.mxu0  ;;  %v11923_v53 = vadd.f32 %v8811_v28, %v10375_v61  ;;  %v6483_v61 = vld [vmem:[%s12171_s6 + $0xf80] sm:$0xff]  ;;  %v6239_v28 = vld [vmem:[%s12171_s6 + $0xed0] sm:$0xff] }
 0x48b   : > { %8665 = vmatpush3.msra.mxu0 %v6157_v37  ;;  %8531 = vmatprep.subr.mxu1 %v8874_v4  ;;  %v11763_v34 = vadd.f32 %v4428_v55, %v11421_v43  ;;  %v5581_v43 = vld [vmem:[%s12171_s6 + $0xcc0] sm:$0xff]  ;;  %v6484_v37 = vld [vmem:[%s12171_s6 + $0xf88] sm:$0xff] }
 0x48c   : > { %8666 = vmatprep.subr.mxu0 %v8874_v4  ;;  %8532 = vmatpush3.msra.mxu1 %v5583_v36  ;;  %v8254_v2 = vpop.f32.mrf.mxu0 }
 0x48d   : > { %8667 = vmatpush3.msra.mxu0 %v6156_v30  ;;  %8533 = vmatprep.subr.mxu1 %v8874_v4  ;;  %v3854_v20 = vpop.f32.mrf.mxu1  ;;  %v5910_v30 = vld [vmem:[%s12171_s6 + $0xdc8] sm:$0xff]  ;;  %v1413_v2 = vmax.f32 %v11923_v53, 0.0 }
 0x48e   : > { %8668 = vmatprep.subr.mxu0 %v8874_v4  ;;  %8534 = vmatpush3.msra.mxu1 %v5582_v41  ;;  %v11776_v35 = vadd.f32 %v3854_v20, %v11435_v39  ;;  %v5752_v39 = vld [vmem:[%s12171_s6 + $0xd78] sm:$0xff] }
 0x48f   : > { %8669 = vmatpush3.msra.mxu0 %v6155_v51  ;;  %8670 = vmatprep.mubr.msk.f32.mxu0 %vm8875_vm1, %v8874_v4  ;;  %v8121_v18 = vpop.f32.mrf.mxu1 }
 0x490   : > { %8535 = vmatprep.subr.mxu1 %v8874_v4  ;;  %8671 = vmatmul.mubr.msk.f32.vlgmr.msra.gmra.mxu0 %vm1486_vm2, %v1411_v58  ;;  %v6080_v18 = vld [vmem:[%s12171_s6 + $0xe78] sm:$0xff] }
 0x491   : > { %8692 = vmatprep.subr.mxu0 %v8874_v4  ;;  %8536 = vmatpush3.msra.mxu1 %v5581_v43 }
 0x492   : > { %8537 = vmatprep.mubr.msk.f32.mxu1 %vm8875_vm1, %v8874_v4  ;;  %8693 = vmatpush3.msra.mxu0 %v6326_v15  ;;  %v5917_v15 = vrot.slane %v1409_v60, 4  ;;  %v6078_v60 = vld [vmem:[%s12171_s6 + $0xe68] sm:$0xff] }
 0x493   : > { %8538 = vmatmul.mubr.msk.f32.vlgmr.msra.gmra.mxu1 %vm1486_vm2, %v5589_v25  ;;  %8559 = vmatprep.subr.mxu1 %v8874_v4  ;;  %v6076_v25 = vld [vmem:[%s12171_s6 + $0xe58] sm:$0xff] }
 0x494   : > { %8694 = vmatprep.subr.mxu0 %v8874_v4  ;;  %8560 = vmatpush3.msra.mxu1 %v5752_v39  ;;  %v6075_v39 = vld [vmem:[%s12171_s6 + $0xe50] sm:$0xff] }
 0x495   : > { %8695 = vmatpush3.msra.mxu0 %v6325_v5  ;;  %8561 = vmatprep.subr.mxu1 %v8874_v4  ;;  %v6074_v5 = vld [vmem:[%s12171_s6 + $0xe48] sm:$0xff] }
 0x496   : > { %8696 = vmatprep.subr.mxu0 %v8874_v4  ;;  %8562 = vmatpush3.msra.mxu1 %v5751_v1 }
 0x497   : > { %8697 = vmatpush3.msra.mxu0 %v6324_v52  ;;  %8563 = vmatprep.subr.mxu1 %v8874_v4 }
 0x498   : > { %8698 = vmatprep.subr.mxu0 %v8874_v4  ;;  %8564 = vmatpush3.msra.mxu1 %v5750_v48  ;;  %v6073_v48 = vld [vmem:[%s12171_s6 + $0xe40] sm:$0xff] }
 0x499   : > { %8699 = vmatpush3.msra.mxu0 %v6323_v29  ;;  %8565 = vmatprep.subr.mxu1 %v8874_v4 }
 0x49a   : > { %8700 = vmatprep.subr.mxu0 %v8874_v4  ;;  %8566 = vmatpush3.msra.mxu1 %v5749_v17 }
 0x49b   : > { %8701 = vmatpush3.msra.mxu0 %v6322_v63  ;;  %8567 = vmatprep.subr.mxu1 %v8874_v4  ;;  %v6081_v63 = vrot.slane %v1410_v7, 4  ;;  %v6242_v7 = vld [vmem:[%s12171_s6 + $0xee8] sm:$0xff] }
 0x49c   : > { %8702 = vmatprep.subr.mxu0 %v8874_v4  ;;  %8568 = vmatpush3.msra.mxu1 %v5748_v6  ;;  %v4592_v44 = vpop.f32.mrf.mxu0  ;;  %v6244_v6 = vld [vmem:[%s12171_s6 + $0xef8] sm:$0xff] }
 0x49d   : > { %8703 = vmatpush3.msra.mxu0 %v6321_v12  ;;  %8569 = vmatprep.subr.mxu1 %v8874_v4  ;;  %v11850_v21 = vadd.f32 %v4592_v44, %v11507_v59  ;;  %v5745_v59 = vld [vmem:[%s12171_s6 + $0xd40] sm:$0xff] }
 0x49e   : > { %8704 = vmatprep.subr.mxu0 %v8874_v4  ;;  %8570 = vmatpush3.msra.mxu1 %v5747_v16  ;;  %v8292_v56 = vpop.f32.mrf.mxu0  ;;  %v6240_v16 = vld [vmem:[%s12171_s6 + $0xed8] sm:$0xff]  ;;  %v6237_v44 = vld [vmem:[%s12171_s6 + $0xec0] sm:$0xff] }
 0x49f   : > { %8705 = vmatpush3.msra.mxu0 %v6320_v3  ;;  %8571 = vmatprep.subr.mxu1 %v8874_v4  ;;  %v4018_v26 = vpop.f32.mrf.mxu1  ;;  %v6238_v3 = vld [vmem:[%s12171_s6 + $0xec8] sm:$0xff]  ;;  %v6245_v56 = vrot.slane %v1411_v58, 4 }
 0x4a0   : > { %8706 = vmatprep.subr.mxu0 %v8874_v4  ;;  %8572 = vmatpush3.msra.mxu1 %v5746_v22  ;;  %v11863_v31 = vadd.f32 %v4018_v26, %v11521_v9  ;;  %v5916_v9 = vld [vmem:[%s12171_s6 + $0xdf8] sm:$0xff] }
 0x4a1   : > { %8707 = vmatpush3.msra.mxu0 %v6319_v10  ;;  %8708 = vmatprep.mubr.msk.f32.mxu0 %vm8875_vm1, %v8874_v4  ;;  %v8159_v62 = vpop.f32.mrf.mxu1  ;;  %v6408_v26 = vld [vmem:[%s12171_s6 + $0xf78] sm:$0xff] }
 0x4a2   : > { %8573 = vmatprep.subr.mxu1 %v8874_v4  ;;  %8709 = vmatmul.mubr.msk.f32.vlgmr.msra.gmra.mxu0 %vm1486_vm2, %v1412_v38  ;;  %v6406_v62 = vld [vmem:[%s12171_s6 + $0xf68] sm:$0xff] }
 0x4a3   : > { %8730 = vmatprep.subr.mxu0 %v8874_v4  ;;  %8574 = vmatpush3.msra.mxu1 %v5745_v59 }
 0x4a4   : > { %8575 = vmatprep.mubr.msk.f32.mxu1 %vm8875_vm1, %v8874_v4  ;;  %8731 = vmatpush3.msra.mxu0 %v6490_v27 }
 0x4a5   : > { %8576 = vmatmul.mubr.msk.f32.vlgmr.msra.gmra.mxu1 %vm1486_vm2, %v5753_v32  ;;  %8597 = vmatprep.subr.mxu1 %v8874_v4  ;;  %v6405_v32 = vld [vmem:[%s12171_s6 + $0xf60] sm:$0xff] }
 0x4a6   : > { %8732 = vmatprep.subr.mxu0 %v8874_v4  ;;  %8598 = vmatpush3.msra.mxu1 %v5916_v9  ;;  %v6403_v9 = vld [vmem:[%s12171_s6 + $0xf50] sm:$0xff] }
 0x4a7   : > { %8733 = vmatpush3.msra.mxu0 %v6489_v23  ;;  %8599 = vmatprep.subr.mxu1 %v8874_v4  ;;  %v6402_v23 = vld [vmem:[%s12171_s6 + $0xf48] sm:$0xff] }
 0x4a8   : > { %8734 = vmatprep.subr.mxu0 %v8874_v4  ;;  %8600 = vmatpush3.msra.mxu1 %v5915_v45  ;;  %v6401_v45 = vld [vmem:[%s12171_s6 + $0xf40] sm:$0xff] }
 0x4a9   : > { %8735 = vmatpush3.msra.mxu0 %v6488_v33  ;;  %8601 = vmatprep.subr.mxu1 %v8874_v4  ;;  %v6409_v33 = vrot.slane %v1412_v38, 4 }
 0x4aa   : > { %8736 = vmatprep.subr.mxu0 %v8874_v4  ;;  %8602 = vmatpush3.msra.mxu1 %v5914_v0  ;;  %v6572_v0 = vld [vmem:[%s12171_s6 + $0xff8] sm:$0xff] }
 0x4ab   : > { %8737 = vmatpush3.msra.mxu0 %v6487_v57  ;;  %8603 = vmatprep.subr.mxu1 %v8874_v4 }
 0x4ac   : > { %8738 = vmatprep.subr.mxu0 %v8874_v4  ;;  %8604 = vmatpush3.msra.mxu1 %v5913_v24 }
 0x4ad   : > { %8739 = vmatpush3.msra.mxu0 %v6486_v47  ;;  %8605 = vmatprep.subr.mxu1 %v8874_v4  ;;  %v6571_v47 = vld [vmem:[%s12171_s6 + $0xff0] sm:$0xff] }
 0x4ae   : > { %8740 = vmatprep.subr.mxu0 %v8874_v4  ;;  %8606 = vmatpush3.msra.mxu1 %v5912_v42  ;;  %v4756_v36 = vpop.f32.mrf.mxu0 }
 0x4af   : > { %8741 = vmatpush3.msra.mxu0 %v6485_v11  ;;  %8607 = vmatprep.subr.mxu1 %v8874_v4  ;;  %v11934_v55 = vadd.f32 %v4756_v36, %v11593_v8  ;;  %v5909_v8 = vld [vmem:[%s12171_s6 + $0xdc0] sm:$0xff]  ;;  %v6566_v36 = vld [vmem:[%s12171_s6 + $0xfc8] sm:$0xff] }
 0x4b0   : > { %8742 = vmatprep.subr.mxu0 %v8874_v4  ;;  %8608 = vmatpush3.msra.mxu1 %v5911_v13  ;;  %v8330_v41 = vpop.f32.mrf.mxu0  ;;  %v6569_v13 = vld [vmem:[%s12171_s6 + $0xfe0] sm:$0xff] }
 0x4b1   : > { %8743 = vmatpush3.msra.mxu0 %v6484_v37  ;;  %8609 = vmatprep.subr.mxu1 %v8874_v4  ;;  %v4182_v51 = vpop.f32.mrf.mxu1  ;;  %v6568_v37 = vld [vmem:[%s12171_s6 + $0xfd8] sm:$0xff] }
 0x4b2   : > { %8744 = vmatprep.subr.mxu0 %v8874_v4  ;;  %8610 = vmatpush3.msra.mxu1 %v5910_v30  ;;  %v11947_v20 = vadd.f32 %v4182_v51, %v11606_v50  ;;  %v6077_v50 = vld [vmem:[%s12171_s6 + $0xe60] sm:$0xff] }
 0x4b3   : > { %8745 = vmatpush3.msra.mxu0 %v6483_v61  ;;  %8746 = vmatprep.mubr.msk.f32.mxu0 %vm8875_vm1, %v8874_v4  ;;  %v8197_v43 = vpop.f32.mrf.mxu1  ;;  %v6565_v30 = vld [vmem:[%s12171_s6 + $0xfc0] sm:$0xff]  ;;  %v6573_v61 = vrot.slane %v1413_v2, 4 }
 0x4b4   : > { %8611 = vmatprep.subr.mxu1 %v8874_v4  ;;  %8747 = vmatmul.mubr.msk.f32.vlgmr.msra.gmra.mxu0 %vm1486_vm2, %v1413_v2 }
 0x4b5   : > { %8612 = vmatpush3.msra.mxu1 %v5909_v8  ;;  %8613 = vmatprep.mubr.msk.f32.mxu1 %vm8875_vm1, %v8874_v4 }
 0x4b6   : > { %8614 = vmatmul.mubr.msk.f32.vlgmr.msra.gmra.mxu1 %vm1486_vm2, %v5917_v15  ;;  %8635 = vmatprep.subr.mxu1 %v8874_v4 }
 0x4b7   : > { %8636 = vmatpush3.msra.mxu1 %v6080_v18  ;;  %8651 = vmatprep.mubr.msk.f32.mxu1 %vm8875_vm1, %v8874_v4 }
 0x4b8   : > { %8637 = vmatprep.subr.mxu1 %v8874_v4 }
 0x4b9   : > { %8638 = vmatpush3.msra.mxu1 %v6079_v19 }
 0x4ba   : > { %8639 = vmatprep.subr.mxu1 %v8874_v4 }
 0x4bb   : > { %8640 = vmatpush3.msra.mxu1 %v6078_v60 }
 0x4bc   : > { %8641 = vmatprep.subr.mxu1 %v8874_v4 }
 0x4bd   : > { %8642 = vmatpush3.msra.mxu1 %v6077_v50 }
 0x4be   : > { %8643 = vmatprep.subr.mxu1 %v8874_v4 }
 0x4bf   : > { %8644 = vmatpush3.msra.mxu1 %v6076_v25 }
 0x4c0   : > { %8645 = vmatprep.subr.mxu1 %v8874_v4  ;;  %v4920_v1 = vpop.f32.mrf.mxu0 }
 0x4c1   : > { %8646 = vmatpush3.msra.mxu1 %v6075_v39  ;;  %v11990_v52 = vadd.f32 %v4920_v1, %v11678_v54 }
 0x4c2   : > { %8647 = vmatprep.subr.mxu1 %v8874_v4  ;;  %v8368_v29 = vpop.f32.mrf.mxu0 }
 0x4c3   : > { %8648 = vmatpush3.msra.mxu1 %v6074_v5  ;;  %v4346_v17 = vpop.f32.mrf.mxu1 }
 0x4c4   : > { %8649 = vmatprep.subr.mxu1 %v8874_v4  ;;  %v12003_v54 = vadd.f32 %v4346_v17, %v11691_v40  ;;  %v6241_v40 = vld [vmem:[%s12171_s6 + $0xee0] sm:$0xff] }
 0x4c5   : > { %8650 = vmatpush3.msra.mxu1 %v6073_v48  ;;  %v8235_v12 = vpop.f32.mrf.mxu1 }
 0x4c6   : > { %8652 = vmatmul.mubr.msk.f32.vlgmr.msra.gmra.mxu1 %vm1486_vm2, %v6081_v63  ;;  %8673 = vmatprep.subr.mxu1 %v8874_v4 }
 0x4c7   : > { %8674 = vmatpush3.msra.mxu1 %v6244_v6  ;;  %8689 = vmatprep.mubr.msk.f32.mxu1 %vm8875_vm1, %v8874_v4 }
 0x4c8   : > { %8675 = vmatprep.subr.mxu1 %v8874_v4 }
 0x4c9   : > { %8676 = vmatpush3.msra.mxu1 %v6243_v49 }
 0x4ca   : > { %8677 = vmatprep.subr.mxu1 %v8874_v4 }
 0x4cb   : > { %8678 = vmatpush3.msra.mxu1 %v6242_v7 }
 0x4cc   : > { %8679 = vmatprep.subr.mxu1 %v8874_v4 }
 0x4cd   : > { %8680 = vmatpush3.msra.mxu1 %v6241_v40 }
 0x4ce   : > { %8681 = vmatprep.subr.mxu1 %v8874_v4 }
 0x4cf   : > { %8682 = vmatpush3.msra.mxu1 %v6240_v16 }
 0x4d0   : > { %8683 = vmatprep.subr.mxu1 %v8874_v4 }
 0x4d1   : > { %8684 = vmatpush3.msra.mxu1 %v6239_v28 }
 0x4d2   : > { %8685 = vmatprep.subr.mxu1 %v8874_v4  ;;  %v5084_v22 = vpop.f32.mrf.mxu0 }
 0x4d3   : > { %8686 = vmatpush3.msra.mxu1 %v6238_v3  ;;  %v12037_v10 = vadd.f32 %v5084_v22, %v11763_v34  ;;  %v6407_v34 = vld [vmem:[%s12171_s6 + $0xf70] sm:$0xff] }
 0x4d4   : > { %8687 = vmatprep.subr.mxu1 %v8874_v4  ;;  %v8406_v59 = vpop.f32.mrf.mxu0 }
 0x4d5   : > { %8688 = vmatpush3.msra.mxu1 %v6237_v44  ;;  %v4510_v27 = vpop.f32.mrf.mxu1 }
 0x4d6   : > { %8690 = vmatmul.mubr.msk.f32.vlgmr.msra.gmra.mxu1 %vm1486_vm2, %v6245_v56  ;;  %8711 = vmatprep.subr.mxu1 %v8874_v4  ;;  %v12051_v46 = vadd.f32 %v4510_v27, %v11776_v35  ;;  %v6404_v35 = vld [vmem:[%s12171_s6 + $0xf58] sm:$0xff] }
 0x4d7   : > { %8712 = vmatpush3.msra.mxu1 %v6408_v26  ;;  %8727 = vmatprep.mubr.msk.f32.mxu1 %vm8875_vm1, %v8874_v4  ;;  %v8273_v58 = vpop.f32.mrf.mxu1 }
 0x4d8   : > { %8713 = vmatprep.subr.mxu1 %v8874_v4 }
 0x4d9   : > { %8714 = vmatpush3.msra.mxu1 %v6407_v34 }
 0x4da   : > { %8715 = vmatprep.subr.mxu1 %v8874_v4 }
 0x4db   : > { %8716 = vmatpush3.msra.mxu1 %v6406_v62 }
 0x4dc   : > { %8717 = vmatprep.subr.mxu1 %v8874_v4 }
 0x4dd   : > { %8718 = vmatpush3.msra.mxu1 %v6405_v32 }
 0x4de   : > { %8719 = vmatprep.subr.mxu1 %v8874_v4 }
 0x4df   : > { %8720 = vmatpush3.msra.mxu1 %v6404_v35 }
 0x4e0   : > { %8721 = vmatprep.subr.mxu1 %v8874_v4 }
 0x4e1   : > { %8722 = vmatpush3.msra.mxu1 %v6403_v9 }
 0x4e2   : > { %8723 = vmatprep.subr.mxu1 %v8874_v4 }
 0x4e3   : > { %8724 = vmatpush3.msra.mxu1 %v6402_v23 }
 0x4e4   : > { %8725 = vmatprep.subr.mxu1 %v8874_v4  ;;  %v5248_v57 = vpop.f32.mrf.mxu0 }
 0x4e5   : > { %8726 = vmatpush3.msra.mxu1 %v6401_v45  ;;  %v5252_v24 = vadd.f32 %v5248_v57, %v11850_v21  ;;  %v6570_v21 = vld [vmem:[%s12171_s6 + $0xfe8] sm:$0xff] }
 0x4e6   : > { %8728 = vmatmul.mubr.msk.f32.vlgmr.msra.gmra.mxu1 %vm1486_vm2, %v6409_v33  ;;  %8749 = vmatprep.subr.mxu1 %v8874_v4  ;;  %v8444_v14 = vpop.f32.mrf.mxu0 }
 0x4e7   : > { %8750 = vmatpush3.msra.mxu1 %v6572_v0  ;;  %8765 = vmatprep.mubr.msk.f32.mxu1 %vm8875_vm1, %v8874_v4  ;;  %v4674_v38 = vpop.f32.mrf.mxu1 }
 0x4e8   : > { %8751 = vmatprep.subr.mxu1 %v8874_v4  ;;  %v4678_v42 = vadd.f32 %v4674_v38, %v11863_v31  ;;  %v6567_v31 = vld [vmem:[%s12171_s6 + $0xfd0] sm:$0xff] }
 0x4e9   : > { %8752 = vmatpush3.msra.mxu1 %v6571_v47  ;;  %v8311_v11 = vpop.f32.mrf.mxu1 }
 0x4ea   : > { %8753 = vmatprep.subr.mxu1 %v8874_v4 }
 0x4eb   : > { %8754 = vmatpush3.msra.mxu1 %v6570_v21 }
 0x4ec   : > { %8755 = vmatprep.subr.mxu1 %v8874_v4 }
 0x4ed   : > { %8756 = vmatpush3.msra.mxu1 %v6569_v13 }
 0x4ee   : > { %8757 = vmatprep.subr.mxu1 %v8874_v4 }
 0x4ef   : > { %8758 = vmatpush3.msra.mxu1 %v6568_v37 }
 0x4f0   : > { %8759 = vmatprep.subr.mxu1 %v8874_v4 }
 0x4f1   : > { %8760 = vmatpush3.msra.mxu1 %v6567_v31 }
 0x4f2   : > { %8761 = vmatprep.subr.mxu1 %v8874_v4 }
 0x4f3   : > { %8762 = vmatpush3.msra.mxu1 %v6566_v36 }
 0x4f4   : > { %8763 = vmatprep.subr.mxu1 %v8874_v4 }
 0x4f5   : > { %8764 = vmatpush3.msra.mxu1 %v6565_v30 }
 0x4f6   : > { %8766 = vmatmul.mubr.msk.f32.vlgmr.msra.gmra.mxu1 %vm1486_vm2, %v6573_v61  ;;  %v5412_v41 = vpop.f32.mrf.mxu0 }
 0x4f7   : > { %v5416_v51 = vadd.f32 %v5412_v41, %v11934_v55 }
 0x4f8   : > { %v8482_v8 = vpop.f32.mrf.mxu0 }
 0x4f9   : > { %v4838_v43 = vpop.f32.mrf.mxu1  ;;  %v6842_v8 = vld [vmem:[%s12172_s7] ss:$0 sm:$0xff] }
 0x4fa   : > { %v4842_v15 = vadd.f32 %v4838_v43, %v11947_v20 }
 0x4fb   : > { %v8349_v18 = vpop.f32.mrf.mxu1 }
 0x508   : > { %v5576_v19 = vpop.f32.mrf.mxu0 }
 0x509   : > { %v5580_v60 = vadd.f32 %v5576_v19, %v11990_v52 }
 0x50a   : > { %v8520_v50 = vpop.f32.mrf.mxu0 }
 0x50b   : > { %v5002_v25 = vpop.f32.mrf.mxu1 }
 0x50c   : > { %v5006_v53 = vadd.f32 %v5002_v25, %v12003_v54 }
 0x50d   : > { %v8387_v2 = vpop.f32.mrf.mxu1 }
 0x51a   : > { %v5740_v4 = vpop.f32.mrf.mxu0 }
 0x51b   : > { %v5744_v39 = vadd.f32 %v5740_v4, %v12037_v10 }
 0x51c   : > { %v8558_v5 = vpop.f32.mrf.mxu0 }
 0x51d   : > { %v5166_v1 = vpop.f32.mrf.mxu1 }
 0x51e   : > { %v5170_v55 = vadd.f32 %v5166_v1, %v12051_v46 }
 0x51f   : > { %v8425_v48 = vpop.f32.mrf.mxu1 }
 0x52c   : > { %v5904_v29 = vpop.f32.mrf.mxu0 }
 0x52d   : > { %v5908_v17 = vadd.f32 %v5904_v29, %v5252_v24 }
 0x52e   : > { %v8596_v20 = vpop.f32.mrf.mxu0 }
 0x52f   : > { %v5330_v63 = vpop.f32.mrf.mxu1 }
 0x530   : > { %v5334_v6 = vadd.f32 %v5330_v63, %v4678_v42 }
 0x531   : > { %v8463_v12 = vpop.f32.mrf.mxu1 }
 0x53e   : > { %v6068_v52 = vpop.f32.mrf.mxu0 }
 0x53f   : > { %v6072_v49 = vadd.f32 %v6068_v52, %v5416_v51 }
 0x540   : > { %v8634_v7 = vpop.f32.mrf.mxu0 }
 0x541   : > { %v5494_v40 = vpop.f32.mrf.mxu1 }
 0x542   : > { %v5498_v54 = vadd.f32 %v5494_v40, %v4842_v15 }
 0x543   : > { %v8501_v16 = vpop.f32.mrf.mxu1 }
 0x550   : > { %v6232_v28 = vpop.f32.mrf.mxu0 }
 0x551   : > { %v6236_v3 = vadd.f32 %v6232_v28, %v5580_v60 }
 0x552   : > { %v8672_v44 = vpop.f32.mrf.mxu0 }
 0x553   : > { %v5658_v22 = vpop.f32.mrf.mxu1 }
 0x554   : > { %v5662_v10 = vadd.f32 %v5658_v22, %v5006_v53 }
 0x555   : > { %v8539_v56 = vpop.f32.mrf.mxu1 }
 0x562   : > { %v6396_v26 = vpop.f32.mrf.mxu0 }
 0x563   : > { %v6400_v59 = vadd.f32 %v6396_v26, %v5744_v39 }
 0x564   : > { %v8710_v27 = vpop.f32.mrf.mxu0 }
 0x565   : > { %v5822_v34 = vpop.f32.mrf.mxu1 }
 0x566   : > { %v5826_v46 = vadd.f32 %v5822_v34, %v5170_v55 }
 0x567   : > { %v8577_v58 = vpop.f32.mrf.mxu1 }
 0x574   : > { %v6560_v62 = vpop.f32.mrf.mxu0 }
 0x575   : > { %v6564_v32 = vadd.f32 %v6560_v62, %v5908_v17 }
 0x576   : > { %v5986_v35 = vpop.f32.mrf.mxu1  ;;  %v8748_v9 = vpop.f32.mrf.mxu0 }
 0x577   : > { %v5990_v31 = vadd.f32 %v5986_v35, %v5334_v6 }
 0x578   : > { %v8615_v23 = vpop.f32.mrf.mxu1 }
 0x586   : > { %v6150_v45 = vpop.f32.mrf.mxu1 }
 0x587   : > { %v6154_v33 = vadd.f32 %v6150_v45, %v5498_v54 }
 0x588   : > { %v8653_v0 = vpop.f32.mrf.mxu1 }
 0x589   : > { %v6647_v57 = vadd.f32 %v6154_v33, %v6072_v49 }
 0x596   : > { %v6314_v24 = vpop.f32.mrf.mxu1 }
 0x597   : > { %v6318_v47 = vadd.f32 %v6314_v24, %v5662_v10 }
 0x598   : > { %v8691_v14 = vpop.f32.mrf.mxu1 }
 0x599   : > { %v6648_v38 = vadd.f32 %v6318_v47, %v6236_v3 }
 0x59b   : > { %v6651_v21 = vadd.f32 %v6648_v38, %v6647_v57 }
 0x5a6   : > { %v6478_v42 = vpop.f32.mrf.mxu1 }
 0x5a7   : > { %v6482_v11 = vadd.f32 %v6478_v42, %v5826_v46 }
 0x5a8   : > { %v8729_v13 = vpop.f32.mrf.mxu1 }
 0x5a9   : > { %v6649_v37 = vadd.f32 %v6482_v11, %v6400_v59 }
 0x5b6   : > { %v6642_v36 = vpop.f32.mrf.mxu1 }
 0x5b7   : > { %v6646_v30 = vadd.f32 %v6642_v36, %v5990_v31 }
 0x5b8   : > { %v8767_v61 = vpop.f32.mrf.mxu1 }
 0x5b9   : > { %v6650_v41 = vadd.f32 %v6646_v30, %v6564_v32 }
 0x5bb   : > { %v6652_v51 = vadd.f32 %v6650_v41, %v6649_v37 }
 0x5bd   : > { %v6653_v43 = vadd.f32 %v6652_v51, %v6651_v21 }
 0x5bf   : > { %v6661_v15 = vadd.f32 %v6842_v8, %v6653_v43 }
 0x5c1   : > { %v6662_v18 = vmax.f32 %v6661_v15, 0.0 }
 0x5c3   : > { %6663 = vst [vmem:[%s298_s26] sm:$0xf] %v6662_v18 }
 0x5c4   : > { %8825 = shalt.err (!%p8822_p3)
}
 0x5c5   : > { %s8826_s22 = scalar_lea.hbm %s6676_s17, 64  ;;  %s8830_s25 = scalar_lea.hbm %s12173_s8, 128 }
 0x5c6   : > { %p8827_p4 = scmp.ne.s32.totalorder %s6676_s17, %s8826_s22  ;;  %p8831_p9 = scmp.lt.s32.totalorder %s6676_s17, %s12173_s8 }
 0x5c7   : > { %p8832_p10 = scmp.lt.s32.totalorder %s8830_s25, %s8826_s22 }
 0x5c8   : > { %p8828_p7 = pnand %p8827_p4, %p8960_p5 }
 0x5c9   : > { %p8833_p11 = por %p8832_p10, %p8831_p9 }
 0x5ca   : > { %p8829_p8 = pneg %p8828_p7 }
 0x5cc   : > { %p8834_p12 = pnand %p8833_p11, %p8829_p8 }
 0x5ce   : > { %8837 = shalt.err (!%p8834_p12)
}
 0x5cf   : > { %8768 = dma.vmem_to_hbm [thread:$0]  (%p8960_p5), %s6679_s10, 64, %s6676_s17, %s6665_s24  }
 0x5d0 PF: > { %p8774_p13 = scmp.ge.s32.totalorder %s8872_s30, 2  ;;  %s6690_s13 = sand.u32 1, %s8860_s27  }
 0x5d1   : > { %s6691_s18 = scalar_lea.sflag [#allocation3], %s6690_s13 }
 0x5d2   : > { %p8771_p0 = pnand %p8774_p13, %p8964_p6 }
 0x5d4   : > { %p8772_p1 = pneg %p8771_p0 }
 0x5d6   : > { %8855 = dma.done.wait (%p8772_p1), %s6691_s18, 64  }
 0x5d7   : > { %8857 = vsyncadd (%p8772_p1), %s6691_s18, 4294967232  ;;  %p18_p2 = scmp.ge.s32.totalorder %s8947_s11, 4   ;;  %s12176_s27 = smov %s8864_s28 }
 0x5d8   : > { %s12177_s28 = smov %s8868_s29  ;;  %s12178_s29 = smov %s8958_s14 }
 0x5d9   : > { %s12179_s30 = smov %s8947_s11  ;;  %20 = sbr.rel (!%p18_p2) target bundleno = 3 (0x3), region = 87 }
 0x5de   :  { %6696 = vsyncpa [#allocation3], 1 }
 0x5df   :  { %6698 = vsyncpa [#allocation3 + $0x1], 1 }

</bundles_post_ra>
